<compile_context>
chip_gen: v5e
topology: v5e:2x2
jax: 0.10.0
libtpu: 0.0.40
codegen_flags: <defaults>
</compile_context>

<pallas_src>
import jax
import jax.numpy as jnp
import numpy as np
from jax.experimental import pallas as pl
from jax.experimental.pallas import tpu as pltpu

HIDDEN = 512  # fixed by the module definition: hidden_sizes = [512, 512, 512]


def _round_up(x, m):
    return (x + m - 1) // m * m


def _critic_kernel(sa_ref, w1_ref, w2_ref, w3_ref, wlt_ref, sb_ref, out_ref):
    # sa_ref : (B, D_pad)       bf16  (same block every grid step -> fetched once)
    # w1_ref : (D_pad, 512)     int8
    # w2_ref : (512, 512)       int8
    # w3_ref : (512, 512)       int8
    # wlt_ref: (K_pad, 512)     int8  (last layer stored transposed, lane-dense)
    # sb_ref : (8, 512)         f32   rows 0..3 = per-out-channel scales (w1,w2,w3,wl)
    #                                 rows 4..7 = biases          (b1,b2,b3,bl)
    # out_ref: (B, K_pad)       f32   per-net block of the (n_nets, B, K_pad) output
    f32 = jnp.float32
    bf16 = jnp.bfloat16
    k = out_ref.shape[-1]

    # Layer 1: dequant folded into the post-dot scale (x @ (Wq*s) == (x @ Wq) * s).
    h = jnp.dot(sa_ref[...], w1_ref[...].astype(bf16), preferred_element_type=f32)
    h = jnp.maximum(h * sb_ref[0:1, :] + sb_ref[4:5, :], 0.0)
    # Layer 2
    h = jnp.dot(h.astype(bf16), w2_ref[...].astype(bf16), preferred_element_type=f32)
    h = jnp.maximum(h * sb_ref[1:2, :] + sb_ref[5:6, :], 0.0)
    # Layer 3
    h = jnp.dot(h.astype(bf16), w3_ref[...].astype(bf16), preferred_element_type=f32)
    h = jnp.maximum(h * sb_ref[2:3, :] + sb_ref[6:7, :], 0.0)
    # Last layer: weights stored transposed -> contract on the 512 axis.
    o = jnp.dot(h.astype(bf16), wlt_ref[...].astype(bf16).T, preferred_element_type=f32)
    out_ref[...] = (o * sb_ref[3:4, :k] + sb_ref[7:8, :k]).astype(out_ref.dtype)


def critic_forward(state, action, params, n_quantiles):
    """Pallas TQC Critic forward: returns quantiles of shape (B, n_nets, n_quantiles)."""
    w1, w2, w3, wlt, sb = (params["w1"], params["w2"], params["w3"],
                           params["wlt"], params["sb"])
    n_nets, d_pad, hidden = w1.shape
    k_pad = wlt.shape[1]

    sa = jnp.concatenate([state, action], axis=1)          # (B, D) f32
    B, D = sa.shape
    if d_pad > D:
        sa = jnp.pad(sa, ((0, 0), (0, d_pad - D)))          # zero-pad contraction dim
    sa = sa.astype(jnp.bfloat16)                            # cast once in the wrapper

    flops = 2 * B * n_nets * (d_pad * hidden + 2 * hidden * hidden + hidden * k_pad)
    bytes_accessed = (sa.size * 2                                      # bf16 input (fetched once)
                      + w1.size + w2.size + w3.size + wlt.size         # int8 weights
                      + sb.size * 4                                    # f32 scales+biases
                      + 4 * n_nets * B * k_pad)                        # f32 output

    def build(buffer_count):
        pm_kwargs = ({"pipeline_mode": pl.Buffered(buffer_count)}
                     if buffer_count is not None else {})

        def per_net(shape):
            # leading n_nets axis is squeezed out; kernel sees the trailing dims
            return pl.BlockSpec((None,) + shape, lambda n: (n,) + (0,) * len(shape),
                                **pm_kwargs)

        return pl.pallas_call(
            _critic_kernel,
            out_shape=jax.ShapeDtypeStruct((n_nets, B, k_pad), jnp.float32),
            grid_spec=pltpu.PrefetchScalarGridSpec(
                num_scalar_prefetch=0,
                grid=(n_nets,),
                in_specs=[
                    pl.BlockSpec((B, d_pad), lambda n: (0, 0)),   # sa (same block every net)
                    per_net((d_pad, hidden)),                     # W1   int8
                    per_net((hidden, hidden)),                    # W2   int8
                    per_net((hidden, hidden)),                    # W3   int8
                    per_net((k_pad, hidden)),                     # Wl^T int8 (lane-dense)
                    per_net((8, hidden)),                         # packed scales+biases f32
                ],
                out_specs=pl.BlockSpec((None, B, k_pad), lambda n: (n, 0, 0)),
            ),
            compiler_params=pltpu.CompilerParams(
                dimension_semantics=("parallel",),                # 2:1 TC split on v7x
            ),
            cost_estimate=pl.CostEstimate(
                flops=flops, transcendentals=0, bytes_accessed=bytes_accessed),
        )

    try:
        out = build(3)(sa, w1, w2, w3, wlt, sb)     # triple-buffer the 3-step weight stream
    except Exception:
        # Graceful fallback if deeper buffering isn't supported by this JAX build.
        out = build(None)(sa, w1, w2, w3, wlt, sb)

    # (n_nets, B, K_pad) -> (B, n_nets, K_pad) -> strip K padding.
    # Matches torch.stack((net(sa) for net in nets), dim=1).
    return jnp.transpose(out, (1, 0, 2))[:, :, :n_quantiles]


def init_critic_params(key, state_dim, action_dim, n_quantiles, n_nets):
    """Deterministic init mimicking torch.nn.Linear default U[-1/sqrt(fan_in), 1/sqrt(fan_in)].

    Weights are generated f32 in (in, out) layout for y = x @ W + b, then
    quantized to int8 with per-output-channel scales:
      * W1 rows zero-padded        D -> round_up(D, 32)   (int8 sublane tile)
      * Wl cols zero-padded        K -> round_up(K, 32), then stored TRANSPOSED
        as (n_nets, K_pad, 512) so the HBM layout is lane-dense (no 25->128 waste)
      * the 4 scale vectors + 4 bias vectors packed into one (n_nets, 8, 512) f32 array
    """
    D = state_dim + action_dim
    d_pad = _round_up(D, 32)
    k_pad = _round_up(n_quantiles, 32)
    assert k_pad <= HIDDEN, "packed scale/bias rows assume n_quantiles <= 512"

    dims = [(D, HIDDEN), (HIDDEN, HIDDEN), (HIDDEN, HIDDEN), (HIDDEN, n_quantiles)]
    ws, bs = [], []
    for fan_in, fan_out in dims:
        key, kw, kb = jax.random.split(key, 3)
        bound = 1.0 / np.sqrt(fan_in)
        w = jax.random.uniform(kw, (n_nets, fan_in, fan_out), jnp.float32, -bound, bound)
        b = jax.random.uniform(kb, (n_nets, fan_out), jnp.float32, -bound, bound)
        ws.append(w)
        bs.append(b)

    def quant(w):
        # symmetric per-output-channel int8 quantization
        amax = jnp.max(jnp.abs(w), axis=1, keepdims=True)          # (n_nets, 1, fan_out)
        scale = jnp.where(amax > 0, amax / 127.0, 1.0)
        q = jnp.clip(jnp.round(w / scale), -127, 127).astype(jnp.int8)
        return q, scale[:, 0, :]                                    # (n_nets, fan_out)

    q1, s1 = quant(ws[0])
    q2, s2 = quant(ws[1])
    q3, s3 = quant(ws[2])
    ql, sl = quant(ws[3])

    w1 = jnp.pad(q1, ((0, 0), (0, d_pad - D), (0, 0)))              # zero rows -> no effect
    wlt = jnp.pad(ql, ((0, 0), (0, 0), (0, k_pad - n_quantiles)))   # zero cols, sliced off
    wlt = jnp.transpose(wlt, (0, 2, 1))                             # (n_nets, K_pad, 512)

    sb = jnp.zeros((n_nets, 8, HIDDEN), jnp.float32)
    sb = sb.at[:, 0, :].set(s1)
    sb = sb.at[:, 1, :].set(s2)
    sb = sb.at[:, 2, :].set(s3)
    sb = sb.at[:, 3, :n_quantiles].set(sl)
    sb = sb.at[:, 4, :].set(bs[0])
    sb = sb.at[:, 5, :].set(bs[1])
    sb = sb.at[:, 6, :].set(bs[2])
    sb = sb.at[:, 7, :n_quantiles].set(bs[3])

    return {"w1": w1, "w2": q2, "w3": q3, "wlt": wlt, "sb": sb}


def critic_forward_ref(state, action, params, n_quantiles):
    """Pure-JAX reference with identical numerics (int8-dequant weights, bf16 operands,
    f32 accumulation, scale folded into the post-dot bias add)."""
    w1, w2, w3, wlt, sb = (params["w1"], params["w2"], params["w3"],
                           params["wlt"], params["sb"])
    f32 = jnp.float32
    bf16 = jnp.bfloat16
    n_nets, d_pad, _ = w1.shape
    k_pad = wlt.shape[1]
    sa = jnp.concatenate([state, action], axis=1)
    sa = jnp.pad(sa, ((0, 0), (0, d_pad - sa.shape[1]))).astype(bf16)
    outs = []
    for n in range(n_nets):
        h = jnp.dot(sa, w1[n].astype(bf16), preferred_element_type=f32)
        h = jnp.maximum(h * sb[n, 0] + sb[n, 4], 0.0)
        h = jnp.dot(h.astype(bf16), w2[n].astype(bf16), preferred_element_type=f32)
        h = jnp.maximum(h * sb[n, 1] + sb[n, 5], 0.0)
        h = jnp.dot(h.astype(bf16), w3[n].astype(bf16), preferred_element_type=f32)
        h = jnp.maximum(h * sb[n, 2] + sb[n, 6], 0.0)
        o = jnp.dot(h.astype(bf16), wlt[n].astype(bf16).T, preferred_element_type=f32)
        o = o * sb[n, 3, :k_pad] + sb[n, 7, :k_pad]                 # shapes (B,K_pad)*(K_pad,)
        outs.append(o[:, :n_quantiles])
    return jnp.stack(outs, axis=1)


if __name__ == "__main__":
    key = jax.random.PRNGKey(0)
    B, state_dim, action_dim = 2, 17, 6
    n_quantiles, n_nets = 25, 3

    key, ks, ka, kp = jax.random.split(key, 4)
    state = jax.random.normal(ks, (B, state_dim), jnp.float32)
    action = jax.random.normal(ka, (B, action_dim), jnp.float32)
    params = init_critic_params(kp, state_dim, action_dim, n_quantiles, n_nets)

    quantiles = critic_forward(state, action, params, n_quantiles)
    quantiles = jax.block_until_ready(quantiles)

    ref = critic_forward_ref(state, action, params, n_quantiles)
    assert quantiles.shape == (B, n_nets, n_quantiles), quantiles.shape
    np.testing.assert_allclose(np.asarray(quantiles), np.asarray(ref),
                               rtol=1e-2, atol=1e-2)

    print("KERNEL_OK")
</pallas_src>

<mosaic_0001>
module attributes {stable_mosaic.version = 11 : i64} {
  func.func @_critic_kernel(%arg0: i32, %arg1: memref<2x32xbf16, #tpu.memory_space<vmem>>, %arg2: memref<1x32x512xi8, #tpu.memory_space<vmem>>, %arg3: memref<1x512x512xi8, #tpu.memory_space<vmem>>, %arg4: memref<1x512x512xi8, #tpu.memory_space<vmem>>, %arg5: memref<1x32x512xi8, #tpu.memory_space<vmem>>, %arg6: memref<1x8x512xf32, #tpu.memory_space<vmem>>, %arg7: memref<1x2x32xf32, #tpu.memory_space<vmem>>) attributes {dimension_semantics = [#tpu.dimension_semantics<parallel>], iteration_bounds = array<i64: 3>, scalar_prefetch = 0 : i64, scratch_operands = 0 : i64, tpu.core_type = #tpu.core_type<tc>, window_params = [{pipeline_mode = #tpu.pipeline_mode<synchronous>, transform_indices = @transform_0, window_bounds = array<i64: 2, 32>}, {transform_indices = @transform_1, window_bounds = array<i64: 1, 32, 512>}, {transform_indices = @transform_2, window_bounds = array<i64: 1, 512, 512>}, {transform_indices = @transform_3, window_bounds = array<i64: 1, 512, 512>}, {transform_indices = @transform_4, window_bounds = array<i64: 1, 32, 512>}, {transform_indices = @transform_5, window_bounds = array<i64: 1, 8, 512>}, {transform_indices = @transform_6, window_bounds = array<i64: 1, 2, 32>}]} {
    %c0 = arith.constant 0 : index
    %c0_0 = arith.constant 0 : index
    %0 = vector.load %arg1[%c0, %c0_0] : memref<2x32xbf16, #tpu.memory_space<vmem>>, vector<2x32xbf16>
    %c0_1 = arith.constant 0 : index
    %c0_2 = arith.constant 0 : index
    %c0_3 = arith.constant 0 : index
    %1 = vector.load %arg2[%c0_1, %c0_2, %c0_3] : memref<1x32x512xi8, #tpu.memory_space<vmem>>, vector<1x32x512xi8>
    %2 = vector.shape_cast %1 : vector<1x32x512xi8> to vector<32x512xi8>
    %3 = arith.sitofp %2 : vector<32x512xi8> to vector<32x512xbf16>
    %cst = arith.constant dense<0.000000e+00> : vector<2x512xf32>
    %4 = tpu.matmul %0, %3, %cst {dimension_numbers = #tpu.dot_dimension_numbers<[1], [0], [0], [1], [0, 0, 1, 1], [], []>} : vector<2x32xbf16>, vector<32x512xbf16>, vector<2x512xf32> -> vector<2x512xf32>
    %c0_4 = arith.constant 0 : index
    %c0_5 = arith.constant 0 : index
    %c0_6 = arith.constant 0 : index
    %5 = vector.load %arg6[%c0_4, %c0_5, %c0_6] : memref<1x8x512xf32, #tpu.memory_space<vmem>>, vector<1x1x512xf32>
    %6 = vector.shape_cast %5 : vector<1x1x512xf32> to vector<1x512xf32>
    %7 = vector.broadcast %6 : vector<1x512xf32> to vector<2x512xf32>
    %8 = arith.mulf %4, %7 : vector<2x512xf32>
    %c0_7 = arith.constant 0 : index
    %c4 = arith.constant 4 : index
    %c0_8 = arith.constant 0 : index
    %9 = vector.load %arg6[%c0_7, %c4, %c0_8] : memref<1x8x512xf32, #tpu.memory_space<vmem>>, vector<1x1x512xf32>
    %10 = vector.shape_cast %9 : vector<1x1x512xf32> to vector<1x512xf32>
    %11 = vector.broadcast %10 : vector<1x512xf32> to vector<2x512xf32>
    %12 = arith.addf %8, %11 : vector<2x512xf32>
    %cst_9 = arith.constant 0.000000e+00 : f32
    %13 = vector.broadcast %cst_9 : f32 to vector<2x512xf32>
    %14 = arith.maximumf %12, %13 : vector<2x512xf32>
    %15 = arith.truncf %14 : vector<2x512xf32> to vector<2x512xbf16>
    %c0_10 = arith.constant 0 : index
    %c0_11 = arith.constant 0 : index
    %c0_12 = arith.constant 0 : index
    %16 = vector.load %arg3[%c0_10, %c0_11, %c0_12] : memref<1x512x512xi8, #tpu.memory_space<vmem>>, vector<1x512x512xi8>
    %17 = vector.shape_cast %16 : vector<1x512x512xi8> to vector<512x512xi8>
    %18 = arith.sitofp %17 : vector<512x512xi8> to vector<512x512xbf16>
    %cst_13 = arith.constant dense<0.000000e+00> : vector<2x512xf32>
    %19 = tpu.matmul %15, %18, %cst_13 {dimension_numbers = #tpu.dot_dimension_numbers<[1], [0], [0], [1], [0, 0, 1, 1], [], []>} : vector<2x512xbf16>, vector<512x512xbf16>, vector<2x512xf32> -> vector<2x512xf32>
    %c0_14 = arith.constant 0 : index
    %c1 = arith.constant 1 : index
    %c0_15 = arith.constant 0 : index
    %20 = vector.load %arg6[%c0_14, %c1, %c0_15] : memref<1x8x512xf32, #tpu.memory_space<vmem>>, vector<1x1x512xf32>
    %21 = vector.shape_cast %20 : vector<1x1x512xf32> to vector<1x512xf32>
    %22 = vector.broadcast %21 : vector<1x512xf32> to vector<2x512xf32>
    %23 = arith.mulf %19, %22 : vector<2x512xf32>
    %c0_16 = arith.constant 0 : index
    %c5 = arith.constant 5 : index
    %c0_17 = arith.constant 0 : index
    %24 = vector.load %arg6[%c0_16, %c5, %c0_17] : memref<1x8x512xf32, #tpu.memory_space<vmem>>, vector<1x1x512xf32>
    %25 = vector.shape_cast %24 : vector<1x1x512xf32> to vector<1x512xf32>
    %26 = vector.broadcast %25 : vector<1x512xf32> to vector<2x512xf32>
    %27 = arith.addf %23, %26 : vector<2x512xf32>
    %cst_18 = arith.constant 0.000000e+00 : f32
    %28 = vector.broadcast %cst_18 : f32 to vector<2x512xf32>
    %29 = arith.maximumf %27, %28 : vector<2x512xf32>
    %30 = arith.truncf %29 : vector<2x512xf32> to vector<2x512xbf16>
    %c0_19 = arith.constant 0 : index
    %c0_20 = arith.constant 0 : index
    %c0_21 = arith.constant 0 : index
    %31 = vector.load %arg4[%c0_19, %c0_20, %c0_21] : memref<1x512x512xi8, #tpu.memory_space<vmem>>, vector<1x512x512xi8>
    %32 = vector.shape_cast %31 : vector<1x512x512xi8> to vector<512x512xi8>
    %33 = arith.sitofp %32 : vector<512x512xi8> to vector<512x512xbf16>
    %cst_22 = arith.constant dense<0.000000e+00> : vector<2x512xf32>
    %34 = tpu.matmul %30, %33, %cst_22 {dimension_numbers = #tpu.dot_dimension_numbers<[1], [0], [0], [1], [0, 0, 1, 1], [], []>} : vector<2x512xbf16>, vector<512x512xbf16>, vector<2x512xf32> -> vector<2x512xf32>
    %c0_23 = arith.constant 0 : index
    %c2 = arith.constant 2 : index
    %c0_24 = arith.constant 0 : index
    %35 = vector.load %arg6[%c0_23, %c2, %c0_24] : memref<1x8x512xf32, #tpu.memory_space<vmem>>, vector<1x1x512xf32>
    %36 = vector.shape_cast %35 : vector<1x1x512xf32> to vector<1x512xf32>
    %37 = vector.broadcast %36 : vector<1x512xf32> to vector<2x512xf32>
    %38 = arith.mulf %34, %37 : vector<2x512xf32>
    %c0_25 = arith.constant 0 : index
    %c6 = arith.constant 6 : index
    %c0_26 = arith.constant 0 : index
    %39 = vector.load %arg6[%c0_25, %c6, %c0_26] : memref<1x8x512xf32, #tpu.memory_space<vmem>>, vector<1x1x512xf32>
    %40 = vector.shape_cast %39 : vector<1x1x512xf32> to vector<1x512xf32>
    %41 = vector.broadcast %40 : vector<1x512xf32> to vector<2x512xf32>
    %42 = arith.addf %38, %41 : vector<2x512xf32>
    %cst_27 = arith.constant 0.000000e+00 : f32
    %43 = vector.broadcast %cst_27 : f32 to vector<2x512xf32>
    %44 = arith.maximumf %42, %43 : vector<2x512xf32>
    %45 = arith.truncf %44 : vector<2x512xf32> to vector<2x512xbf16>
    %c0_28 = arith.constant 0 : index
    %c0_29 = arith.constant 0 : index
    %c0_30 = arith.constant 0 : index
    %46 = vector.load %arg5[%c0_28, %c0_29, %c0_30] : memref<1x32x512xi8, #tpu.memory_space<vmem>>, vector<1x32x512xi8>
    %47 = vector.shape_cast %46 : vector<1x32x512xi8> to vector<32x512xi8>
    %48 = arith.sitofp %47 : vector<32x512xi8> to vector<32x512xbf16>
    %49 = tpu.transpose %48, [1, 0] : vector<32x512xbf16> -> vector<512x32xbf16>
    %cst_31 = arith.constant dense<0.000000e+00> : vector<2x32xf32>
    %50 = tpu.matmul %45, %49, %cst_31 {dimension_numbers = #tpu.dot_dimension_numbers<[1], [0], [0], [1], [0, 0, 1, 1], [], []>} : vector<2x512xbf16>, vector<512x32xbf16>, vector<2x32xf32> -> vector<2x32xf32>
    %c0_32 = arith.constant 0 : index
    %c3 = arith.constant 3 : index
    %c0_33 = arith.constant 0 : index
    %51 = vector.load %arg6[%c0_32, %c3, %c0_33] : memref<1x8x512xf32, #tpu.memory_space<vmem>>, vector<1x1x32xf32>
    %52 = vector.shape_cast %51 : vector<1x1x32xf32> to vector<1x32xf32>
    %53 = vector.broadcast %52 : vector<1x32xf32> to vector<2x32xf32>
    %54 = arith.mulf %50, %53 : vector<2x32xf32>
    %c0_34 = arith.constant 0 : index
    %c7 = arith.constant 7 : index
    %c0_35 = arith.constant 0 : index
    %55 = vector.load %arg6[%c0_34, %c7, %c0_35] : memref<1x8x512xf32, #tpu.memory_space<vmem>>, vector<1x1x32xf32>
    %56 = vector.shape_cast %55 : vector<1x1x32xf32> to vector<1x32xf32>
    %57 = vector.broadcast %56 : vector<1x32xf32> to vector<2x32xf32>
    %58 = arith.addf %54, %57 : vector<2x32xf32>
    %c0_36 = arith.constant 0 : index
    %c0_37 = arith.constant 0 : index
    %c0_38 = arith.constant 0 : index
    %59 = vector.load %arg7[%c0_36, %c0_37, %c0_38] : memref<1x2x32xf32, #tpu.memory_space<vmem>>, vector<1x2x32xf32>
    %60 = vector.shape_cast %59 : vector<1x2x32xf32> to vector<2x32xf32>
    %61 = vector.shape_cast %58 : vector<2x32xf32> to vector<1x2x32xf32>
    tpu.vector_store %arg7[%c0_36, %c0_37, %c0_38], %61 {strides = array<i32>} : memref<1x2x32xf32, #tpu.memory_space<vmem>>, vector<1x2x32xf32>,
    return
  }
  func.func @transform_0(%arg0: i32) -> (i32, i32) {
    %c0_i32 = arith.constant 0 : i32
    %c0_i32_0 = arith.constant 0 : i32
    %c0_i32_1 = arith.constant 0 : i32
    return %c0_i32, %c0_i32_0 : i32, i32
  }
  func.func @transform_1(%arg0: i32) -> (i32, i32, i32) {
    %c0_i32 = arith.constant 0 : i32
    %c0_i32_0 = arith.constant 0 : i32
    %c0_i32_1 = arith.constant 0 : i32
    return %arg0, %c0_i32, %c0_i32_0 : i32, i32, i32
  }
  func.func @transform_2(%arg0: i32) -> (i32, i32, i32) {
    %c0_i32 = arith.constant 0 : i32
    %c0_i32_0 = arith.constant 0 : i32
    %c0_i32_1 = arith.constant 0 : i32
    return %arg0, %c0_i32, %c0_i32_0 : i32, i32, i32
  }
  func.func @transform_3(%arg0: i32) -> (i32, i32, i32) {
    %c0_i32 = arith.constant 0 : i32
    %c0_i32_0 = arith.constant 0 : i32
    %c0_i32_1 = arith.constant 0 : i32
    return %arg0, %c0_i32, %c0_i32_0 : i32, i32, i32
  }
  func.func @transform_4(%arg0: i32) -> (i32, i32, i32) {
    %c0_i32 = arith.constant 0 : i32
    %c0_i32_0 = arith.constant 0 : i32
    %c0_i32_1 = arith.constant 0 : i32
    return %arg0, %c0_i32, %c0_i32_0 : i32, i32, i32
  }
  func.func @transform_5(%arg0: i32) -> (i32, i32, i32) {
    %c0_i32 = arith.constant 0 : i32
    %c0_i32_0 = arith.constant 0 : i32
    %c0_i32_1 = arith.constant 0 : i32
    return %arg0, %c0_i32, %c0_i32_0 : i32, i32, i32
  }
  func.func @transform_6(%arg0: i32) -> (i32, i32, i32) {
    %c0_i32 = arith.constant 0 : i32
    %c0_i32_0 = arith.constant 0 : i32
    %c0_i32_1 = arith.constant 0 : i32
    return %arg0, %c0_i32, %c0_i32_0 : i32, i32, i32
  }
}

</mosaic_0001>

<bundles_post_ra>
// kernel: tpu_custom_call.1
= control target key start
LH: loop header
LB: loop body
LE: loop exit
PB: predicated region body
PF: predicated region fallthrough
CT: control target
= control target key end

     0   :  { %s4365_s0 = inlined_call_operand.hbm [shape: bf16[2,32], index: 0, kind: input, shape index: {}]   ;;  %s4366_s1 = inlined_call_operand.hbm [shape: s8[3,32,512], index: 1, kind: input, shape index: {}]   ;;  %s4367_s2 = inlined_call_operand.hbm [shape: s8[3,512,512], index: 2, kind: input, shape index: {}]   ;;  %s4368_s3 = inlined_call_operand.hbm [shape: s8[3,512,512], index: 3, kind: input, shape index: {}]   ;;  %s4369_s4 = inlined_call_operand.hbm [shape: s8[3,32,512], index: 4, kind: input, shape index: {}]   ;;  %s4370_s5 = inlined_call_operand.hbm [shape: f32[3,8,512], index: 5, kind: input, shape index: {}]   ;;  %s4371_s6 = inlined_call_operand.hbm [shape: f32[3,2,32], index: 6, kind: output, shape index: {}]  }
   0x1   :  { %4383 = sst [smem:[#allocation25_spill]] %s4365_s0 }
   0x2   :  { %4384 = sst [smem:[#allocation26_spill]] %s4366_s1 }
   0x3   :  { %4385 = sst [smem:[#allocation27_spill]] %s4367_s2 }
   0x4   :  { %4386 = sst [smem:[#allocation28_spill]] %s4368_s3 }
   0x5   :  { %4387 = sst [smem:[#allocation29_spill]] %s4371_s6 }
   0x6   :  { %11 = vsyncpa [#allocation3], 0 }
   0x7   :  { %12 = vsyncpa [#allocation6], 0 }
   0x8   :  { %14 = vsyncpa [#allocation6 + $0x1], 0 }
   0x9   :  { %15 = vsyncpa [#allocation9], 0 }
   0xa   :  { %17 = vsyncpa [#allocation9 + $0x1], 0 }
   0xb   :  { %18 = vsyncpa [#allocation12], 0 }
   0xc   :  { %20 = vsyncpa [#allocation12 + $0x1], 0 }
   0xd   :  { %21 = vsyncpa [#allocation4], 0 }
   0xe   :  { %23 = vsyncpa [#allocation4 + $0x1], 0  ;;  %s3190_s21 = smov 0   ;;  %s3192_s22 = smov 0  }
   0xf   :  { %s3194_s23 = smov 0   ;;  %s3196_s24 = smov 0  }
  0x10 LB: > { %4388 = sst [smem:[#allocation19_spill]] %s3138_s21  ;;  %s3211_s25 = sadd.s32 1, %s3150_s24   ;;  %s3150_s24 = sphi %s3196_s24, %s4423_s24   ;;  %s3146_s23 = sphi %s3194_s23, %s4425_s23   ;;  %s3142_s22 = sphi %s3192_s22, %s4427_s22   ;;  %s3138_s21 = sphi %s3190_s21, %s4426_s21  }
  0x11   : > { %4389 = sst [smem:[#allocation20_spill]] %s3146_s23  ;;  %s57_s26 = sadd.s32 1, %s3146_s23 }
  0x12   : > { %4390 = sst [smem:[#allocation21_spill]] %s3150_s24  ;;  %s54_s27 = ssub.s32 %s3150_s24, %s3211_s25 }
  0x13   : > { %4391 = sst [smem:[#allocation22_spill]] %s3211_s25  ;;  %p64_p0 = scmp.ne.s32.totalorder %s3146_s23, %s3142_s22 }
  0x14   : > { %p55_p1 = scmp.eq.s32.totalorder %s54_s27, 0  ;;  %p65_p2 = scmp.eq.s32.totalorder %s3150_s24, 0 }
  0x15   : > { %p2854_p3 = scmp.lt.s32.totalorder %s3150_s24, 3  ;;  %s4372_s29 = sand.u32 1, %s3150_s24  }
  0x16   : > { %s3221_s28 = scalar_select %p55_p1, %s3146_s23, %s57_s26  }
  0x17   : > { %p66_p4 = por %p65_p2, %p64_p0  ;;  %s3228_s30 = sand.u32 1, %s3146_s23  }
  0x18   : > { %4392 = sst [smem:[#allocation23_spill]] %s3221_s28  ;;  %s3231_s7 = sshll.u32 %s3228_s30, 5 }
  0x19   : > { %s3234_s8 = sshll.u32 %s3150_s24, 5  ;;  %s4393_s1 = sld [smem:[#allocation26_spill]] }
  0x1a   : > { %s240_s13 = scalar_lea.vmem [#allocation5], %s3231_s7  ;;  %p3243_p5 = pnand %p2854_p3, %p66_p4 }
  0x1b   : > { %s249_s14 = sshll.u32 %s240_s13, 4  ;;  %s2775_s16 = sshll.u32 %s3228_s30, 9  ;;  %s250_s14 = int_to_ptr.vmem [resolvable:$true] %s249_s14 }
  0x1c   : > { %s2809_s17 = sshll.u32 %s3150_s24, 9  ;;  %s3251_s18 = scalar_lea.sflag [#allocation6], %s4372_s29 }
  0x1d   : > { %p3255_p7 = pneg %p3243_p5 }
  0x1f   : > { %s245_s11 = scalar_lea.hbm %s4393_s1, %s3234_s8  ;;  %s2899_s10 = scalar_lea.hbm %s4393_s1, 96 }
  0x20   : > { %s247_s12 = sshll.u32 %s245_s11, 4  ;;  %s248_s12 = int_to_ptr.hbm [resolvable:$true] %s247_s12 }
  0x21   : > { %s2892_s19 = sshra.s32 %s248_s12, 4  ;;  %s2893_s19 = int_to_ptr.hbm [resolvable:$true] %s2892_s19 }
  0x22   : > { %s2894_s20 = scalar_lea.hbm %s2893_s19, 32  ;;  %p2900_p10 = scmp.lt.s32.totalorder %s2893_s19, %s4393_s1 }
  0x23   : > { %p2895_p6 = scmp.ne.s32.totalorder %s2893_s19, %s2894_s20  ;;  %p2901_p11 = scmp.lt.s32.totalorder %s2899_s10, %s2894_s20 }
  0x25   : > { %p2897_p8 = pnand %p3255_p7, %p2895_p6  ;;  %p2902_p12 = por %p2901_p11, %p2900_p10 }
  0x27   : > { %p2898_p9 = pneg %p2897_p8 }
  0x29   : > { %p2903_p13 = pnand %p2902_p12, %p2898_p9 }
  0x2b   : > { %2906 = shalt.err (!%p2903_p13)
}
  0x2c   : > { %2836 = dma.hbm_to_vmem [thread:$0]  (!%p3243_p5), %s248_s12, 512, %s250_s14, %s3251_s18  }
  0x2d   : > { %s4396_s2 = sld [smem:[#allocation27_spill]]  ;;  %s260_s6 = scalar_lea.vmem [#allocation7], %s2775_s16 }
  0x2e   : > { %s268_s27 = sshll.u32 %s260_s6, 4  ;;  %s4397_s3 = sld [smem:[#allocation28_spill]]  ;;  %s3273_s27 = int_to_ptr.vmem [resolvable:$true] %s268_s27 }
  0x2f   : > { %s282_s11 = scalar_lea.vmem [#allocation8], %s2775_s16  ;;  %s4398_s12 = sand.u32 1, %s3150_s24  }
  0x30   : > { %s290_s13 = sshll.u32 %s282_s11, 4  ;;  %s3282_s28 = scalar_lea.sflag [#allocation9], %s4398_s12  ;;  %s291_s13 = int_to_ptr.vmem [resolvable:$true] %s290_s13 }
  0x33   : > { %s265_s25 = scalar_lea.hbm %s4396_s2, %s2809_s17 }
  0x34   : > { %s266_s9 = sshll.u32 %s265_s25, 4  ;;  %s287_s10 = scalar_lea.hbm %s4397_s3, %s2809_s17  ;;  %s3275_s9 = int_to_ptr.hbm [resolvable:$true] %s266_s9 }
  0x35   : > { %s288_s1 = sshll.u32 %s287_s10, 4  ;;  %s2929_s19 = scalar_lea.hbm %s4397_s3, 1536  ;;  %s289_s1 = int_to_ptr.hbm [resolvable:$true] %s288_s1 }
  0x36   : > { %s2922_s29 = sshra.s32 %s289_s1, 4  ;;  %s2923_s29 = int_to_ptr.hbm [resolvable:$true] %s2922_s29 }
  0x37   : > { %s2924_s6 = scalar_lea.hbm %s2923_s29, 512  ;;  %p2930_p4 = scmp.lt.s32.totalorder %s2923_s29, %s4397_s3 }
  0x38   : > { %p2925_p1 = scmp.ne.s32.totalorder %s2923_s29, %s2924_s6  ;;  %p2931_p6 = scmp.lt.s32.totalorder %s2929_s19, %s2924_s6 }
  0x3a   : > { %p2927_p2 = pnand %p2925_p1, %p3255_p7  ;;  %p2932_p8 = por %p2931_p6, %p2930_p4 }
  0x3c   : > { %p2928_p3 = pneg %p2927_p2 }
  0x3e   : > { %p2933_p9 = pnand %p2932_p8, %p2928_p3 }
  0x40   : > { %2936 = shalt.err (!%p2933_p9)
}
  0x41   : > { %s4376_s20 = smov 512   ;;  %s4377_s10 = smov 32  }
  0x42   : > { %2842 = dma.hbm_to_vmem [thread:$0]  (!%p3243_p5), %s289_s1, 8192, %s291_s13, %s3282_s28, %s4376_s20, %s4376_s20, %s4377_s10  }
  0x43   : > { %s3299_s11 = sadd.s32 4294967295, %s3150_s24   ;;  %s2768_s12 = sadd.s32 4294967294, %s3150_s24  }
  0x44   : > { %p70_p10 = scmp.ne.s32.totalorder %s3142_s22, %s3138_s21  ;;  %p4380_p11 = scmp.eq.s32.totalorder %s3299_s11, 0 }
  0x45   : > { %p198_p12 = scmp.eq.s32.totalorder %s3299_s11, 2  ;;  %p204_p13 = scmp.eq.s32.totalorder %s2768_s12, 2 }
  0x46   : > { %p2769_p1 = scmp.ge.s32.totalorder %s3150_s24, 1  ;;  %p3309_p2 = por %p4380_p11, %p70_p10 }
  0x47   : > { %p3316_p3 = por %p198_p12, %p64_p0  ;;  %p3320_p4 = por %p204_p13, %p70_p10 }
  0x48   : > { %p211_p6 = scmp.lt.s32.totalorder %s3150_s24, 4  ;;  %s4403_s0 = sld [smem:[#allocation25_spill]] }
  0x49   : > { %s4401_s13 = scalar_select %p3320_p4, 1, 0 }
  0x4a   : > { %p3328_p8 = pnand %p2769_p1, %p211_p6  ;;  %s3154_s17 = smov [#allocation2]  }
  0x4b   : > { %4402 = sst [smem:[#allocation24_spill]] %s4401_s13  ;;  %s225_s16 = sshll.u32 %s3154_s17, 4  ;;  %s226_s16 = int_to_ptr.vmem [resolvable:$true] %s225_s16 }
  0x4c   : > { %p2829_p0 = pneg %p3328_p8  ;;  %s309_s10 = scalar_lea.hbm %s4369_s4, %s3234_s8 }
  0x4d   : > { %s3344_s6 = sshll.u32 %s309_s10, 4  ;;  %s2952_s25 = sshra.s32 %s3275_s9, 4  ;;  %s2953_s25 = int_to_ptr.hbm [resolvable:$true] %s2952_s25  ;;  %s312_s6 = int_to_ptr.hbm [resolvable:$true] %s3344_s6 }
  0x4e   : > { %s223_s14 = sshll.u32 %s4403_s0, 4  ;;  %p3340_p9 = pnand %p2829_p0, %p4380_p11  ;;  %s224_s14 = int_to_ptr.hbm [resolvable:$true] %s223_s14 }
  0x4f   : > { %s2954_s0 = scalar_lea.hbm %s2953_s25, 512  ;;  %s2959_s13 = scalar_lea.hbm %s4396_s2, 1536 }
  0x50   : > { %p2955_p10 = scmp.ne.s32.totalorder %s2953_s25, %s2954_s0  ;;  %p2960_p1 = scmp.lt.s32.totalorder %s2953_s25, %s4396_s2 }
  0x51   : > { %p2961_p6 = scmp.lt.s32.totalorder %s2959_s13, %s2954_s0 }
  0x52   : > { %p2957_p12 = pnand %p2955_p10, %p3255_p7 }
  0x53   : > { %p2962_p0 = por %p2961_p6, %p2960_p1 }
  0x54   : > { %p2958_p13 = pneg %p2957_p12 }
  0x56   : > { %p2963_p11 = pnand %p2962_p0, %p2958_p13 }
  0x58   : > { %2966 = shalt.err (!%p2963_p11)
}
  0x59   : > { %s4406_s10 = smov 32   ;;  %s4407_s21 = smov 512  }
  0x5a   : > { %2839 = dma.hbm_to_vmem [thread:$0]  (!%p3243_p5), %s3275_s9, 8192, %s3273_s27, %s3251_s18, %s4407_s21, %s4407_s21, %s4406_s10  }
  0x5b   : > { %2832 = dma.hbm_to_vmem [thread:$0]  (!%p3340_p9), %s224_s14, 16, %s226_s16, [#allocation3]  }
  0x5c   : > { %s304_s0 = scalar_lea.vmem [#allocation10], %s3231_s7  ;;  %s3012_s13 = sshra.s32 %s312_s6, 4  ;;  %s3013_s13 = int_to_ptr.hbm [resolvable:$true] %s3012_s13 }
  0x5d   : > { %s313_s23 = sshll.u32 %s304_s0, 4  ;;  %s3014_s25 = scalar_lea.hbm %s3013_s13, 32  ;;  %s314_s23 = int_to_ptr.vmem [resolvable:$true] %s313_s23 }
  0x5e   : > { %p3015_p11 = scmp.ne.s32.totalorder %s3013_s13, %s3014_s25  ;;  %s3019_s12 = scalar_lea.hbm %s4369_s4, 96 }
  0x5f   : > { %p3020_p13 = scmp.lt.s32.totalorder %s3013_s13, %s4369_s4  ;;  %p3021_p1 = scmp.lt.s32.totalorder %s3019_s12, %s3014_s25 }
  0x60   : > { %p3017_p10 = pnand %p3015_p11, %p3255_p7 }
  0x61   : > { %p3022_p9 = por %p3021_p1, %p3020_p13 }
  0x62   : > { %p3018_p12 = pneg %p3017_p10 }
  0x64   : > { %p3023_p6 = pnand %p3022_p9, %p3018_p12 }
  0x66   : > { %3026 = shalt.err (!%p3023_p6)
}
  0x67   : > { %2845 = dma.hbm_to_vmem [thread:$0]  (!%p3243_p5), %s312_s6, 512, %s314_s23, %s3282_s28  }
  0x68   : > { %s329_s18 = scalar_lea.hbm %s4370_s5, %s3234_s8  ;;  %s324_s27 = scalar_lea.vmem [#allocation11], %s3231_s7 }
  0x69   : > { %s333_s9 = sshll.u32 %s324_s27, 4  ;;  %s331_s2 = sshll.u32 %s329_s18, 4  ;;  %s334_s9 = int_to_ptr.vmem [resolvable:$true] %s333_s9  ;;  %s332_s2 = int_to_ptr.hbm [resolvable:$true] %s331_s2 }
  0x6a   : > { %s321_s24 = scalar_lea.sflag [#allocation12], %s3228_s30  ;;  %s3042_s14 = sshra.s32 %s332_s2, 4  ;;  %s3043_s14 = int_to_ptr.hbm [resolvable:$true] %s3042_s14 }
  0x6b   : > { %s3044_s16 = scalar_lea.hbm %s3043_s14, 32  ;;  %s3049_s28 = scalar_lea.hbm %s4370_s5, 96 }
  0x6c   : > { %p3045_p0 = scmp.ne.s32.totalorder %s3043_s14, %s3044_s16  ;;  %p3050_p12 = scmp.lt.s32.totalorder %s3043_s14, %s4370_s5 }
  0x6d   : > { %p3051_p13 = scmp.lt.s32.totalorder %s3049_s28, %s3044_s16 }
  0x6e   : > { %p3047_p11 = pnand %p3045_p0, %p3255_p7 }
  0x6f   : > { %p3052_p1 = por %p3051_p13, %p3050_p12 }
  0x70   : > { %p3048_p10 = pneg %p3047_p11 }
  0x72   : > { %p3053_p9 = pnand %p3052_p1, %p3048_p10 }
  0x74   : > { %3056 = shalt.err (!%p3053_p9)
}
  0x75   : > { %2848 = dma.hbm_to_vmem [thread:$0]  (!%p3243_p5), %s332_s2, 512, %s334_s9, %s321_s24  }
  0x76   : > { %342 = sbr.rel (%p3328_p8) target bundleno = 847 (0x34f), region = 44  ;;  %p4408_p7 = scmp.eq.s32.totalorder (!%p3328_p8), %s3299_s11, 0 }
  0x7b   : > { %3117 = dma.done.wait (%p4408_p7), [#allocation3], 16   ;;  %p4409_p6 = pmov %p4408_p7 }
  0x7c   : > { %s349_s30 = sand.u32 1, %s3299_s11   ;;  %s3402_s7 = sand.u32 1, %s3142_s22  }
  0x7d   : > { %3119 = vsyncadd (%p4409_p6), [#allocation3], 4294967280  ;;  %s2789_s8 = sshll.u32 %s3402_s7, 5  ;;  %s350_s26 = scalar_lea.sflag [#allocation6], %s349_s30 }
  0x7e   : > { %s353_s15 = scalar_lea.vmem [#allocation5], %s2789_s8 }
  0x7f   : > { %3121 = dma.done.wait (%p3309_p2), %s350_s26, 8704  }
  0x80   : > { %3123 = vsyncadd (%p3309_p2), %s350_s26, 4294958592  ;;  %s2790_s19 = sshll.u32 %s3402_s7, 9  ;;  %s370_s25 = scalar_lea.sflag [#allocation9], %s349_s30 }
  0x81   : > { %s3410_s13 = scalar_lea.vmem [#allocation7], %s2790_s19  ;;  %s3412_s17 = scalar_lea.vmem [#allocation8], %s2790_s19 }
  0x82   : > { %3125 = dma.done.wait (%p3309_p2), %s370_s25, 8704  }
  0x83   : > { %3127 = vsyncadd (%p3309_p2), %s370_s25, 4294958592  ;;  %s3418_s20 = scalar_lea.vmem [#allocation10], %s2789_s8  ;;  %s390_s12 = scalar_lea.sflag [#allocation12], %s3402_s7 }
  0x84   : > { %s3421_s3 = scalar_lea.vmem [#allocation11], %s2789_s8 }
  0x85   : > { %3129 = dma.done.wait (%p3309_p2), %s390_s12, 512  }
  0x86   : > { %3131 = vsyncadd (%p3309_p2), %s390_s12, 4294966784  ;;  %v445_v0 = vld [vmem:[%s353_s15] sm:$0xff]  ;;  %v446_v1 = vld [vmem:[%s353_s15 + $0x8] sm:$0xff]  ;;  %vm489_vm0 = vcmask 261120   ;;  %s2794_s29 = sshll.u32 %s3402_s7, 1  ;;  %s2805_s21 = sshll.u32 %s3299_s11, 1 }
  0x87   : > { %v447_v2 = vld [vmem:[%s353_s15 + $0x10] sm:$0xff]  ;;  %v457_v3 = vunpack.c.2.s8 %v445_v0  ;;  %v461_v4 = vunpack.c.3.s8 %v445_v0  ;;  %v458_v5 = vunpack.c.2.s8 %v446_v1  ;;  %v462_v6 = vunpack.c.3.s8 %v446_v1  ;;  %v448_v7 = vld [vmem:[%s353_s15 + $0x18] sm:$0xff]  ;;  %v594_v28 = vld [vmem:[%s3410_s13 + $0x60] sm:$0xff]  ;;  %s4419_s9 = sld [smem:[#allocation29_spill]]  ;;  %s442_s24 = scalar_lea.vmem [#allocation13], %s2794_s29 }
  0x88   : > { %v459_v8 = vunpack.c.2.s8 %v447_v2  ;;  %v463_v9 = vunpack.c.3.s8 %v447_v2  ;;  %v460_v10 = vunpack.c.2.s8 %v448_v7  ;;  %v464_v11 = vunpack.c.3.s8 %v448_v7  ;;  %v610_v37 = vld [vmem:[%s3410_s13 + $0xe0] sm:$0xff]  ;;  %v444_v47 = vld [vmem:[#allocation2] sm:$0x1]  ;;  %s2597_s14 = sshll.u32 %s442_s24, 4  ;;  %s2585_s11 = scalar_lea.sflag [#allocation4], %s3402_s7  ;;  %s2598_s14 = int_to_ptr.vmem [resolvable:$true] %s2597_s14 }
  0x89   : > { %v473_v12 = vcvt.s32.f32 %v457_v3  ;;  %v477_v13 = vcvt.s32.f32 %v461_v4  ;;  %v474_v14 = vcvt.s32.f32 %v458_v5  ;;  %v478_v15 = vcvt.s32.f32 %v462_v6  ;;  %v626_v51 = vld [vmem:[%s3410_s13 + $0x160] sm:$0xff] }
  0x8a   : > { %v475_v16 = vcvt.s32.f32 %v459_v8  ;;  %v479_v17 = vcvt.s32.f32 %v463_v9  ;;  %v476_v18 = vcvt.s32.f32 %v460_v10  ;;  %v480_v19 = vcvt.s32.f32 %v464_v11  ;;  %v642_v60 = vld [vmem:[%s3410_s13 + $0x1e0] sm:$0xff] }
  0x8b   : > { %v485_v20 = vpack.c.bf16 %v477_v13, %v473_v12  ;;  %v486_v21 = vpack.c.bf16 %v478_v15, %v474_v14  ;;  %v449_v22 = vunpack.c.0.s8 %v445_v0  ;;  %v453_v23 = vunpack.c.1.s8 %v445_v0  ;;  %v606_v6 = vld [vmem:[%s3410_s13 + $0xc0] sm:$0xff] }
  0x8c   : > { %v487_v24 = vpack.c.bf16 %v479_v17, %v475_v16  ;;  %v488_v25 = vpack.c.bf16 %v480_v19, %v476_v18  ;;  %v450_v26 = vunpack.c.0.s8 %v446_v1  ;;  %v454_v27 = vunpack.c.1.s8 %v446_v1  ;;  %v590_v1 = vld [vmem:[%s3410_s13 + $0x40] sm:$0xff] }
  0x8d   : > { %499 = vmatpush.bf16.msra.mxu0 %v485_v20  ;;  %512 = vmatpush.bf16.msra.mxu1 %v486_v21  ;;  %v465_v29 = vcvt.s32.f32 %v449_v22  ;;  %v469_v30 = vcvt.s32.f32 %v453_v23  ;;  %v451_v31 = vunpack.c.0.s8 %v447_v2  ;;  %v455_v32 = vunpack.c.1.s8 %v447_v2  ;;  %s2595_s2 = scalar_lea.hbm %s4419_s9, %s2805_s21  ;;  %s3092_s23 = scalar_lea.hbm %s4419_s9, 6 }
  0x8e   : > { %525 = vmatpush.bf16.msra.mxu2 %v487_v24  ;;  %538 = vmatpush.bf16.msra.mxu3 %v488_v25  ;;  %v466_v33 = vcvt.s32.f32 %v450_v26  ;;  %v470_v34 = vcvt.s32.f32 %v454_v27  ;;  %v452_v35 = vunpack.c.0.s8 %v448_v7  ;;  %v456_v36 = vunpack.c.1.s8 %v448_v7  ;;  %s2599_s16 = sshll.u32 %s2595_s2, 4  ;;  %s2600_s16 = int_to_ptr.hbm [resolvable:$true] %s2599_s16 }
  0x8f   : > { %v481_v38 = vpack.c.bf16 %v469_v30, %v465_v29  ;;  %v467_v39 = vcvt.s32.f32 %v451_v31  ;;  %v471_v40 = vcvt.s32.f32 %v455_v32  ;;  %v702_v41 = vunpack.c.2.s8 %v594_v28  ;;  %v622_v31 = vld [vmem:[%s3410_s13 + $0x140] sm:$0xff]  ;;  %s3086_s10 = sshra.s32 %s2600_s16, 4  ;;  %s3087_s10 = int_to_ptr.hbm [resolvable:$true] %s3086_s10 }
  0x90   : > { %v482_v42 = vpack.c.bf16 %v470_v34, %v466_v33  ;;  %v468_v43 = vcvt.s32.f32 %v452_v35  ;;  %v472_v44 = vcvt.s32.f32 %v456_v36  ;;  %v706_v45 = vunpack.c.3.s8 %v594_v28  ;;  %s3088_s0 = scalar_lea.hbm %s3087_s10, 2  ;;  %p3093_p0 = scmp.lt.s32.totalorder %s3087_s10, %s4419_s9 }
  0x91   : > { %500 = vmatpush.bf16.msra.mxu0 %v481_v38  ;;  %v483_v46 = vpack.c.bf16 %v471_v40, %v467_v39  ;;  %v958_v48 = vcvt.s32.f32 %v702_v41  ;;  %v766_v49 = vunpack.c.2.s8 %v610_v37  ;;  %v770_v50 = vunpack.c.3.s8 %v610_v37  ;;  %v638_v40 = vld [vmem:[%s3410_s13 + $0x1c0] sm:$0xff]  ;;  %p3089_p5 = scmp.ne.s32.totalorder %s3087_s10, %s3088_s0  ;;  %p3094_p11 = scmp.lt.s32.totalorder %s3092_s23, %s3088_s0 }
  0x92   : > { %513 = vmatpush.bf16.msra.mxu1 %v482_v42  ;;  %v484_v52 = vpack.c.bf16 %v472_v44, %v468_v43  ;;  %v962_v53 = vcvt.s32.f32 %v706_v45  ;;  %v694_v54 = vunpack.c.0.s8 %v594_v28  ;;  %v698_v55 = vunpack.c.1.s8 %v594_v28  ;;  %v586_v45 = vld [vmem:[%s3410_s13 + $0x20] sm:$0xff] }
  0x93   : > { %526 = vmatpush.bf16.msra.mxu2 %v483_v46  ;;  %v1022_v56 = vcvt.s32.f32 %v766_v49  ;;  %v1026_v57 = vcvt.s32.f32 %v770_v50  ;;  %v758_v58 = vunpack.c.0.s8 %v610_v37  ;;  %v762_v59 = vunpack.c.1.s8 %v610_v37  ;;  %v602_v50 = vld [vmem:[%s3410_s13 + $0xa0] sm:$0xff]  ;;  %p3090_p2 = pnand %p3089_p5, %p3316_p3  ;;  %p3095_p10 = por %p3094_p11, %p3093_p0 }
  0x94   : > { %539 = vmatpush.bf16.msra.mxu3 %v484_v52  ;;  %2795 = vmatmul.msk.bf16.vlgmr.msra.gmra.mxu0 %vm489_vm0, %v444_v47  ;;  %v1186_v61 = vpack.c.bf16 %v962_v53, %v958_v48  ;;  %v950_v62 = vcvt.s32.f32 %v694_v54  ;;  %v954_v63 = vcvt.s32.f32 %v698_v55  ;;  %v830_v0 = vunpack.c.2.s8 %v626_v51 }
  0x95   : > { %2796 = vmatmul.msk.bf16.vlgmr.msra.gmra.mxu1 %vm489_vm0, %v444_v47  ;;  %v1218_v2 = vpack.c.bf16 %v1026_v57, %v1022_v56  ;;  %v1014_v3 = vcvt.s32.f32 %v758_v58  ;;  %v1018_v4 = vcvt.s32.f32 %v762_v59  ;;  %v834_v5 = vunpack.c.3.s8 %v626_v51  ;;  %p3091_p8 = pneg %p3090_p2 }
  0x96   : > { %2797 = vmatmul.msk.bf16.vlgmr.msra.gmra.mxu2 %vm489_vm0, %v444_v47  ;;  %1286 = vmatpush.bf16.msrb.mxu0 %v1186_v61  ;;  %v1182_v7 = vpack.c.bf16 %v954_v63, %v950_v62  ;;  %v1086_v8 = vcvt.s32.f32 %v830_v0  ;;  %v894_v9 = vunpack.c.2.s8 %v642_v60  ;;  %v898_v10 = vunpack.c.3.s8 %v642_v60 }
  0x97   : > { %2798 = vmatmul.msk.bf16.vlgmr.msra.gmra.mxu3 %vm489_vm0, %v444_v47  ;;  %1299 = vmatpush.bf16.msrb.mxu1 %v1218_v2  ;;  %v1214_v11 = vpack.c.bf16 %v1018_v4, %v1014_v3  ;;  %v1090_v12 = vcvt.s32.f32 %v834_v5  ;;  %v686_v13 = vunpack.c.2.s8 %v590_v1  ;;  %v690_v14 = vunpack.c.3.s8 %v590_v1  ;;  %p3096_p12 = pnand %p3095_p10, %p3091_p8 }
  0x98   : > { %v1150_v15 = vcvt.s32.f32 %v894_v9  ;;  %v1154_v16 = vcvt.s32.f32 %v898_v10  ;;  %v750_v17 = vunpack.c.2.s8 %v606_v6  ;;  %v754_v18 = vunpack.c.3.s8 %v606_v6 }
  0x99   : > { %v1250_v19 = vpack.c.bf16 %v1090_v12, %v1086_v8  ;;  %v942_v20 = vcvt.s32.f32 %v686_v13  ;;  %v946_v21 = vcvt.s32.f32 %v690_v14  ;;  %v822_v22 = vunpack.c.0.s8 %v626_v51 }
  0x9a   : > { %1287 = vmatpush.bf16.msrb.mxu0 %v1182_v7  ;;  %v1282_v23 = vpack.c.bf16 %v1154_v16, %v1150_v15  ;;  %v1006_v24 = vcvt.s32.f32 %v750_v17  ;;  %v1010_v25 = vcvt.s32.f32 %v754_v18  ;;  %v826_v26 = vunpack.c.1.s8 %v626_v51 }
  0x9b   : > { %1300 = vmatpush.bf16.msrb.mxu1 %v1214_v11  ;;  %1312 = vmatpush.bf16.msrb.mxu2 %v1250_v19  ;;  %v1178_v27 = vpack.c.bf16 %v946_v21, %v942_v20  ;;  %v1078_v28 = vcvt.s32.f32 %v822_v22  ;;  %v886_v29 = vunpack.c.0.s8 %v642_v60  ;;  %v890_v30 = vunpack.c.1.s8 %v642_v60  ;;  %v618_v11 = vld [vmem:[%s3410_s13 + $0x120] sm:$0xff] }
  0x9c   : > { %1325 = vmatpush.bf16.msrb.mxu3 %v1282_v23  ;;  %v1210_v32 = vpack.c.bf16 %v1010_v25, %v1006_v24  ;;  %v1082_v33 = vcvt.s32.f32 %v826_v26  ;;  %v678_v34 = vunpack.c.0.s8 %v590_v1  ;;  %v682_v35 = vunpack.c.1.s8 %v590_v1  ;;  %v634_v20 = vld [vmem:[%s3410_s13 + $0x1a0] sm:$0xff] }
  0x9d   : > { %v1142_v36 = vcvt.s32.f32 %v886_v29  ;;  %v1146_v37 = vcvt.s32.f32 %v890_v30  ;;  %v742_v38 = vunpack.c.0.s8 %v606_v6  ;;  %v746_v39 = vunpack.c.1.s8 %v606_v6  ;;  %v582_v25 = vld [vmem:[%s3410_s13] sm:$0xff] }
  0x9e   : > { %1288 = vmatpush.bf16.msrb.mxu0 %v1178_v27  ;;  %v1246_v41 = vpack.c.bf16 %v1082_v33, %v1078_v28  ;;  %v934_v42 = vcvt.s32.f32 %v678_v34  ;;  %v938_v43 = vcvt.s32.f32 %v682_v35  ;;  %v814_v44 = vunpack.c.2.s8 %v622_v31  ;;  %v598_v30 = vld [vmem:[%s3410_s13 + $0x80] sm:$0xff] }
  0x9f   : > { %1301 = vmatpush.bf16.msrb.mxu1 %v1210_v32  ;;  %v1278_v46 = vpack.c.bf16 %v1146_v37, %v1142_v36  ;;  %v998_v47 = vcvt.s32.f32 %v742_v38  ;;  %v1002_v48 = vcvt.s32.f32 %v746_v39  ;;  %v818_v49 = vunpack.c.3.s8 %v622_v31 }
  0xa0   : > { %1313 = vmatpush.bf16.msrb.mxu2 %v1246_v41  ;;  %v1174_v51 = vpack.c.bf16 %v938_v43, %v934_v42  ;;  %v1070_v52 = vcvt.s32.f32 %v814_v44  ;;  %v878_v53 = vunpack.c.2.s8 %v638_v40  ;;  %v882_v54 = vunpack.c.3.s8 %v638_v40 }
  0xa1   : > { %1326 = vmatpush.bf16.msrb.mxu3 %v1278_v46  ;;  %v1206_v55 = vpack.c.bf16 %v1002_v48, %v998_v47  ;;  %v1074_v56 = vcvt.s32.f32 %v818_v49  ;;  %v670_v57 = vunpack.c.2.s8 %v586_v45  ;;  %v674_v58 = vunpack.c.3.s8 %v586_v45 }
  0xa2   : > { %1289 = vmatpush.bf16.msrb.mxu0 %v1174_v51  ;;  %v1134_v59 = vcvt.s32.f32 %v878_v53  ;;  %v1138_v60 = vcvt.s32.f32 %v882_v54  ;;  %v734_v61 = vunpack.c.2.s8 %v602_v50  ;;  %v738_v62 = vunpack.c.3.s8 %v602_v50 }
  0xa3   : > { %1302 = vmatpush.bf16.msrb.mxu1 %v1206_v55  ;;  %v1242_v63 = vpack.c.bf16 %v1074_v56, %v1070_v52  ;;  %v926_v0 = vcvt.s32.f32 %v670_v57  ;;  %v930_v1 = vcvt.s32.f32 %v674_v58  ;;  %v806_v2 = vunpack.c.0.s8 %v622_v31  ;;  %v595_v55 = vld [vmem:[%s3410_s13 + $0x68] sm:$0xff] }
  0xa4   : > { %v1274_v3 = vpack.c.bf16 %v1138_v60, %v1134_v59  ;;  %v990_v4 = vcvt.s32.f32 %v734_v61  ;;  %v994_v5 = vcvt.s32.f32 %v738_v62  ;;  %v810_v6 = vunpack.c.1.s8 %v622_v31 }
  0xa5   : > { %1314 = vmatpush.bf16.msrb.mxu2 %v1242_v63  ;;  %v1170_v7 = vpack.c.bf16 %v930_v1, %v926_v0  ;;  %v1062_v8 = vcvt.s32.f32 %v806_v2  ;;  %v870_v9 = vunpack.c.0.s8 %v638_v40  ;;  %v874_v10 = vunpack.c.1.s8 %v638_v40  ;;  %v611_v0 = vld [vmem:[%s3410_s13 + $0xe8] sm:$0xff] }
  0xa6   : > { %1327 = vmatpush.bf16.msrb.mxu3 %v1274_v3  ;;  %v1202_v12 = vpack.c.bf16 %v994_v5, %v990_v4  ;;  %v1066_v13 = vcvt.s32.f32 %v810_v6  ;;  %v662_v14 = vunpack.c.0.s8 %v586_v45  ;;  %v666_v15 = vunpack.c.1.s8 %v586_v45  ;;  %v614_v5 = vld [vmem:[%s3410_s13 + $0x100] sm:$0xff] }
  0xa7   : > { %1290 = vmatpush.bf16.msrb.mxu0 %v1170_v7  ;;  %v1126_v16 = vcvt.s32.f32 %v870_v9  ;;  %v1130_v17 = vcvt.s32.f32 %v874_v10  ;;  %v726_v18 = vunpack.c.0.s8 %v602_v50  ;;  %v730_v19 = vunpack.c.1.s8 %v602_v50  ;;  %v630_v10 = vld [vmem:[%s3410_s13 + $0x180] sm:$0xff] }
  0xa8   : > { %1303 = vmatpush.bf16.msrb.mxu1 %v1202_v12  ;;  %v1238_v21 = vpack.c.bf16 %v1066_v13, %v1062_v8  ;;  %v918_v22 = vcvt.s32.f32 %v662_v14  ;;  %v922_v23 = vcvt.s32.f32 %v666_v15  ;;  %v798_v24 = vunpack.c.2.s8 %v618_v11 }
  0xa9   : > { %v1270_v26 = vpack.c.bf16 %v1130_v17, %v1126_v16  ;;  %v982_v27 = vcvt.s32.f32 %v726_v18  ;;  %v986_v28 = vcvt.s32.f32 %v730_v19  ;;  %v802_v29 = vunpack.c.3.s8 %v618_v11 }
  0xaa   : > { %1315 = vmatpush.bf16.msrb.mxu2 %v1238_v21  ;;  %v1166_v31 = vpack.c.bf16 %v922_v23, %v918_v22  ;;  %v1054_v32 = vcvt.s32.f32 %v798_v24  ;;  %v862_v33 = vunpack.c.2.s8 %v634_v20  ;;  %v866_v34 = vunpack.c.3.s8 %v634_v20 }
  0xab   : > { %1328 = vmatpush.bf16.msrb.mxu3 %v1270_v26  ;;  %v1198_v35 = vpack.c.bf16 %v986_v28, %v982_v27  ;;  %v1058_v36 = vcvt.s32.f32 %v802_v29  ;;  %v654_v37 = vunpack.c.2.s8 %v582_v25  ;;  %v658_v38 = vunpack.c.3.s8 %v582_v25 }
  0xac   : > { %1291 = vmatpush.bf16.msrb.mxu0 %v1166_v31  ;;  %v1118_v39 = vcvt.s32.f32 %v862_v33  ;;  %v1122_v40 = vcvt.s32.f32 %v866_v34  ;;  %v718_v41 = vunpack.c.2.s8 %v598_v30  ;;  %v722_v42 = vunpack.c.3.s8 %v598_v30 }
  0xad   : > { %1304 = vmatpush.bf16.msrb.mxu1 %v1198_v35  ;;  %v1234_v43 = vpack.c.bf16 %v1058_v36, %v1054_v32  ;;  %v910_v44 = vcvt.s32.f32 %v654_v37  ;;  %v914_v45 = vcvt.s32.f32 %v658_v38  ;;  %v790_v46 = vunpack.c.0.s8 %v618_v11  ;;  %v627_v35 = vld [vmem:[%s3410_s13 + $0x168] sm:$0xff] }
  0xae   : > { %v1266_v47 = vpack.c.bf16 %v1122_v40, %v1118_v39  ;;  %v974_v48 = vcvt.s32.f32 %v718_v41  ;;  %v978_v49 = vcvt.s32.f32 %v722_v42  ;;  %v794_v50 = vunpack.c.1.s8 %v618_v11 }
  0xaf   : > { %1316 = vmatpush.bf16.msrb.mxu2 %v1234_v43  ;;  %v1162_v51 = vpack.c.bf16 %v914_v45, %v910_v44  ;;  %v1046_v52 = vcvt.s32.f32 %v790_v46  ;;  %v854_v53 = vunpack.c.0.s8 %v634_v20  ;;  %v858_v54 = vunpack.c.1.s8 %v634_v20  ;;  %v643_v44 = vld [vmem:[%s3410_s13 + $0x1e8] sm:$0xff] }
  0xb0   : > { %1329 = vmatpush.bf16.msrb.mxu3 %v1266_v47  ;;  %v1194_v56 = vpack.c.bf16 %v978_v49, %v974_v48  ;;  %v1050_v57 = vcvt.s32.f32 %v794_v50  ;;  %v646_v58 = vunpack.c.0.s8 %v582_v25  ;;  %v650_v59 = vunpack.c.1.s8 %v582_v25  ;;  %v591_v49 = vld [vmem:[%s3410_s13 + $0x48] sm:$0xff] }
  0xb1   : > { %1292 = vmatpush.bf16.msrb.mxu0 %v1162_v51  ;;  %v1110_v60 = vcvt.s32.f32 %v854_v53  ;;  %v1114_v61 = vcvt.s32.f32 %v858_v54  ;;  %v710_v62 = vunpack.c.0.s8 %v598_v30  ;;  %v714_v63 = vunpack.c.1.s8 %v598_v30  ;;  %v607_v54 = vld [vmem:[%s3410_s13 + $0xc8] sm:$0xff] }
  0xb2   : > { %1305 = vmatpush.bf16.msrb.mxu1 %v1194_v56  ;;  %v1230_v1 = vpack.c.bf16 %v1050_v57, %v1046_v52  ;;  %v902_v2 = vcvt.s32.f32 %v646_v58  ;;  %v906_v3 = vcvt.s32.f32 %v650_v59  ;;  %v703_v4 = vunpack.c.2.s8 %v595_v55 }
  0xb3   : > { %v1262_v6 = vpack.c.bf16 %v1114_v61, %v1110_v60  ;;  %v966_v7 = vcvt.s32.f32 %v710_v62  ;;  %v970_v8 = vcvt.s32.f32 %v714_v63  ;;  %v707_v9 = vunpack.c.3.s8 %v595_v55 }
  0xb4   : > { %1317 = vmatpush.bf16.msrb.mxu2 %v1230_v1  ;;  %v1158_v11 = vpack.c.bf16 %v906_v3, %v902_v2  ;;  %v959_v12 = vcvt.s32.f32 %v703_v4  ;;  %v767_v13 = vunpack.c.2.s8 %v611_v0  ;;  %v771_v14 = vunpack.c.3.s8 %v611_v0 }
  0xb5   : > { %1330 = vmatpush.bf16.msrb.mxu3 %v1262_v6  ;;  %v1190_v15 = vpack.c.bf16 %v970_v8, %v966_v7  ;;  %v963_v16 = vcvt.s32.f32 %v707_v9  ;;  %v782_v17 = vunpack.c.2.s8 %v614_v5  ;;  %v786_v18 = vunpack.c.3.s8 %v614_v5 }
  0xb6   : > { %1293 = vmatpush.bf16.msrb.mxu0 %v1158_v11  ;;  %v1023_v19 = vcvt.s32.f32 %v767_v13  ;;  %v1027_v20 = vcvt.s32.f32 %v771_v14  ;;  %v846_v21 = vunpack.c.2.s8 %v630_v10  ;;  %v850_v22 = vunpack.c.3.s8 %v630_v10 }
  0xb7   : > { %1306 = vmatpush.bf16.msrb.mxu1 %v1190_v15  ;;  %v1187_v23 = vpack.c.bf16 %v963_v16, %v959_v12  ;;  %v1038_v24 = vcvt.s32.f32 %v782_v17  ;;  %v1042_v25 = vcvt.s32.f32 %v786_v18  ;;  %v695_v26 = vunpack.c.0.s8 %v595_v55  ;;  %v623_v15 = vld [vmem:[%s3410_s13 + $0x148] sm:$0xff] }
  0xb8   : > { %v1219_v27 = vpack.c.bf16 %v1027_v20, %v1023_v19  ;;  %v1102_v28 = vcvt.s32.f32 %v846_v21  ;;  %v1106_v29 = vcvt.s32.f32 %v850_v22  ;;  %v699_v30 = vunpack.c.1.s8 %v595_v55 }
  0xb9   : > { %v1226_v31 = vpack.c.bf16 %v1042_v25, %v1038_v24  ;;  %v951_v32 = vcvt.s32.f32 %v695_v26  ;;  %v759_v33 = vunpack.c.0.s8 %v611_v0  ;;  %v763_v34 = vunpack.c.1.s8 %v611_v0  ;;  %v639_v24 = vld [vmem:[%s3410_s13 + $0x1c8] sm:$0xff] }
  0xba   : > { %1338 = vmatpush.bf16.msra.mxu0 %v1187_v23  ;;  %v1258_v36 = vpack.c.bf16 %v1106_v29, %v1102_v28  ;;  %v955_v37 = vcvt.s32.f32 %v699_v30  ;;  %v774_v38 = vunpack.c.0.s8 %v614_v5  ;;  %v778_v39 = vunpack.c.1.s8 %v614_v5  ;;  %v587_v29 = vld [vmem:[%s3410_s13 + $0x28] sm:$0xff] }
  0xbb   : > { %1351 = vmatpush.bf16.msra.mxu1 %v1219_v27  ;;  %1318 = vmatpush.bf16.msrb.mxu2 %v1226_v31  ;;  %v1015_v40 = vcvt.s32.f32 %v759_v33  ;;  %v1019_v41 = vcvt.s32.f32 %v763_v34  ;;  %v838_v42 = vunpack.c.0.s8 %v630_v10  ;;  %v842_v43 = vunpack.c.1.s8 %v630_v10  ;;  %v603_v34 = vld [vmem:[%s3410_s13 + $0xa8] sm:$0xff] }
  0xbc   : > { %1331 = vmatpush.bf16.msrb.mxu3 %v1258_v36  ;;  %v1183_v45 = vpack.c.bf16 %v955_v37, %v951_v32  ;;  %v1030_v46 = vcvt.s32.f32 %v774_v38  ;;  %v1034_v47 = vcvt.s32.f32 %v778_v39  ;;  %v831_v48 = vunpack.c.2.s8 %v627_v35 }
  0xbd   : > { %v1215_v50 = vpack.c.bf16 %v1019_v41, %v1015_v40  ;;  %v1094_v51 = vcvt.s32.f32 %v838_v42  ;;  %v1098_v52 = vcvt.s32.f32 %v842_v43  ;;  %v835_v53 = vunpack.c.3.s8 %v627_v35 }
  0xbe   : > { %1339 = vmatpush.bf16.msra.mxu0 %v1183_v45  ;;  %v1222_v55 = vpack.c.bf16 %v1034_v47, %v1030_v46  ;;  %v1087_v56 = vcvt.s32.f32 %v831_v48  ;;  %v895_v57 = vunpack.c.2.s8 %v643_v44  ;;  %v899_v58 = vunpack.c.3.s8 %v643_v44 }
  0xbf   : > { %1352 = vmatpush.bf16.msra.mxu1 %v1215_v50  ;;  %v1254_v59 = vpack.c.bf16 %v1098_v52, %v1094_v51  ;;  %v1091_v60 = vcvt.s32.f32 %v835_v53  ;;  %v687_v61 = vunpack.c.2.s8 %v591_v49  ;;  %v691_v62 = vunpack.c.3.s8 %v591_v49 }
  0xc0   : > { %1319 = vmatpush.bf16.msrb.mxu2 %v1222_v55  ;;  %v1151_v63 = vcvt.s32.f32 %v895_v57  ;;  %v1155_v0 = vcvt.s32.f32 %v899_v58  ;;  %v751_v1 = vunpack.c.2.s8 %v607_v54  ;;  %v755_v2 = vunpack.c.3.s8 %v607_v54 }
  0xc1   : > { %1332 = vmatpush.bf16.msrb.mxu3 %v1254_v59  ;;  %v1251_v3 = vpack.c.bf16 %v1091_v60, %v1087_v56  ;;  %v943_v4 = vcvt.s32.f32 %v687_v61  ;;  %v947_v5 = vcvt.s32.f32 %v691_v62  ;;  %v823_v6 = vunpack.c.0.s8 %v627_v35 }
  0xc2   : > { %v1283_v7 = vpack.c.bf16 %v1155_v0, %v1151_v63  ;;  %v1007_v8 = vcvt.s32.f32 %v751_v1  ;;  %v1011_v9 = vcvt.s32.f32 %v755_v2  ;;  %v827_v10 = vunpack.c.1.s8 %v627_v35 }
  0xc3   : > { %v1179_v11 = vpack.c.bf16 %v947_v5, %v943_v4  ;;  %v1079_v12 = vcvt.s32.f32 %v823_v6  ;;  %v887_v13 = vunpack.c.0.s8 %v643_v44  ;;  %v891_v14 = vunpack.c.1.s8 %v643_v44  ;;  %v619_v5 = vld [vmem:[%s3410_s13 + $0x128] sm:$0xff] }
  0xc4   : > { %1364 = vmatpush.bf16.msra.mxu2 %v1251_v3  ;;  %v1211_v16 = vpack.c.bf16 %v1011_v9, %v1007_v8  ;;  %v1083_v17 = vcvt.s32.f32 %v827_v10  ;;  %v679_v18 = vunpack.c.0.s8 %v591_v49  ;;  %v683_v19 = vunpack.c.1.s8 %v591_v49  ;;  %v635_v6 = vld [vmem:[%s3410_s13 + $0x1a8] sm:$0xff] }
  0xc5   : > { %1377 = vmatpush.bf16.msra.mxu3 %v1283_v7  ;;  %1340 = vmatpush.bf16.msra.mxu0 %v1179_v11  ;;  %v1143_v20 = vcvt.s32.f32 %v887_v13  ;;  %v1147_v21 = vcvt.s32.f32 %v891_v14  ;;  %v743_v22 = vunpack.c.0.s8 %v607_v54  ;;  %v747_v23 = vunpack.c.1.s8 %v607_v54  ;;  %v3460_v11 = vld [vmem:[%s3421_s3] ss:$8 sm:$0xf] }
  0xc6   : > { %1353 = vmatpush.bf16.msra.mxu1 %v1211_v16  ;;  %v1247_v25 = vpack.c.bf16 %v1083_v17, %v1079_v12  ;;  %v935_v26 = vcvt.s32.f32 %v679_v18  ;;  %v939_v27 = vcvt.s32.f32 %v683_v19  ;;  %v815_v28 = vunpack.c.2.s8 %v623_v15  ;;  %v583_v16 = vld [vmem:[%s3410_s13 + $0x8] sm:$0xff] }
  0xc7   : > { %v1279_v30 = vpack.c.bf16 %v1147_v21, %v1143_v20  ;;  %v999_v31 = vcvt.s32.f32 %v743_v22  ;;  %v1003_v32 = vcvt.s32.f32 %v747_v23  ;;  %v819_v33 = vunpack.c.3.s8 %v623_v15  ;;  %v3465_v18 = vld [vmem:[%s3421_s3 + $0x4] ss:$8 sm:$0xf] }
  0xc8   : > { %1365 = vmatpush.bf16.msra.mxu2 %v1247_v25  ;;  %v1175_v35 = vpack.c.bf16 %v939_v27, %v935_v26  ;;  %v1071_v36 = vcvt.s32.f32 %v815_v28  ;;  %v879_v37 = vunpack.c.2.s8 %v639_v24  ;;  %v883_v38 = vunpack.c.3.s8 %v639_v24  ;;  %v599_v22 = vld [vmem:[%s3410_s13 + $0x88] sm:$0xff] }
  0xc9   : > { %1378 = vmatpush.bf16.msra.mxu3 %v1279_v30  ;;  %v1207_v39 = vpack.c.bf16 %v1003_v32, %v999_v31  ;;  %v1075_v40 = vcvt.s32.f32 %v819_v33  ;;  %v671_v41 = vunpack.c.2.s8 %v587_v29  ;;  %v675_v42 = vunpack.c.3.s8 %v587_v29 }
  0xca   : > { %1341 = vmatpush.bf16.msra.mxu0 %v1175_v35  ;;  %v1135_v43 = vcvt.s32.f32 %v879_v37  ;;  %v1139_v44 = vcvt.s32.f32 %v883_v38  ;;  %v735_v45 = vunpack.c.2.s8 %v603_v34  ;;  %v739_v46 = vunpack.c.3.s8 %v603_v34 }
  0xcb   : > { %1354 = vmatpush.bf16.msra.mxu1 %v1207_v39  ;;  %v1243_v47 = vpack.c.bf16 %v1075_v40, %v1071_v36  ;;  %v927_v48 = vcvt.s32.f32 %v671_v41  ;;  %v931_v49 = vcvt.s32.f32 %v675_v42  ;;  %v807_v50 = vunpack.c.0.s8 %v623_v15 }
  0xcc   : > { %v1275_v51 = vpack.c.bf16 %v1139_v44, %v1135_v43  ;;  %v991_v52 = vcvt.s32.f32 %v735_v45  ;;  %v995_v53 = vcvt.s32.f32 %v739_v46  ;;  %v811_v54 = vunpack.c.1.s8 %v623_v15 }
  0xcd   : > { %1366 = vmatpush.bf16.msra.mxu2 %v1243_v47  ;;  %v1171_v55 = vpack.c.bf16 %v931_v49, %v927_v48  ;;  %v1063_v56 = vcvt.s32.f32 %v807_v50  ;;  %v871_v57 = vunpack.c.0.s8 %v639_v24  ;;  %v875_v58 = vunpack.c.1.s8 %v639_v24 }
  0xce   : > { %1379 = vmatpush.bf16.msra.mxu3 %v1275_v51  ;;  %v1203_v59 = vpack.c.bf16 %v995_v53, %v991_v52  ;;  %v1067_v60 = vcvt.s32.f32 %v811_v54  ;;  %v663_v1 = vunpack.c.0.s8 %v587_v29  ;;  %v667_v2 = vunpack.c.1.s8 %v587_v29  ;;  %v596_v51 = vld [vmem:[%s3410_s13 + $0x70] sm:$0xff] }
  0xcf   : > { %1342 = vmatpush.bf16.msra.mxu0 %v1171_v55  ;;  %v1127_v61 = vcvt.s32.f32 %v871_v57  ;;  %v1131_v62 = vcvt.s32.f32 %v875_v58  ;;  %v727_v3 = vunpack.c.0.s8 %v603_v34  ;;  %v731_v4 = vunpack.c.1.s8 %v603_v34 }
  0xd0   : > { %1355 = vmatpush.bf16.msra.mxu1 %v1203_v59  ;;  %v1239_v63 = vpack.c.bf16 %v1067_v60, %v1063_v56  ;;  %v919_v7 = vcvt.s32.f32 %v663_v1  ;;  %v923_v8 = vcvt.s32.f32 %v667_v2  ;;  %v799_v12 = vunpack.c.2.s8 %v619_v5  ;;  %v612_v56 = vld [vmem:[%s3410_s13 + $0xf0] sm:$0xff] }
  0xd1   : > { %v1271_v0 = vpack.c.bf16 %v1131_v62, %v1127_v61  ;;  %v983_v9 = vcvt.s32.f32 %v727_v3  ;;  %v987_v10 = vcvt.s32.f32 %v731_v4  ;;  %v803_v13 = vunpack.c.3.s8 %v619_v5  ;;  %v615_v61 = vld [vmem:[%s3410_s13 + $0x108] sm:$0xff] }
  0xd2   : > { %1367 = vmatpush.bf16.msra.mxu2 %v1239_v63  ;;  %v863_v14 = vunpack.c.2.s8 %v635_v6  ;;  %v867_v15 = vunpack.c.3.s8 %v635_v6  ;;  %v547_v17 = vperm.slane %v3460_v11, 0  ;;  %v1167_v19 = vpack.c.bf16 %v923_v8, %v919_v7 }
  0xd3   : > { %1380 = vmatpush.bf16.msra.mxu3 %v1271_v0  ;;  %v1199_v20 = vpack.c.bf16 %v987_v10, %v983_v9  ;;  %v655_v21 = vunpack.c.2.s8 %v583_v16  ;;  %v562_v23 = vperm.slane %v3465_v18, 0  ;;  %v548_v24 = vperm.slane %v3460_v11, 1 }
  0xd4   : > { %v1055_v25 = vcvt.s32.f32 %v799_v12  ;;  %v1059_v26 = vcvt.s32.f32 %v803_v13  ;;  %1343 = vmatpush.bf16.msra.mxu0 %v1167_v19  ;;  %v1119_v27 = vcvt.s32.f32 %v863_v14  ;;  %v1123_v28 = vcvt.s32.f32 %v867_v15 }
  0xd5   : > { %1356 = vmatpush.bf16.msra.mxu1 %v1199_v20  ;;  %v659_v29 = vunpack.c.3.s8 %v583_v16  ;;  %v911_v30 = vcvt.s32.f32 %v655_v21  ;;  %v563_v31 = vperm.slane %v3465_v18, 1  ;;  %v719_v33 = vunpack.c.2.s8 %v599_v22 }
  0xd6   : > { %v1235_v32 = vpack.c.bf16 %v1059_v26, %v1055_v25  ;;  %v723_v34 = vunpack.c.3.s8 %v599_v22  ;;  %v1267_v35 = vpack.c.bf16 %v1123_v28, %v1119_v27  ;;  %v791_v37 = vunpack.c.0.s8 %v619_v5 }
  0xd7   : > { %v915_v36 = vcvt.s32.f32 %v659_v29  ;;  %v795_v38 = vunpack.c.1.s8 %v619_v5  ;;  %v975_v39 = vcvt.s32.f32 %v719_v33  ;;  %v855_v41 = vunpack.c.0.s8 %v635_v6 }
  0xd8   : > { %1368 = vmatpush.bf16.msra.mxu2 %v1235_v32  ;;  %v979_v40 = vcvt.s32.f32 %v723_v34  ;;  %v859_v42 = vunpack.c.1.s8 %v635_v6  ;;  %1381 = vmatpush.bf16.msra.mxu3 %v1267_v35  ;;  %v1047_v44 = vcvt.s32.f32 %v791_v37  ;;  %v647_v46 = vunpack.c.0.s8 %v583_v16  ;;  %v631_v6 = vld [vmem:[%s3410_s13 + $0x188] sm:$0xff]  ;;  %v628_v37 = vld [vmem:[%s3410_s13 + $0x170] sm:$0xff] }
  0xd9   : > { %v1163_v43 = vpack.c.bf16 %v915_v36, %v911_v30  ;;  %v1051_v45 = vcvt.s32.f32 %v795_v38  ;;  %v549_v48 = vperm.slane %v3460_v11, 2  ;;  %v550_v49 = vperm.slane %v3460_v11, 3 }
  0xda   : > { %v1195_v47 = vpack.c.bf16 %v979_v40, %v975_v39  ;;  %v1111_v50 = vcvt.s32.f32 %v855_v41  ;;  %v564_v52 = vperm.slane %v3465_v18, 2  ;;  %v1115_v54 = vcvt.s32.f32 %v859_v42  ;;  %v644_v42 = vld [vmem:[%s3410_s13 + $0x1f0] sm:$0xff] }
  0xdb   : > { %1344 = vmatpush.bf16.msra.mxu0 %v1163_v43  ;;  %v1231_v53 = vpack.c.bf16 %v1051_v45, %v1047_v44  ;;  %v651_v55 = vunpack.c.1.s8 %v583_v16  ;;  %v565_v57 = vperm.slane %v3465_v18, 3  ;;  %v903_v58 = vcvt.s32.f32 %v647_v46 }
  0xdc   : > { %1357 = vmatpush.bf16.msra.mxu1 %v1195_v47  ;;  %v711_v59 = vunpack.c.0.s8 %v599_v22  ;;  %v715_v60 = vunpack.c.1.s8 %v599_v22  ;;  %v1263_v62 = vpack.c.bf16 %v1115_v54, %v1111_v50  ;;  %v704_v0 = vunpack.c.2.s8 %v596_v51  ;;  %v592_v47 = vld [vmem:[%s3410_s13 + $0x50] sm:$0xff] }
  0xdd   : > { %1369 = vmatpush.bf16.msra.mxu2 %v1231_v53  ;;  %v907_v63 = vcvt.s32.f32 %v651_v55  ;;  %v708_v1 = vunpack.c.3.s8 %v596_v51  ;;  %v768_v4 = vunpack.c.2.s8 %v612_v56  ;;  %v772_v5 = vunpack.c.3.s8 %v612_v56 }
  0xde   : > { %v967_v2 = vcvt.s32.f32 %v711_v59  ;;  %v971_v3 = vcvt.s32.f32 %v715_v60  ;;  %1382 = vmatpush.bf16.msra.mxu3 %v1263_v62  ;;  %v3479_v8 = vcvt.s32.f32 %v704_v0  ;;  %v783_v10 = vunpack.c.2.s8 %v615_v61  ;;  %v608_v60 = vld [vmem:[%s3410_s13 + $0xd0] sm:$0xff] }
  0xdf   : > { %v1159_v7 = vpack.c.bf16 %v907_v63, %v903_v58  ;;  %v3481_v9 = vcvt.s32.f32 %v708_v1  ;;  %v3483_v13 = vcvt.s32.f32 %v768_v4  ;;  %v3485_v14 = vcvt.s32.f32 %v772_v5 }
  0xe0   : > { %v1191_v12 = vpack.c.bf16 %v971_v3, %v967_v2  ;;  %v787_v15 = vunpack.c.3.s8 %v615_v61  ;;  %v1039_v19 = vcvt.s32.f32 %v783_v10  ;;  %v847_v20 = vunpack.c.2.s8 %v631_v6 }
  0xe1   : > { %1345 = vmatpush.bf16.msra.mxu0 %v1159_v7  ;;  %v1188_v16 = vpack.c.bf16 %v3481_v9, %v3479_v8  ;;  %v851_v21 = vunpack.c.3.s8 %v631_v6  ;;  %v1220_v22 = vpack.c.bf16 %v3485_v14, %v3483_v13  ;;  %v696_v26 = vunpack.c.0.s8 %v596_v51  ;;  %v636_v8 = vld [vmem:[%s3410_s13 + $0x1b0] sm:$0xff] }
  0xe2   : > { %1358 = vmatpush.bf16.msra.mxu1 %v1191_v12  ;;  %v1043_v25 = vcvt.s32.f32 %v787_v15  ;;  %v700_v27 = vunpack.c.1.s8 %v596_v51  ;;  %v1103_v28 = vcvt.s32.f32 %v847_v20  ;;  %v760_v30 = vunpack.c.0.s8 %v612_v56 }
  0xe3   : > { %v1107_v29 = vcvt.s32.f32 %v851_v21  ;;  %v764_v32 = vunpack.c.1.s8 %v612_v56  ;;  %v3491_v34 = vcvt.s32.f32 %v696_v26  ;;  %v775_v36 = vunpack.c.0.s8 %v615_v61 }
  0xe4   : > { %v1227_v33 = vpack.c.bf16 %v1043_v25, %v1039_v19  ;;  %v3493_v35 = vcvt.s32.f32 %v700_v27  ;;  %v3496_v39 = vcvt.s32.f32 %v760_v30  ;;  %v779_v41 = vunpack.c.1.s8 %v615_v61 }
  0xe5   : > { %v1259_v38 = vpack.c.bf16 %v1107_v29, %v1103_v28  ;;  %v3498_v40 = vcvt.s32.f32 %v764_v32  ;;  %v1031_v44 = vcvt.s32.f32 %v775_v36  ;;  %v839_v45 = vunpack.c.0.s8 %v631_v6 }
  0xe6   : > { %1370 = vmatpush.bf16.msra.mxu2 %v1227_v33  ;;  %v1184_v43 = vpack.c.bf16 %v3493_v35, %v3491_v34  ;;  %v843_v46 = vunpack.c.1.s8 %v631_v6  ;;  %v1035_v51 = vcvt.s32.f32 %v779_v41  ;;  %v832_v53 = vunpack.c.2.s8 %v628_v37  ;;  %v624_v33 = vld [vmem:[%s3410_s13 + $0x150] sm:$0xff] }
  0xe7   : > { %1383 = vmatpush.bf16.msra.mxu3 %v1259_v38  ;;  %v1216_v50 = vpack.c.bf16 %v3498_v40, %v3496_v39  ;;  %v836_v54 = vunpack.c.3.s8 %v628_v37  ;;  %v1095_v55 = vcvt.s32.f32 %v839_v45  ;;  %v896_v58 = vunpack.c.2.s8 %v644_v42 }
  0xe8   : > { %v1099_v56 = vcvt.s32.f32 %v843_v46  ;;  %v900_v59 = vunpack.c.3.s8 %v644_v42  ;;  %v1223_v61 = vpack.c.bf16 %v1035_v51, %v1031_v44  ;;  %v3507_v62 = vcvt.s32.f32 %v832_v53  ;;  %v3541_v44 = vld [vmem:[%s3410_s13 + $0x1d0] sm:$0xff] }
  0xe9   : > { %v3509_v63 = vcvt.s32.f32 %v836_v54  ;;  %v688_v0 = vunpack.c.2.s8 %v592_v47  ;;  %v3511_v2 = vcvt.s32.f32 %v896_v58  ;;  %v692_v4 = vunpack.c.3.s8 %v592_v47 }
  0xea   : > { %v1255_v1 = vpack.c.bf16 %v1099_v56, %v1095_v55  ;;  %v3513_v3 = vcvt.s32.f32 %v900_v59  ;;  %1371 = vmatpush.bf16.msra.mxu2 %v1223_v61  ;;  %v752_v7 = vunpack.c.2.s8 %v608_v60  ;;  %v756_v10 = vunpack.c.3.s8 %v608_v60 }
  0xeb   : > { %v1252_v5 = vpack.c.bf16 %v3509_v63, %v3507_v62  ;;  %v3517_v6 = vcvt.s32.f32 %v688_v0  ;;  %v3521_v15 = vcvt.s32.f32 %v692_v4  ;;  %v824_v19 = vunpack.c.0.s8 %v628_v37 }
  0xec   : > { %1384 = vmatpush.bf16.msra.mxu3 %v1255_v1  ;;  %v1284_v12 = vpack.c.bf16 %v3513_v3, %v3511_v2  ;;  %v828_v20 = vunpack.c.1.s8 %v628_v37  ;;  %v3523_v21 = vcvt.s32.f32 %v752_v7  ;;  %v3525_v25 = vcvt.s32.f32 %v756_v10  ;;  %v588_v1 = vld [vmem:[%s3410_s13 + $0x30] sm:$0xff] }
  0xed   : > { %v888_v26 = vunpack.c.0.s8 %v644_v42  ;;  %v892_v27 = vunpack.c.1.s8 %v644_v42  ;;  %v1180_v28 = vpack.c.bf16 %v3521_v15, %v3517_v6  ;;  %v3529_v29 = vcvt.s32.f32 %v824_v19  ;;  %v597_v15 = vld [vmem:[%s3410_s13 + $0x78] sm:$0xff] }
  0xee   : > { %v3531_v30 = vcvt.s32.f32 %v828_v20  ;;  %v680_v32 = vunpack.c.0.s8 %v592_v47  ;;  %v684_v41 = vunpack.c.1.s8 %v592_v47  ;;  %v744_v46 = vunpack.c.0.s8 %v608_v60  ;;  %v604_v20 = vld [vmem:[%s3410_s13 + $0xb0] sm:$0xff] }
  0xef   : > { %v3536_v38 = vcvt.s32.f32 %v888_v26  ;;  %v3538_v37 = vcvt.s32.f32 %v892_v27  ;;  %v748_v51 = vunpack.c.1.s8 %v608_v60  ;;  %v816_v55 = vunpack.c.2.s8 %v624_v33 }
  0xf0   : > { %v3545_v45 = vcvt.s32.f32 %v680_v32  ;;  %v3549_v54 = vcvt.s32.f32 %v684_v41  ;;  %v820_v56 = vunpack.c.3.s8 %v624_v33  ;;  %v3551_v59 = vcvt.s32.f32 %v744_v46 }
  0xf1   : > { %v3553_v47 = vcvt.s32.f32 %v748_v51  ;;  %v880_v61 = vunpack.c.2.s8 %v3541_v44  ;;  %v884_v0 = vunpack.c.3.s8 %v3541_v44  ;;  %v3562_v10 = vcvt.s32.f32 %v816_v55 }
  0xf2   : > { %v3564_v19 = vcvt.s32.f32 %v820_v56  ;;  %v672_v51 = vunpack.c.2.s8 %v588_v1  ;;  %v676_v55 = vunpack.c.3.s8 %v588_v1  ;;  %v808_v7 = vunpack.c.0.s8 %v624_v33 }
  0xf3   : > { %v3571_v32 = vcvt.s32.f32 %v880_v61  ;;  %v3573_v41 = vcvt.s32.f32 %v884_v0  ;;  %v812_v53 = vunpack.c.1.s8 %v624_v33  ;;  %v876_v33 = vunpack.c.1.s8 %v3541_v44 }
  0xf4   : > { %v3583_v27 = vcvt.s32.f32 %v672_v51  ;;  %v3585_v0 = vcvt.s32.f32 %v676_v55  ;;  %v668_v36 = vunpack.c.1.s8 %v588_v1  ;;  %v856_v63 = vunpack.c.0.s8 %v636_v8 }
  0xf5   : > { %vm2582_vm1 = vcmask 254976  }
 0x111   : > { %v502_v58 = vpop.f32.mrf.mxu0 }
 0x112   : > { %v555_v60 = vmul.f32 %v547_v17, %v502_v58  ;;  %v515_v4 = vpop.f32.mrf.mxu1  ;;  %v736_v58 = vunpack.c.2.s8 %v604_v20 }
 0x113   : > { %v556_v26 = vmul.f32 %v548_v24, %v515_v4  ;;  %v740_v4 = vunpack.c.3.s8 %v604_v20 }
 0x114   : > { %v570_v17 = vadd.f32 %v562_v23, %v555_v60  ;;  %v3587_v60 = vcvt.s32.f32 %v736_v58  ;;  %v3602_v58 = vcvt.s32.f32 %v812_v53  ;;  %v728_v53 = vunpack.c.0.s8 %v604_v20 }
 0x115   : > { %v571_v56 = vadd.f32 %v563_v31, %v556_v26  ;;  %v3589_v46 = vcvt.s32.f32 %v740_v4  ;;  %v3595_v26 = vcvt.s32.f32 %v808_v7 }
 0x116   : > { %v574_v61 = vmax.f32 %v570_v17, 0.0  ;;  %v872_v17 = vunpack.c.0.s8 %v3541_v44  ;;  %v3619_v44 = vcvt.s32.f32 %v876_v33  ;;  %v584_v33 = vld [vmem:[%s3410_s13 + $0x10] sm:$0xff] }
 0x117   : > { %v575_v23 = vmax.f32 %v571_v56, 0.0  ;;  %v648_v6 = vunpack.c.0.s8 %v584_v33 }
 0x118   : > { %v3591_v42 = vpack.c.bf16 %v574_v61, %v574_v61  ;;  %v3608_v31 = vcvt.s32.f32 %v872_v17  ;;  %v732_v17 = vunpack.c.1.s8 %v604_v20  ;;  %v868_v20 = vunpack.c.3.s8 %v636_v8 }
 0x119   : > { %v3598_v51 = vpack.c.bf16 %v575_v23, %v575_v23  ;;  %v528_v55 = vpop.f32.mrf.mxu2  ;;  %v504_v24 = vpop.f32.mrf.mxu0  ;;  %v664_v23 = vunpack.c.0.s8 %v588_v1 }
 0x11a   : > { %v557_v4 = vmul.f32 %v549_v48, %v528_v55  ;;  %v541_v61 = vpop.f32.mrf.mxu3  ;;  %1294 = vmatmul.bf16.vlgmr.msrb.gmra.mxu0 %v3591_v42  ;;  %v517_v7 = vpop.f32.mrf.mxu1  ;;  %v620_v24 = vld [vmem:[%s3410_s13 + $0x130] sm:$0xff]  ;;  %v1240_v48 = vpack.c.bf16 %v3602_v58, %v3595_v26  ;;  %v3635_v55 = vcvt.s32.f32 %v728_v53  ;;  %v3640_v14 = vcvt.s32.f32 %v732_v17 }
 0x11b   : > { %v558_v56 = vmul.f32 %v550_v49, %v541_v61  ;;  %1307 = vmatmul.bf16.vlgmr.msrb.gmra.mxu1 %v3598_v51  ;;  %1390 = vmatpush.bf16.msrb.mxu0 %v1188_v16  ;;  %v3626_v11 = vcvt.s32.f32 %v664_v23  ;;  %v3628_v49 = vcvt.s32.f32 %v668_v36  ;;  %v1272_v16 = vpack.c.bf16 %v3619_v44, %v3608_v31 }
 0x11c   : > { %v572_v1 = vadd.f32 %v564_v52, %v557_v4  ;;  %1403 = vmatpush.bf16.msrb.mxu1 %v1220_v22  ;;  %v800_v52 = vunpack.c.2.s8 %v620_v24  ;;  %v804_v22 = vunpack.c.3.s8 %v620_v24  ;;  %v1200_v7 = vpack.c.bf16 %v3640_v14, %v3635_v55 }
 0x11d   : > { %v573_v9 = vadd.f32 %v565_v57, %v558_v56  ;;  %v1168_v13 = vpack.c.bf16 %v3628_v49, %v3626_v11  ;;  %v864_v57 = vunpack.c.2.s8 %v636_v8  ;;  %v600_v56 = vld [vmem:[%s3410_s13 + $0x90] sm:$0xff]  ;;  %v656_v53 = vunpack.c.2.s8 %v584_v33 }
 0x11e   : > { %v576_v4 = vmax.f32 %v572_v1, 0.0  ;;  %v3645_v18 = vcvt.s32.f32 %v800_v52  ;;  %v3655_v23 = vcvt.s32.f32 %v804_v22  ;;  %v660_v17 = vunpack.c.3.s8 %v584_v33 }
 0x11f   : > { %v577_v36 = vmax.f32 %v573_v9, 0.0  ;;  %1391 = vmatpush.bf16.msrb.mxu0 %v1184_v43  ;;  %v3659_v35 = vcvt.s32.f32 %v864_v57  ;;  %v3661_v43 = vcvt.s32.f32 %v868_v20  ;;  %v3666_v40 = vcvt.s32.f32 %v656_v53 }
 0x120   : > { %v3648_v61 = vpack.c.bf16 %v576_v4, %v576_v4  ;;  %1404 = vmatpush.bf16.msrb.mxu1 %v1216_v50  ;;  %v1236_v39 = vpack.c.bf16 %v3655_v23, %v3645_v18  ;;  %v720_v50 = vunpack.c.2.s8 %v600_v56  ;;  %v724_v52 = vunpack.c.3.s8 %v600_v56 }
 0x121   : > { %v3657_v1 = vpack.c.bf16 %v577_v36, %v577_v36  ;;  %v530_v34 = vpop.f32.mrf.mxu2  ;;  %v1268_v4 = vpack.c.bf16 %v3661_v43, %v3659_v35  ;;  %v3674_v22 = vcvt.s32.f32 %v660_v17  ;;  %v792_v36 = vunpack.c.0.s8 %v620_v24 }
 0x122   : > { %v543_v9 = vpop.f32.mrf.mxu3  ;;  %1320 = vmatmul.bf16.vlgmr.msrb.gmra.mxu2 %v3648_v61  ;;  %v796_v57 = vunpack.c.1.s8 %v620_v24  ;;  %v3682_v20 = vcvt.s32.f32 %v720_v50  ;;  %v3684_v62 = vcvt.s32.f32 %v724_v52  ;;  %v4410_v53 = vpack.c.bf16 %v3525_v25, %v3523_v21  ;;  %v613_v21 = vld [vmem:[%s3410_s13 + $0xf8] sm:$0xff] }
 0x123   : > { %1333 = vmatmul.bf16.vlgmr.msrb.gmra.mxu3 %v3657_v1  ;;  %1416 = vmatpush.bf16.msrb.mxu2 %v1252_v5  ;;  %v860_v5 = vunpack.c.1.s8 %v636_v8  ;;  %v1164_v2 = vpack.c.bf16 %v3674_v22, %v3666_v40  ;;  %v3691_v3 = vcvt.s32.f32 %v792_v36  ;;  %v3698_v24 = vcvt.s32.f32 %v856_v63  ;;  %v616_v36 = vld [vmem:[%s3410_s13 + $0x110] sm:$0xff] }
 0x124   : > { %1429 = vmatpush.bf16.msrb.mxu3 %v1284_v12  ;;  %1392 = vmatpush.bf16.msrb.mxu0 %v1180_v28  ;;  %v3693_v12 = vcvt.s32.f32 %v796_v57  ;;  %v1196_v28 = vpack.c.bf16 %v3684_v62, %v3682_v20  ;;  %v652_v34 = vunpack.c.1.s8 %v584_v33  ;;  %v4411_v25 = vpack.c.bf16 %v3531_v30, %v3529_v29 }
 0x125   : > { %1405 = vmatpush.bf16.msrb.mxu1 %v4410_v53  ;;  %v3700_v8 = vcvt.s32.f32 %v860_v5  ;;  %v3708_v9 = vcvt.s32.f32 %v648_v6  ;;  %v712_v50 = vunpack.c.0.s8 %v600_v56  ;;  %v716_v52 = vunpack.c.1.s8 %v600_v56 }
 0x126   : > { %v1232_v17 = vpack.c.bf16 %v3693_v12, %v3691_v3  ;;  %v4412_v57 = vpack.c.bf16 %v3538_v37, %v3536_v38  ;;  %v4413_v33 = vpack.c.bf16 %v3549_v54, %v3545_v45  ;;  %v3719_v30 = vcvt.s32.f32 %v652_v34 }
 0x127   : > { %1417 = vmatpush.bf16.msrb.mxu2 %v4411_v25  ;;  %v1264_v29 = vpack.c.bf16 %v3700_v8, %v3698_v24  ;;  %v705_v63 = vunpack.c.2.s8 %v597_v15  ;;  %v709_v5 = vunpack.c.3.s8 %v597_v15  ;;  %v4414_v53 = vpack.c.bf16 %v3553_v47, %v3551_v59  ;;  %v632_v25 = vld [vmem:[%s3410_s13 + $0x190] sm:$0xff] }
 0x128   : > { %1430 = vmatpush.bf16.msrb.mxu3 %v4412_v57  ;;  %1393 = vmatpush.bf16.msrb.mxu0 %v4413_v33  ;;  %v3724_v56 = vcvt.s32.f32 %v712_v50  ;;  %v3726_v6 = vcvt.s32.f32 %v716_v52  ;;  %v769_v38 = vunpack.c.2.s8 %v613_v21  ;;  %v773_v37 = vunpack.c.3.s8 %v613_v21 }
 0x129   : > { %1406 = vmatpush.bf16.msrb.mxu1 %v4414_v53  ;;  %v1160_v45 = vpack.c.bf16 %v3719_v30, %v3708_v9  ;;  %v3732_v54 = vcvt.s32.f32 %v705_v63  ;;  %v3734_v34 = vcvt.s32.f32 %v709_v5  ;;  %v784_v57 = vunpack.c.2.s8 %v616_v36 }
 0x12a   : > { %1346 = vmatmul.bf16.vlgmr.msra.gmra.mxu0 %v3591_v42  ;;  %v4415_v59 = vpack.c.bf16 %v3564_v19, %v3562_v10  ;;  %v1192_v47 = vpack.c.bf16 %v3726_v6, %v3724_v56  ;;  %v3742_v50 = vcvt.s32.f32 %v769_v38  ;;  %v3744_v52 = vcvt.s32.f32 %v773_v37 }
 0x12b   : > { %1359 = vmatmul.bf16.vlgmr.msra.gmra.mxu1 %v3598_v51  ;;  %v788_v33 = vunpack.c.3.s8 %v616_v36  ;;  %v4416_v63 = vpack.c.bf16 %v3573_v41, %v3571_v32  ;;  %v4417_v5 = vpack.c.bf16 %v3585_v0, %v3583_v27  ;;  %v1189_v10 = vpack.c.bf16 %v3734_v34, %v3732_v54 }
 0x12c   : > { %1418 = vmatpush.bf16.msrb.mxu2 %v4415_v59  ;;  %v3754_v19 = vcvt.s32.f32 %v784_v57  ;;  %v848_v53 = vunpack.c.2.s8 %v632_v25  ;;  %v852_v38 = vunpack.c.3.s8 %v632_v25  ;;  %v4418_v37 = vpack.c.bf16 %v3589_v46, %v3587_v60 }
 0x12d   : > { %1431 = vmatpush.bf16.msrb.mxu3 %v4416_v63  ;;  %1394 = vmatpush.bf16.msrb.mxu0 %v4417_v5  ;;  %v1221_v32 = vpack.c.bf16 %v3744_v52, %v3742_v50  ;;  %v3761_v41 = vcvt.s32.f32 %v788_v33  ;;  %v697_v59 = vunpack.c.0.s8 %v597_v15  ;;  %v701_v27 = vunpack.c.1.s8 %v597_v15  ;;  %v589_v50 = vld [vmem:[%s3410_s13 + $0x38] sm:$0xff] }
 0x12e   : > { %1407 = vmatpush.bf16.msrb.mxu1 %v4418_v37  ;;  %v3763_v0 = vcvt.s32.f32 %v848_v53  ;;  %v3765_v63 = vcvt.s32.f32 %v852_v38  ;;  %v761_v57 = vunpack.c.0.s8 %v613_v21  ;;  %v765_v5 = vunpack.c.1.s8 %v613_v21  ;;  %v629_v53 = vld [vmem:[%s3410_s13 + $0x178] sm:$0xff] }
 0x12f   : > { %v1228_v46 = vpack.c.bf16 %v3761_v41, %v3754_v19  ;;  %v3772_v60 = vcvt.s32.f32 %v697_v59  ;;  %v3774_v33 = vcvt.s32.f32 %v701_v27  ;;  %v776_v15 = vunpack.c.0.s8 %v616_v36  ;;  %v645_v38 = vld [vmem:[%s3410_s13 + $0x1f8] sm:$0xff] }
 0x130   : > { %1419 = vmatpush.bf16.msrb.mxu2 %v1240_v48  ;;  %v1260_v26 = vpack.c.bf16 %v3765_v63, %v3763_v0  ;;  %v3785_v58 = vcvt.s32.f32 %v761_v57  ;;  %v3787_v48 = vcvt.s32.f32 %v765_v5  ;;  %v780_v21 = vunpack.c.1.s8 %v616_v36  ;;  %v609_v27 = vld [vmem:[%s3410_s13 + $0xd8] sm:$0xff] }
 0x131   : > { %1432 = vmatpush.bf16.msrb.mxu3 %v1272_v16  ;;  %1395 = vmatpush.bf16.msrb.mxu0 %v1168_v13  ;;  %v1185_v31 = vpack.c.bf16 %v3774_v33, %v3772_v60  ;;  %v3795_v44 = vcvt.s32.f32 %v776_v15  ;;  %v840_v11 = vunpack.c.0.s8 %v632_v25  ;;  %v844_v49 = vunpack.c.1.s8 %v632_v25  ;;  %v593_v16 = vld [vmem:[%s3410_s13 + $0x58] sm:$0xff] }
 0x132   : > { %1408 = vmatpush.bf16.msrb.mxu1 %v1200_v7  ;;  %1372 = vmatmul.bf16.vlgmr.msra.gmra.mxu2 %v3648_v61  ;;  %v1217_v13 = vpack.c.bf16 %v3787_v48, %v3785_v58  ;;  %v3801_v36 = vcvt.s32.f32 %v780_v21  ;;  %v833_v37 = vunpack.c.2.s8 %v629_v53  ;;  %v837_v59 = vunpack.c.3.s8 %v629_v53 }
 0x133   : > { %1385 = vmatmul.bf16.vlgmr.msra.gmra.mxu3 %v3657_v1  ;;  %v3807_v55 = vcvt.s32.f32 %v840_v11  ;;  %v3809_v14 = vcvt.s32.f32 %v844_v49  ;;  %v897_v7 = vunpack.c.2.s8 %v645_v38  ;;  %v901_v25 = vunpack.c.3.s8 %v645_v38 }
 0x134   : > { %1420 = vmatpush.bf16.msrb.mxu2 %v1236_v39  ;;  %v1224_v57 = vpack.c.bf16 %v3801_v36, %v3795_v44  ;;  %v3820_v18 = vcvt.s32.f32 %v833_v37  ;;  %v3822_v23 = vcvt.s32.f32 %v837_v59  ;;  %v689_v39 = vunpack.c.2.s8 %v593_v16  ;;  %v605_v36 = vld [vmem:[%s3410_s13 + $0xb8] sm:$0xff] }
 0x135   : > { %1433 = vmatpush.bf16.msrb.mxu3 %v1268_v4  ;;  %1396 = vmatpush.bf16.msrb.mxu0 %v1164_v2  ;;  %v1256_v35 = vpack.c.bf16 %v3809_v14, %v3807_v55  ;;  %v3829_v43 = vcvt.s32.f32 %v897_v7  ;;  %v3831_v4 = vcvt.s32.f32 %v901_v25  ;;  %v693_v40 = vunpack.c.3.s8 %v593_v16 }
 0x136   : > { %1409 = vmatpush.bf16.msrb.mxu1 %v1196_v28  ;;  %v1253_v22 = vpack.c.bf16 %v3822_v23, %v3820_v18  ;;  %v3835_v2 = vcvt.s32.f32 %v689_v39  ;;  %v753_v5 = vunpack.c.2.s8 %v609_v27  ;;  %v757_v15 = vunpack.c.3.s8 %v609_v27 }
 0x137   : > { %v1285_v20 = vpack.c.bf16 %v3831_v4, %v3829_v43  ;;  %v949_v62 = vcvt.s32.f32 %v693_v40  ;;  %v825_v28 = vunpack.c.0.s8 %v629_v53  ;;  %v829_v21 = vunpack.c.1.s8 %v629_v53 }
 0x138   : > { %1421 = vmatpush.bf16.msrb.mxu2 %v1232_v17  ;;  %v1009_v44 = vcvt.s32.f32 %v753_v5  ;;  %v1013_v11 = vcvt.s32.f32 %v757_v15  ;;  %v889_v3 = vunpack.c.0.s8 %v645_v38  ;;  %v893_v12 = vunpack.c.1.s8 %v645_v38 }
 0x139   : > { %1434 = vmatpush.bf16.msrb.mxu3 %v1264_v29  ;;  %1397 = vmatpush.bf16.msrb.mxu0 %v1160_v45  ;;  %v1181_v24 = vpack.c.bf16 %v949_v62, %v3835_v2  ;;  %v3855_v8 = vcvt.s32.f32 %v825_v28  ;;  %v1085_v17 = vcvt.s32.f32 %v829_v21  ;;  %v681_v9 = vunpack.c.0.s8 %v593_v16  ;;  %v625_v29 = vld [vmem:[%s3410_s13 + $0x158] sm:$0xff] }
 0x13a   : > { %1410 = vmatpush.bf16.msrb.mxu1 %v1192_v47  ;;  %v1213_v30 = vpack.c.bf16 %v1013_v11, %v1009_v44  ;;  %v3861_v45 = vcvt.s32.f32 %v889_v3  ;;  %v1149_v56 = vcvt.s32.f32 %v893_v12  ;;  %v685_v6 = vunpack.c.1.s8 %v593_v16  ;;  %v641_v47 = vld [vmem:[%s3410_s13 + $0x1d8] sm:$0xff] }
 0x13b   : > { %v1249_v54 = vpack.c.bf16 %v1085_v17, %v3855_v8  ;;  %v937_v34 = vcvt.s32.f32 %v681_v9  ;;  %v749_v53 = vunpack.c.1.s8 %v609_v27  ;;  %v817_v19 = vunpack.c.2.s8 %v625_v29  ;;  %v637_v62 = vld [vmem:[%s3410_s13 + $0x1b8] sm:$0xff] }
 0x13c   : > { %1422 = vmatpush.bf16.msrb.mxu2 %v1228_v46  ;;  %1398 = vmatmul.bf16.vlgmr.msrb.gmra.mxu0 %v3591_v42  ;;  %v1281_v52 = vpack.c.bf16 %v1149_v56, %v3861_v45  ;;  %v821_v41 = vunpack.c.3.s8 %v625_v29  ;;  %v881_v49 = vunpack.c.2.s8 %v641_v47  ;;  %v885_v16 = vunpack.c.3.s8 %v641_v47  ;;  %v585_v3 = vld [vmem:[%s3410_s13 + $0x18] sm:$0xff] }
 0x13d   : > { %1442 = vmatpush.bf16.msra.mxu0 %v1189_v10  ;;  %v745_v10 = vunpack.c.0.s8 %v609_v27  ;;  %1435 = vmatpush.bf16.msrb.mxu3 %v1260_v26  ;;  %v1005_v38 = vcvt.s32.f32 %v749_v53  ;;  %v1073_v63 = vcvt.s32.f32 %v817_v19  ;;  %v673_v37 = vunpack.c.2.s8 %v589_v50  ;;  %v601_v56 = vld [vmem:[%s3410_s13 + $0x98] sm:$0xff] }
 0x13e   : > { %1455 = vmatpush.bf16.msra.mxu1 %v1221_v32  ;;  %v941_v32 = vcvt.s32.f32 %v685_v6  ;;  %v1077_v26 = vcvt.s32.f32 %v821_v41  ;;  %v1137_v55 = vcvt.s32.f32 %v881_v49  ;;  %v1141_v14 = vcvt.s32.f32 %v885_v16 }
 0x13f   : > { %1411 = vmatmul.bf16.vlgmr.msrb.gmra.mxu1 %v3598_v51  ;;  %v1001_v46 = vcvt.s32.f32 %v745_v10  ;;  %v677_v7 = vunpack.c.3.s8 %v589_v50  ;;  %v929_v33 = vcvt.s32.f32 %v673_v37  ;;  %v741_v25 = vunpack.c.3.s8 %v605_v36 }
 0x140   : > { %v1177_v0 = vpack.c.bf16 %v941_v32, %v937_v34  ;;  %1423 = vmatpush.bf16.msrb.mxu2 %v1224_v57  ;;  %v1245_v60 = vpack.c.bf16 %v1077_v26, %v1073_v63  ;;  %v1277_v58 = vpack.c.bf16 %v1141_v14, %v1137_v55  ;;  %v813_v27 = vunpack.c.1.s8 %v625_v29 }
 0x141   : > { %1443 = vmatpush.bf16.msra.mxu0 %v1185_v31  ;;  %v1209_v59 = vpack.c.bf16 %v1005_v38, %v1001_v46  ;;  %1436 = vmatpush.bf16.msrb.mxu3 %v1256_v35  ;;  %v737_v31 = vunpack.c.2.s8 %v605_v36  ;;  %v933_v48 = vcvt.s32.f32 %v677_v7  ;;  %v997_v18 = vcvt.s32.f32 %v741_v25 }
 0x142   : > { %1456 = vmatpush.bf16.msra.mxu1 %v1217_v13  ;;  %v809_v13 = vunpack.c.0.s8 %v625_v29  ;;  %v873_v23 = vunpack.c.0.s8 %v641_v47  ;;  %v877_v39 = vunpack.c.1.s8 %v641_v47  ;;  %v1069_v4 = vcvt.s32.f32 %v813_v27 }
 0x143   : > { %1424 = vmatmul.bf16.vlgmr.msrb.gmra.mxu2 %v3648_v61  ;;  %v993_v57 = vcvt.s32.f32 %v737_v31  ;;  %v1173_v35 = vpack.c.bf16 %v933_v48, %v929_v33  ;;  %v665_v40 = vunpack.c.0.s8 %v589_v50  ;;  %v729_v44 = vunpack.c.0.s8 %v605_v36  ;;  %v633_v48 = vld [vmem:[%s3410_s13 + $0x198] sm:$0xff] }
 0x144   : > { %1468 = vmatpush.bf16.msra.mxu2 %v1253_v22  ;;  %1437 = vmatmul.bf16.vlgmr.msrb.gmra.mxu3 %v3657_v1  ;;  %v1065_v43 = vcvt.s32.f32 %v809_v13  ;;  %v621_v22 = vld [vmem:[%s3410_s13 + $0x138] sm:$0xff]  ;;  %v1129_v5 = vcvt.s32.f32 %v873_v23  ;;  %v1133_v15 = vcvt.s32.f32 %v877_v39  ;;  %v733_v11 = vunpack.c.1.s8 %v605_v36 }
 0x145   : > { %1481 = vmatpush.bf16.msra.mxu3 %v1285_v20  ;;  %1444 = vmatpush.bf16.msra.mxu0 %v1181_v24  ;;  %v1205_v2 = vpack.c.bf16 %v997_v18, %v993_v57  ;;  %v669_v20 = vunpack.c.1.s8 %v589_v50  ;;  %v921_v21 = vcvt.s32.f32 %v665_v40  ;;  %v801_v8 = vunpack.c.2.s8 %v621_v22 }
 0x146   : > { %1457 = vmatpush.bf16.msra.mxu1 %v1213_v30  ;;  %v1241_v28 = vpack.c.bf16 %v1069_v4, %v1065_v43  ;;  %v1273_v12 = vpack.c.bf16 %v1133_v15, %v1129_v5  ;;  %v805_v17 = vunpack.c.3.s8 %v621_v22  ;;  %v985_v9 = vcvt.s32.f32 %v729_v44 }
 0x147   : > { %v925_v24 = vcvt.s32.f32 %v669_v20  ;;  %v989_v29 = vcvt.s32.f32 %v733_v11  ;;  %v865_v30 = vunpack.c.2.s8 %v637_v62  ;;  %v869_v45 = vunpack.c.3.s8 %v637_v62 }
 0x148   : > { %1469 = vmatpush.bf16.msra.mxu2 %v1249_v54  ;;  %v1057_v47 = vcvt.s32.f32 %v801_v8  ;;  %v1061_v54 = vcvt.s32.f32 %v805_v17  ;;  %v657_v34 = vunpack.c.2.s8 %v585_v3  ;;  %v721_v41 = vunpack.c.2.s8 %v601_v56 }
 0x149   : > { %1482 = vmatpush.bf16.msra.mxu3 %v1281_v52  ;;  %1445 = vmatpush.bf16.msra.mxu0 %v1177_v0  ;;  %v1169_v6 = vpack.c.bf16 %v925_v24, %v921_v21  ;;  %v1201_v10 = vpack.c.bf16 %v989_v29, %v985_v9  ;;  %v1121_v53 = vcvt.s32.f32 %v865_v30  ;;  %v1125_v50 = vcvt.s32.f32 %v869_v45  ;;  %v1540_v9 = vld [vmem:[%s3412_s17 + $0x40] sm:$0xff] }
 0x14a   : > { %1458 = vmatpush.bf16.msra.mxu1 %v1209_v59  ;;  %v661_v52 = vunpack.c.3.s8 %v585_v3  ;;  %v1237_v32 = vpack.c.bf16 %v1061_v54, %v1057_v47  ;;  %v913_v19 = vcvt.s32.f32 %v657_v34  ;;  %v725_v46 = vunpack.c.3.s8 %v601_v56 }
 0x14b   : > { %v1269_v38 = vpack.c.bf16 %v1125_v50, %v1121_v53  ;;  %v793_v16 = vunpack.c.0.s8 %v621_v22  ;;  %v797_v36 = vunpack.c.1.s8 %v621_v22  ;;  %v977_v0 = vcvt.s32.f32 %v721_v41 }
 0x14c   : > { %1470 = vmatpush.bf16.msra.mxu2 %v1245_v60  ;;  %v917_v49 = vcvt.s32.f32 %v661_v52  ;;  %v981_v63 = vcvt.s32.f32 %v725_v46  ;;  %v857_v26 = vunpack.c.0.s8 %v637_v62  ;;  %v861_v37 = vunpack.c.1.s8 %v637_v62  ;;  %v617_v60 = vld [vmem:[%s3410_s13 + $0x118] sm:$0xff]  ;;  %v1560_v46 = vld [vmem:[%s3412_s17 + $0xe0] sm:$0xff] }
 0x14d   : > { %1483 = vmatpush.bf16.msra.mxu3 %v1277_v58  ;;  %1446 = vmatpush.bf16.msra.mxu0 %v1173_v35  ;;  %v1049_v55 = vcvt.s32.f32 %v793_v16  ;;  %v1053_v14 = vcvt.s32.f32 %v797_v36  ;;  %v649_v7 = vunpack.c.0.s8 %v585_v3  ;;  %v653_v58 = vunpack.c.1.s8 %v585_v3 }
 0x14e   : > { %1459 = vmatpush.bf16.msra.mxu1 %v1205_v2  ;;  %v1165_v59 = vpack.c.bf16 %v917_v49, %v913_v19  ;;  %v1197_v33 = vpack.c.bf16 %v981_v63, %v977_v0  ;;  %v1113_v31 = vcvt.s32.f32 %v857_v26  ;;  %v1117_v25 = vcvt.s32.f32 %v861_v37  ;;  %v1536_v63 = vld [vmem:[%s3412_s17 + $0x20] sm:$0xff] }
 0x14f   : > { %v1233_v13 = vpack.c.bf16 %v1053_v14, %v1049_v55  ;;  %v905_v27 = vcvt.s32.f32 %v649_v7  ;;  %v713_v57 = vunpack.c.0.s8 %v601_v56  ;;  %v717_v18 = vunpack.c.1.s8 %v601_v56 }
 0x150   : > { %1471 = vmatpush.bf16.msra.mxu2 %v1241_v28  ;;  %v1265_v23 = vpack.c.bf16 %v1117_v25, %v1113_v31  ;;  %v909_v39 = vcvt.s32.f32 %v653_v58  ;;  %v785_v35 = vunpack.c.2.s8 %v617_v60  ;;  %v789_v43 = vunpack.c.3.s8 %v617_v60  ;;  %v1544_v28 = vld [vmem:[%s3412_s17 + $0x60] sm:$0xff] }
 0x151   : > { %1484 = vmatpush.bf16.msra.mxu3 %v1273_v12  ;;  %1447 = vmatpush.bf16.msra.mxu0 %v1169_v6  ;;  %v969_v4 = vcvt.s32.f32 %v713_v57  ;;  %v973_v40 = vcvt.s32.f32 %v717_v18  ;;  %v849_v22 = vunpack.c.2.s8 %v633_v48  ;;  %v853_v2 = vunpack.c.3.s8 %v633_v48 }
 0x152   : > { %1460 = vmatpush.bf16.msra.mxu1 %v1201_v10  ;;  %v1161_v5 = vpack.c.bf16 %v909_v39, %v905_v27  ;;  %v1041_v15 = vcvt.s32.f32 %v785_v35  ;;  %v1045_v20 = vcvt.s32.f32 %v789_v43  ;;  %v777_v62 = vunpack.c.0.s8 %v617_v60 }
 0x153   : > { %v1193_v21 = vpack.c.bf16 %v973_v40, %v969_v4  ;;  %v1105_v44 = vcvt.s32.f32 %v849_v22  ;;  %v1109_v11 = vcvt.s32.f32 %v853_v2  ;;  %v781_v3 = vunpack.c.1.s8 %v617_v60  ;;  %v1556_v60 = vld [vmem:[%s3412_s17 + $0xc0] sm:$0xff] }
 0x154   : > { %1472 = vmatpush.bf16.msra.mxu2 %v1237_v32  ;;  %v1229_v12 = vpack.c.bf16 %v1045_v20, %v1041_v15  ;;  %v1033_v24 = vcvt.s32.f32 %v777_v62  ;;  %v841_v8 = vunpack.c.0.s8 %v633_v48  ;;  %v845_v17 = vunpack.c.1.s8 %v633_v48  ;;  %v3900_v22 = vld [vmem:[%s3412_s17 + $0xa0] sm:$0xff] }
 0x155   : > { %1485 = vmatpush.bf16.msra.mxu3 %v1269_v38  ;;  %1448 = vmatpush.bf16.msra.mxu0 %v1165_v59  ;;  %v1261_v29 = vpack.c.bf16 %v1109_v11, %v1105_v44  ;;  %v1037_v30 = vcvt.s32.f32 %v781_v3  ;;  %v1652_v45 = vunpack.c.2.s8 %v1544_v28  ;;  %v1656_v56 = vunpack.c.3.s8 %v1544_v28  ;;  %v1532_v15 = vld [vmem:[%s3412_s17] sm:$0xff] }
 0x156   : > { %1461 = vmatpush.bf16.msra.mxu1 %v1197_v33  ;;  %v1097_v6 = vcvt.s32.f32 %v841_v8  ;;  %v1101_v47 = vcvt.s32.f32 %v845_v17  ;;  %v1644_v54 = vunpack.c.0.s8 %v1544_v28  ;;  %v1648_v34 = vunpack.c.1.s8 %v1544_v28  ;;  %v3904_v62 = vld [vmem:[%s3412_s17 + $0x160] sm:$0xff] }
 0x157   : > { %v1908_v10 = vcvt.s32.f32 %v1652_v45  ;;  %v1912_v53 = vcvt.s32.f32 %v1656_v56  ;;  %v1636_v50 = vunpack.c.2.s8 %v1540_v9  ;;  %v1225_v52 = vpack.c.bf16 %v1037_v30, %v1033_v24 }
 0x158   : > { %1473 = vmatpush.bf16.msra.mxu2 %v1233_v13  ;;  %v1900_v32 = vcvt.s32.f32 %v1644_v54  ;;  %v1904_v19 = vcvt.s32.f32 %v1648_v34  ;;  %v1640_v41 = vunpack.c.3.s8 %v1540_v9  ;;  %v1257_v38 = vpack.c.bf16 %v1101_v47, %v1097_v6  ;;  %v1545_v6 = vld [vmem:[%s3412_s17 + $0x68] sm:$0xff] }
 0x159   : > { %1486 = vmatpush.bf16.msra.mxu3 %v1265_v23  ;;  %1449 = vmatpush.bf16.msra.mxu0 %v1161_v5  ;;  %v2136_v49 = vpack.c.bf16 %v1912_v53, %v1908_v10  ;;  %v1892_v16 = vcvt.s32.f32 %v1636_v50  ;;  %v1628_v36 = vunpack.c.0.s8 %v1540_v9  ;;  %v1632_v0 = vunpack.c.1.s8 %v1540_v9 }
 0x15a   : > { %1462 = vmatpush.bf16.msra.mxu1 %v1193_v21  ;;  %v2132_v26 = vpack.c.bf16 %v1904_v19, %v1900_v32  ;;  %v1896_v37 = vcvt.s32.f32 %v1640_v41  ;;  %v1716_v59 = vunpack.c.2.s8 %v1560_v46  ;;  %v1620_v55 = vunpack.c.2.s8 %v1536_v63 }
 0x15b   : > { %v1624_v33 = vunpack.c.3.s8 %v1536_v63  ;;  %v1712_v31 = vunpack.c.1.s8 %v1560_v46  ;;  %v1884_v58 = vcvt.s32.f32 %v1628_v36  ;;  %v1888_v48 = vcvt.s32.f32 %v1632_v0 }
 0x15c   : > { %1474 = vmatpush.bf16.msra.mxu2 %v1229_v12  ;;  %1450 = vmatmul.bf16.vlgmr.msra.gmra.mxu0 %v3591_v42  ;;  %v1720_v42 = vunpack.c.3.s8 %v1560_v46  ;;  %v1972_v14 = vcvt.s32.f32 %v1716_v59  ;;  %v2128_v25 = vpack.c.bf16 %v1896_v37, %v1892_v16  ;;  %v1700_v18 = vunpack.c.2.s8 %v1556_v60 }
 0x15d   : > { %1487 = vmatpush.bf16.msra.mxu3 %v1261_v29  ;;  %1463 = vmatmul.bf16.vlgmr.msra.gmra.mxu1 %v3598_v51  ;;  %v1708_v51 = vunpack.c.0.s8 %v1560_v46  ;;  %v1968_v57 = vcvt.s32.f32 %v1712_v31  ;;  %v1704_v23 = vunpack.c.3.s8 %v1556_v60  ;;  %v1876_v39 = vcvt.s32.f32 %v1620_v55  ;;  %v1541_v31 = vld [vmem:[%s3412_s17 + $0x48] sm:$0xff] }
 0x15e   : > { %2236 = vmatpush.bf16.msrb.mxu0 %v2136_v49  ;;  %v1976_v7 = vcvt.s32.f32 %v1720_v42  ;;  %v1612_v35 = vunpack.c.0.s8 %v1536_v63  ;;  %v1616_v43 = vunpack.c.1.s8 %v1536_v63  ;;  %v2124_v2 = vpack.c.bf16 %v1888_v48, %v1884_v58 }
 0x15f   : > { %v1964_v27 = vcvt.s32.f32 %v1708_v51  ;;  %v1960_v40 = vcvt.s32.f32 %v1704_v23  ;;  %v1880_v5 = vcvt.s32.f32 %v1624_v33  ;;  %v1696_v20 = vunpack.c.1.s8 %v1556_v60 }
 0x160   : > { %1475 = vmatpush.bf16.msra.mxu2 %v1225_v52  ;;  %v2168_v13 = vpack.c.bf16 %v1976_v7, %v1972_v14  ;;  %v1684_v11 = vunpack.c.2.s8 %v3900_v22  ;;  %v1688_v3 = vunpack.c.3.s8 %v3900_v22  ;;  %v1868_v12 = vcvt.s32.f32 %v1612_v35 }
 0x161   : > { %1488 = vmatpush.bf16.msra.mxu3 %v1257_v38  ;;  %v2164_v4 = vpack.c.bf16 %v1968_v57, %v1964_v27  ;;  %v1952_v44 = vcvt.s32.f32 %v1696_v20  ;;  %v1872_v24 = vcvt.s32.f32 %v1616_v43  ;;  %v1604_v8 = vunpack.c.2.s8 %v1532_v15  ;;  %v1572_v27 = vld [vmem:[%s3412_s17 + $0x140] sm:$0xff] }
 0x162   : > { %2237 = vmatpush.bf16.msrb.mxu0 %v2132_v26  ;;  %2249 = vmatpush.bf16.msrb.mxu1 %v2168_v13  ;;  %v1780_v17 = vunpack.c.2.s8 %v3904_v62  ;;  %v2120_v9 = vpack.c.bf16 %v1880_v5, %v1876_v39  ;;  %v1608_v29 = vunpack.c.3.s8 %v1532_v15  ;;  %v1784_v30 = vunpack.c.3.s8 %v3904_v62  ;;  %v1548_v13 = vld [vmem:[%s3412_s17 + $0x80] sm:$0xff] }
 0x163   : > { %1476 = vmatmul.bf16.vlgmr.msra.gmra.mxu2 %v3648_v61  ;;  %v1956_v61 = vcvt.s32.f32 %v1700_v18  ;;  %v1940_v47 = vcvt.s32.f32 %v1684_v11  ;;  %v1944_v54 = vcvt.s32.f32 %v1688_v3  ;;  %v2116_v10 = vpack.c.bf16 %v1872_v24, %v1868_v12 }
 0x164   : > { %1489 = vmatmul.bf16.vlgmr.msra.gmra.mxu3 %v3657_v1  ;;  %v1692_v1 = vunpack.c.0.s8 %v1556_v60  ;;  %v2036_v45 = vcvt.s32.f32 %v1780_v17  ;;  %v2040_v34 = vcvt.s32.f32 %v1784_v30  ;;  %v1860_v53 = vcvt.s32.f32 %v1604_v8 }
 0x165   : > { %v2160_v28 = vpack.c.bf16 %v1960_v40, %v1956_v61  ;;  %v1864_v50 = vcvt.s32.f32 %v1608_v29  ;;  %v1596_v52 = vunpack.c.0.s8 %v1532_v15  ;;  %v1600_v32 = vunpack.c.1.s8 %v1532_v15  ;;  %v1561_v29 = vld [vmem:[%s3412_s17 + $0xe8] sm:$0xff] }
 0x166   : > { %2238 = vmatpush.bf16.msrb.mxu0 %v2128_v25  ;;  %2250 = vmatpush.bf16.msrb.mxu1 %v2164_v4  ;;  %v1948_v21 = vcvt.s32.f32 %v1692_v1  ;;  %v2200_v19 = vpack.c.bf16 %v2040_v34, %v2036_v45  ;;  %v1653_v41 = vunpack.c.2.s8 %v1545_v6  ;;  %v1657_v46 = vunpack.c.3.s8 %v1545_v6 }
 0x167   : > { %v2152_v38 = vpack.c.bf16 %v1944_v54, %v1940_v47  ;;  %v2112_v49 = vpack.c.bf16 %v1864_v50, %v1860_v53  ;;  %v1852_v16 = vcvt.s32.f32 %v1596_v52  ;;  %v1856_v36 = vcvt.s32.f32 %v1600_v32 }
 0x168   : > { %v2156_v56 = vpack.c.bf16 %v1952_v44, %v1948_v21  ;;  %2262 = vmatpush.bf16.msrb.mxu2 %v2200_v19  ;;  %v1909_v0 = vcvt.s32.f32 %v1653_v41  ;;  %v1913_v63 = vcvt.s32.f32 %v1657_v46  ;;  %v1645_v59 = vunpack.c.0.s8 %v1545_v6  ;;  %v1568_v19 = vld [vmem:[%s3412_s17 + $0x120] sm:$0xff] }
 0x169   : > { %v2108_v26 = vpack.c.bf16 %v1856_v36, %v1852_v16  ;;  %v1649_v42 = vunpack.c.1.s8 %v1545_v6  ;;  %v1676_v7 = vunpack.c.0.s8 %v3900_v22  ;;  %v1680_v60 = vunpack.c.1.s8 %v3900_v22 }
 0x16a   : > { %2239 = vmatpush.bf16.msrb.mxu0 %v2124_v2  ;;  %2251 = vmatpush.bf16.msrb.mxu1 %v2160_v28  ;;  %v2137_v37 = vpack.c.bf16 %v1913_v63, %v1909_v0  ;;  %v1901_v55 = vcvt.s32.f32 %v1645_v59  ;;  %v1772_v33 = vunpack.c.0.s8 %v3904_v62  ;;  %v1776_v51 = vunpack.c.1.s8 %v3904_v62 }
 0x16b   : > { %v1905_v14 = vcvt.s32.f32 %v1649_v42  ;;  %v1637_v58 = vunpack.c.2.s8 %v1541_v31  ;;  %v1641_v48 = vunpack.c.3.s8 %v1541_v31  ;;  %v1932_v57 = vcvt.s32.f32 %v1676_v7 }
 0x16c   : > { %v1936_v18 = vcvt.s32.f32 %v1680_v60  ;;  %v2028_v23 = vcvt.s32.f32 %v1772_v33  ;;  %v2032_v39 = vcvt.s32.f32 %v1776_v51  ;;  %v1668_v4 = vunpack.c.2.s8 %v1548_v13  ;;  %v3922_v60 = vld [vmem:[%s3421_s3 + $0x1] ss:$8 sm:$0xf] }
 0x16d   : > { %v2133_v25 = vpack.c.bf16 %v1905_v14, %v1901_v55  ;;  %v1893_v35 = vcvt.s32.f32 %v1637_v58  ;;  %v1897_v43 = vcvt.s32.f32 %v1641_v48  ;;  %v1672_v61 = vunpack.c.3.s8 %v1548_v13  ;;  %v1533_v58 = vld [vmem:[%s3412_s17 + $0x8] sm:$0xff] }
 0x16e   : > { %2240 = vmatpush.bf16.msrb.mxu0 %v2120_v9  ;;  %2252 = vmatpush.bf16.msrb.mxu1 %v2156_v56  ;;  %v2148_v40 = vpack.c.bf16 %v1936_v18, %v1932_v57  ;;  %v2196_v22 = vpack.c.bf16 %v2032_v39, %v2028_v23  ;;  %v1764_v2 = vunpack.c.2.s8 %v1572_v27  ;;  %v1768_v5 = vunpack.c.3.s8 %v1572_v27  ;;  %v1537_v9 = vld [vmem:[%s3412_s17 + $0x28] sm:$0xff] }
 0x16f   : > { %v2129_v15 = vpack.c.bf16 %v1897_v43, %v1893_v35  ;;  %v1924_v1 = vcvt.s32.f32 %v1668_v4  ;;  %v1928_v20 = vcvt.s32.f32 %v1672_v61  ;;  %v1629_v62 = vunpack.c.0.s8 %v1541_v31  ;;  %v1557_v48 = vld [vmem:[%s3412_s17 + $0xc8] sm:$0xff] }
 0x170   : > { %2263 = vmatpush.bf16.msrb.mxu2 %v2196_v22  ;;  %v2020_v28 = vcvt.s32.f32 %v1764_v2  ;;  %v2024_v21 = vcvt.s32.f32 %v1768_v5  ;;  %v1633_v44 = vunpack.c.1.s8 %v1541_v31  ;;  %v1660_v8 = vunpack.c.0.s8 %v1548_v13  ;;  %v3928_v23 = vld [vmem:[%s3421_s3 + $0x5] ss:$8 sm:$0xf] }
 0x171   : > { %v2144_v11 = vpack.c.bf16 %v1928_v20, %v1924_v1  ;;  %v1885_v3 = vcvt.s32.f32 %v1629_v62  ;;  %v1664_v17 = vunpack.c.1.s8 %v1548_v13  ;;  %v1756_v30 = vunpack.c.0.s8 %v1572_v27  ;;  %v1564_v5 = vld [vmem:[%s3412_s17 + $0x100] sm:$0xff] }
 0x172   : > { %2241 = vmatpush.bf16.msrb.mxu0 %v2116_v10  ;;  %2253 = vmatpush.bf16.msrb.mxu1 %v2152_v38  ;;  %v2192_v12 = vpack.c.bf16 %v2024_v21, %v2020_v28  ;;  %v1889_v24 = vcvt.s32.f32 %v1633_v44  ;;  %v1760_v45 = vunpack.c.1.s8 %v1572_v27  ;;  %v1621_v56 = vunpack.c.2.s8 %v1537_v9 }
 0x173   : > { %v1625_v6 = vunpack.c.3.s8 %v1537_v9  ;;  %v1916_v54 = vcvt.s32.f32 %v1660_v8  ;;  %v1920_v34 = vcvt.s32.f32 %v1664_v17  ;;  %v1717_v10 = vunpack.c.2.s8 %v1561_v29 }
 0x174   : > { %2264 = vmatpush.bf16.msrb.mxu2 %v2192_v12  ;;  %v2125_v47 = vpack.c.bf16 %v1889_v24, %v1885_v3  ;;  %v2012_v53 = vcvt.s32.f32 %v1756_v30  ;;  %v2016_v50 = vcvt.s32.f32 %v1760_v45  ;;  %v1877_v52 = vcvt.s32.f32 %v1621_v56  ;;  %v1546_v3 = vld [vmem:[%s3412_s17 + $0x70] sm:$0xff] }
 0x175   : > { %v1881_v32 = vcvt.s32.f32 %v1625_v6  ;;  %v2140_v41 = vpack.c.bf16 %v1920_v34, %v1916_v54  ;;  %v1721_v46 = vunpack.c.3.s8 %v1561_v29  ;;  %v1973_v38 = vcvt.s32.f32 %v1717_v10  ;;  %v1592_v34 = vld [vmem:[%s3412_s17 + $0x1e0] sm:$0xff] }
 0x176   : > { %2242 = vmatpush.bf16.msrb.mxu0 %v2112_v49  ;;  %2254 = vmatpush.bf16.msrb.mxu1 %v2148_v40  ;;  %v1748_v49 = vunpack.c.2.s8 %v1568_v19  ;;  %v2188_v16 = vpack.c.bf16 %v2016_v50, %v2012_v53  ;;  %v1752_v0 = vunpack.c.3.s8 %v1568_v19  ;;  %v1613_v63 = vunpack.c.0.s8 %v1537_v9 }
 0x177   : > { %v2121_v36 = vpack.c.bf16 %v1881_v32, %v1877_v52  ;;  %v1617_v59 = vunpack.c.1.s8 %v1537_v9  ;;  %v1709_v42 = vunpack.c.0.s8 %v1561_v29  ;;  %v1713_v7 = vunpack.c.1.s8 %v1561_v29  ;;  %v1553_v32 = vld [vmem:[%s3412_s17 + $0xa8] sm:$0xff] }
 0x178   : > { %2265 = vmatpush.bf16.msrb.mxu2 %v2188_v16  ;;  %v2008_v55 = vcvt.s32.f32 %v1752_v0  ;;  %v1869_v14 = vcvt.s32.f32 %v1613_v63  ;;  %v1497_v13 = vperm.slane %v3922_v60, 0  ;;  %v1744_v18 = vunpack.c.1.s8 %v1568_v19 }
 0x179   : > { %v1873_v51 = vcvt.s32.f32 %v1617_v59  ;;  %v1965_v31 = vcvt.s32.f32 %v1709_v42  ;;  %v1969_v57 = vcvt.s32.f32 %v1713_v7  ;;  %v1605_v43 = vunpack.c.2.s8 %v1533_v58 }
 0x17a   : > { %2243 = vmatpush.bf16.msrb.mxu0 %v2108_v26  ;;  %2255 = vmatpush.bf16.msrb.mxu1 %v2144_v11  ;;  %v1977_v26 = vcvt.s32.f32 %v1721_v46  ;;  %v1609_v4 = vunpack.c.3.s8 %v1533_v58  ;;  %v1512_v61 = vperm.slane %v3928_v23, 0  ;;  %v2000_v22 = vcvt.s32.f32 %v1744_v18 }
 0x17b   : > { %v2117_v39 = vpack.c.bf16 %v1873_v51, %v1869_v14  ;;  %v2165_v40 = vpack.c.bf16 %v1969_v57, %v1965_v31  ;;  %v1701_v2 = vunpack.c.2.s8 %v1557_v48  ;;  %v1705_v20 = vunpack.c.3.s8 %v1557_v48 }
 0x17c   : > { %v2169_v33 = vpack.c.bf16 %v1977_v26, %v1973_v38  ;;  %v1865_v1 = vcvt.s32.f32 %v1609_v4  ;;  %v1732_v62 = vunpack.c.2.s8 %v1564_v5  ;;  %v1736_v44 = vunpack.c.3.s8 %v1564_v5 }
 0x17d   : > { %v1957_v21 = vcvt.s32.f32 %v1701_v2  ;;  %v1597_v11 = vunpack.c.0.s8 %v1533_v58  ;;  %v1961_v24 = vcvt.s32.f32 %v1705_v20  ;;  %v1601_v17 = vunpack.c.1.s8 %v1533_v58  ;;  %v1542_v20 = vld [vmem:[%s3412_s17 + $0x50] sm:$0xff] }
 0x17e   : > { %2288 = vmatpush.bf16.msra.mxu0 %v2137_v37  ;;  %2256 = vmatpush.bf16.msrb.mxu1 %v2140_v41  ;;  %v2004_v37 = vcvt.s32.f32 %v1748_v49  ;;  %v1988_v8 = vcvt.s32.f32 %v1732_v62  ;;  %v1992_v9 = vcvt.s32.f32 %v1736_v44  ;;  %v1693_v30 = vunpack.c.0.s8 %v1557_v48  ;;  %v1577_v49 = vld [vmem:[%s3412_s17 + $0x168] sm:$0xff] }
 0x17f   : > { %v1853_v29 = vcvt.s32.f32 %v1597_v11  ;;  %v1697_v45 = vunpack.c.1.s8 %v1557_v48  ;;  %v2161_v56 = vpack.c.bf16 %v1961_v24, %v1957_v21  ;;  %v1857_v6 = vcvt.s32.f32 %v1601_v17  ;;  %v1588_v11 = vld [vmem:[%s3412_s17 + $0x1c0] sm:$0xff] }
 0x180   : > { %v2184_v27 = vpack.c.bf16 %v2008_v55, %v2004_v37  ;;  %v1658_v54 = vunpack.c.3.s8 %v1546_v3  ;;  %v2176_v10 = vpack.c.bf16 %v1992_v9, %v1988_v8  ;;  %v1949_v53 = vcvt.s32.f32 %v1693_v30 }
 0x181   : > { %v1953_v50 = vcvt.s32.f32 %v1697_v45  ;;  %v1724_v52 = vunpack.c.0.s8 %v1564_v5  ;;  %v1728_v38 = vunpack.c.1.s8 %v1564_v5  ;;  %v1844_v0 = vunpack.c.2.s8 %v1592_v34  ;;  %v1549_v45 = vld [vmem:[%s3412_s17 + $0x88] sm:$0xff] }
 0x182   : > { %2289 = vmatpush.bf16.msra.mxu0 %v2133_v25  ;;  %v1740_v25 = vunpack.c.0.s8 %v1568_v19  ;;  %2301 = vmatpush.bf16.msra.mxu1 %v2169_v33  ;;  %v2109_v19 = vpack.c.bf16 %v1857_v6, %v1853_v29  ;;  %v3937_v46 = vcvt.s32.f32 %v1658_v54  ;;  %v1848_v63 = vunpack.c.3.s8 %v1592_v34 }
 0x183   : > { %2266 = vmatpush.bf16.msrb.mxu2 %v2184_v27  ;;  %v2157_v16 = vpack.c.bf16 %v1953_v50, %v1949_v53  ;;  %v1984_v37 = vcvt.s32.f32 %v1728_v38  ;;  %v1685_v59 = vunpack.c.2.s8 %v1553_v32  ;;  %v1689_v42 = vunpack.c.3.s8 %v1553_v32 }
 0x184   : > { %v1996_v35 = vcvt.s32.f32 %v1740_v25  ;;  %v2100_v55 = vcvt.s32.f32 %v1844_v0  ;;  %v2104_v14 = vcvt.s32.f32 %v1848_v63  ;;  %v1781_v7 = vunpack.c.2.s8 %v1577_v49 }
 0x185   : > { %v1785_v33 = vunpack.c.3.s8 %v1577_v49  ;;  %v1941_v31 = vcvt.s32.f32 %v1685_v59  ;;  %v1945_v25 = vcvt.s32.f32 %v1689_v42  ;;  %v1646_v58 = vunpack.c.0.s8 %v1546_v3 }
 0x186   : > { %2290 = vmatpush.bf16.msra.mxu0 %v2129_v15  ;;  %v1861_v15 = vcvt.s32.f32 %v1605_v43  ;;  %v2180_v28 = vpack.c.bf16 %v2000_v22, %v1996_v35  ;;  %2302 = vmatpush.bf16.msra.mxu1 %v2165_v40  ;;  %v2232_v27 = vpack.c.bf16 %v2104_v14, %v2100_v55  ;;  %v2037_v57 = vcvt.s32.f32 %v1781_v7 }
 0x187   : > { %v2041_v18 = vcvt.s32.f32 %v1785_v33  ;;  %v1498_v43 = vperm.slane %v3922_v60, 1  ;;  %v2153_v4 = vpack.c.bf16 %v1945_v25, %v1941_v31  ;;  %v3943_v40 = vcvt.s32.f32 %v1646_v58 }
 0x188   : > { %v2113_v12 = vpack.c.bf16 %v1865_v1, %v1861_v15  ;;  %2267 = vmatpush.bf16.msrb.mxu2 %v2180_v28  ;;  %v1836_v22 = vunpack.c.0.s8 %v1592_v34  ;;  %2275 = vmatpush.bf16.msrb.mxu3 %v2232_v27  ;;  %v1840_v1 = vunpack.c.1.s8 %v1592_v34  ;;  %v1513_v62 = vperm.slane %v3928_v23, 1  ;;  %v1573_v34 = vld [vmem:[%s3412_s17 + $0x148] sm:$0xff] }
 0x189   : > { %v2201_v5 = vpack.c.bf16 %v2041_v18, %v2037_v57  ;;  %v1677_v21 = vunpack.c.0.s8 %v1553_v32  ;;  %v1681_v44 = vunpack.c.1.s8 %v1553_v32  ;;  %v1773_v24 = vunpack.c.0.s8 %v1577_v49  ;;  %v3967_v18 = vld [vmem:[%s3412_s17 + $0x30] sm:$0xff] }
 0x18a   : > { %2291 = vmatpush.bf16.msra.mxu0 %v2125_v47  ;;  %v1654_v47 = vunpack.c.2.s8 %v1546_v3  ;;  %2303 = vmatpush.bf16.msra.mxu1 %v2161_v56  ;;  %v2092_v28 = vcvt.s32.f32 %v1836_v22  ;;  %v1777_v8 = vunpack.c.1.s8 %v1577_v49  ;;  %v1638_v29 = vunpack.c.2.s8 %v1542_v20 }
 0x18b   : > { %v1933_v17 = vcvt.s32.f32 %v1677_v21  ;;  %v1937_v9 = vcvt.s32.f32 %v1681_v44  ;;  %v1642_v30 = vunpack.c.3.s8 %v1542_v20  ;;  %v2029_v6 = vcvt.s32.f32 %v1773_v24  ;;  %v3972_v44 = vld [vmem:[%s3412_s17 + $0xf0] sm:$0xff] }
 0x18c   : > { %v3935_v41 = vcvt.s32.f32 %v1654_v47  ;;  %2268 = vmatpush.bf16.msrb.mxu2 %v2176_v10  ;;  %v2033_v47 = vcvt.s32.f32 %v1777_v8  ;;  %v1828_v54 = vunpack.c.2.s8 %v1588_v11  ;;  %v3956_v53 = vcvt.s32.f32 %v1638_v29 }
 0x18d   : > { %v2149_v10 = vpack.c.bf16 %v1937_v9, %v1933_v17  ;;  %v3958_v50 = vcvt.s32.f32 %v1642_v30  ;;  %v1669_v49 = vunpack.c.2.s8 %v1549_v45  ;;  %v1769_v59 = vunpack.c.3.s8 %v1573_v34 }
 0x18e   : > { %2292 = vmatpush.bf16.msra.mxu0 %v2121_v36  ;;  %v1980_v36 = vcvt.s32.f32 %v1724_v52  ;;  %v2138_v26 = vpack.c.bf16 %v3937_v46, %v3935_v41  ;;  %2304 = vmatpush.bf16.msra.mxu1 %v2157_v16  ;;  %v1832_v52 = vunpack.c.3.s8 %v1588_v11  ;;  %v2084_v38 = vcvt.s32.f32 %v1828_v54 }
 0x18f   : > { %v1673_v16 = vunpack.c.3.s8 %v1549_v45  ;;  %v2130_v0 = vpack.c.bf16 %v3958_v50, %v3956_v53  ;;  %v1925_v42 = vcvt.s32.f32 %v1669_v49  ;;  %v1630_v14 = vunpack.c.0.s8 %v1542_v20  ;;  %v1569_v49 = vld [vmem:[%s3412_s17 + $0x128] sm:$0xff] }
 0x190   : > { %v2172_v51 = vpack.c.bf16 %v1984_v37, %v1980_v36  ;;  %v2088_v63 = vcvt.s32.f32 %v1832_v52  ;;  %v1765_v37 = vunpack.c.2.s8 %v1573_v34  ;;  %v1634_v7 = vunpack.c.1.s8 %v1542_v20  ;;  %v1593_v53 = vld [vmem:[%s3412_s17 + $0x1e8] sm:$0xff] }
 0x191   : > { %v1929_v55 = vcvt.s32.f32 %v1673_v16  ;;  %v2025_v31 = vcvt.s32.f32 %v1769_v59  ;;  %v1820_v25 = vunpack.c.0.s8 %v1588_v11  ;;  %v1824_v57 = vunpack.c.1.s8 %v1588_v11 }
 0x192   : > { %2293 = vmatpush.bf16.msra.mxu0 %v2117_v39  ;;  %v1650_v39 = vunpack.c.1.s8 %v1546_v3  ;;  %2269 = vmatpush.bf16.msrb.mxu2 %v2172_v51  ;;  %v2224_v33 = vpack.c.bf16 %v2088_v63, %v2084_v38  ;;  %v2021_v51 = vcvt.s32.f32 %v1765_v37  ;;  %v3964_v27 = vcvt.s32.f32 %v1634_v7 }
 0x193   : > { %2305 = vmatpush.bf16.msra.mxu1 %v2153_v4  ;;  %v2145_v58 = vpack.c.bf16 %v1929_v55, %v1925_v42  ;;  %v1661_v4 = vunpack.c.0.s8 %v1549_v45  ;;  %v1665_v22 = vunpack.c.1.s8 %v1549_v45  ;;  %v2080_v20 = vcvt.s32.f32 %v1824_v57 }
 0x194   : > { %v3947_v15 = vcvt.s32.f32 %v1650_v39  ;;  %v2193_v39 = vpack.c.bf16 %v2025_v31, %v2021_v51  ;;  %v1761_v21 = vunpack.c.1.s8 %v1573_v34  ;;  %v1622_v17 = vunpack.c.2.s8 %v3967_v18 }
 0x195   : > { %v1917_v24 = vcvt.s32.f32 %v1661_v4  ;;  %v1921_v8 = vcvt.s32.f32 %v1665_v22  ;;  %v1722_v38 = vunpack.c.3.s8 %v3972_v44  ;;  %v1499_v55 = vperm.slane %v3922_v60, 2 }
 0x196   : > { %2294 = vmatpush.bf16.msra.mxu0 %v2113_v12  ;;  %2314 = vmatpush.bf16.msra.mxu2 %v2201_v5  ;;  %v2134_v3 = vpack.c.bf16 %v3947_v15, %v3943_v40  ;;  %v2096_v12 = vcvt.s32.f32 %v1840_v1  ;;  %v2017_v45 = vcvt.s32.f32 %v1761_v21  ;;  %v1749_v51 = vunpack.c.2.s8 %v1569_v49 }
 0x197   : > { %v1295_v48 = vpop.f32.mrf.mxu0  ;;  %2306 = vmatpush.bf16.msra.mxu1 %v2149_v10  ;;  %v3978_v10 = vcvt.s32.f32 %v1622_v17  ;;  %v3993_v42 = vcvt.s32.f32 %v1722_v38  ;;  %v1614_v57 = vunpack.c.0.s8 %v3967_v18  ;;  %v4024_v38 = vld [vmem:[%s3412_s17 + $0x180] sm:$0xff] }
 0x198   : > { %v1308_v35 = vpop.f32.mrf.mxu1  ;;  %v2228_v56 = vpack.c.bf16 %v2096_v12, %v2092_v28  ;;  %v1757_v28 = vunpack.c.0.s8 %v1573_v34  ;;  %v2141_v34 = vpack.c.bf16 %v1921_v8, %v1917_v24  ;;  %v4010_v24 = vld [vmem:[%s3412_s17 + $0x10] sm:$0xff]  ;;  %v1796_v46 = vunpack.c.2.s8 %v4024_v38 }
 0x199   : > { %v3945_v2 = vadd.f32 %v1308_v35, %v1295_v48  ;;  %v3962_v48 = vcvt.s32.f32 %v1630_v14  ;;  %v2076_v35 = vcvt.s32.f32 %v1820_v25  ;;  %v1514_v14 = vperm.slane %v3928_v23, 2 }
 0x19a   : > { %2295 = vmatpush.bf16.msra.mxu0 %v2109_v19  ;;  %2276 = vmatpush.bf16.msrb.mxu3 %v2228_v56  ;;  %v2197_v19 = vpack.c.bf16 %v2033_v47, %v2029_v6  ;;  %v2013_v30 = vcvt.s32.f32 %v1757_v28  ;;  %v1626_v56 = vunpack.c.3.s8 %v3967_v18  ;;  %v1584_v6 = vld [vmem:[%s3412_s17 + $0x1a0] sm:$0xff]  ;;  %v4004_v21 = vcvt.s32.f32 %v1614_v57 }
 0x19b   : > { %2307 = vmatpush.bf16.msra.mxu1 %v2145_v58  ;;  %v2126_v1 = vpack.c.bf16 %v3964_v27, %v3962_v48  ;;  %v2220_v29 = vpack.c.bf16 %v2080_v20, %v2076_v35  ;;  %v1812_v63 = vunpack.c.2.s8 %v1584_v6  ;;  %v1816_v37 = vunpack.c.3.s8 %v1584_v6 }
 0x19c   : > { %2315 = vmatpush.bf16.msra.mxu2 %v2197_v19  ;;  %v3983_v19 = vcvt.s32.f32 %v1626_v56  ;;  %v1753_v58 = vunpack.c.3.s8 %v1569_v49 }
 0x19e   : > { %2277 = vmatpush.bf16.msrb.mxu3 %v2224_v33  ;;  %v2122_v59 = vpack.c.bf16 %v3983_v19, %v3978_v10  ;;  %v2068_v33 = vcvt.s32.f32 %v1812_v63  ;;  %v2009_v28 = vcvt.s32.f32 %v1753_v58  ;;  %v1610_v63 = vunpack.c.3.s8 %v4010_v24 }
 0x19f   : > { %v1297_v32 = vpop.f32.mrf.mxu0  ;;  %2308 = vmatpush.bf16.msra.mxu1 %v2141_v34  ;;  %v1837_v10 = vunpack.c.0.s8 %v1593_v53 }
 0x1a0   : > { %v1310_v36 = vpop.f32.mrf.mxu1  ;;  %2316 = vmatpush.bf16.msra.mxu2 %v2193_v39  ;;  %v2189_v32 = vpack.c.bf16 %v2017_v45, %v2013_v30  ;;  %v1618_v39 = vunpack.c.1.s8 %v3967_v18  ;;  %v1558_v30 = vld [vmem:[%s3412_s17 + $0xd0] sm:$0xff]  ;;  %v4037_v58 = vcvt.s32.f32 %v1610_v63 }
 0x1a2   : > { %2278 = vmatpush.bf16.msrb.mxu3 %v2220_v29  ;;  %v1808_v29 = vunpack.c.1.s8 %v1584_v6 }
 0x1a4   : > { %2317 = vmatpush.bf16.msra.mxu2 %v2189_v32  ;;  %v2064_v34 = vcvt.s32.f32 %v1808_v29  ;;  %v1606_v32 = vunpack.c.2.s8 %v4010_v24  ;;  %v1598_v29 = vunpack.c.0.s8 %v4010_v24 }
 0x1a5   : > { %v1321_v5 = vpop.f32.mrf.mxu2 }
 0x1a6   : > { %v1322_v11 = vadd.f32 %v1321_v5, %v3945_v2  ;;  %v1334_v12 = vpop.f32.mrf.mxu3  ;;  %v1718_v2 = vunpack.c.2.s8 %v3972_v44  ;;  %v2005_v5 = vcvt.s32.f32 %v1749_v51  ;;  %v1706_v51 = vunpack.c.3.s8 %v1558_v30 }
 0x1a7   : > { %v1347_v9 = vpop.f32.mrf.mxu0 }
 0x1a8   : > { %v1335_v47 = vadd.f32 %v1334_v12, %v1322_v11  ;;  %v1360_v54 = vpop.f32.mrf.mxu1  ;;  %v3989_v36 = vcvt.s32.f32 %v1718_v2  ;;  %v4006_v11 = vcvt.s32.f32 %v1618_v39  ;;  %v1714_v12 = vunpack.c.1.s8 %v3972_v44 }
 0x1a9   : > { %v3981_v52 = vadd.f32 %v1360_v54, %v1347_v9  ;;  %v1804_v9 = vunpack.c.0.s8 %v1584_v6  ;;  %v2185_v45 = vpack.c.bf16 %v2009_v28, %v2005_v5  ;;  %v1745_v2 = vunpack.c.1.s8 %v1569_v49 }
 0x1aa   : > { %v1505_v16 = vmul.f32 %v1497_v13, %v1335_v47  ;;  %v2072_v13 = vcvt.s32.f32 %v1816_v37  ;;  %v2170_v25 = vpack.c.bf16 %v3993_v42, %v3989_v36  ;;  %v2118_v56 = vpack.c.bf16 %v4006_v11, %v4004_v21  ;;  %v4149_v11 = vld [vmem:[%s3412_s17 + $0x90] sm:$0xff] }
 0x1ab   : > { %v4019_v47 = vcvt.s32.f32 %v1714_v12  ;;  %v2060_v54 = vcvt.s32.f32 %v1804_v9  ;;  %2318 = vmatpush.bf16.msra.mxu2 %v2185_v45  ;;  %v1702_v37 = vunpack.c.2.s8 %v1558_v30  ;;  %v4057_v45 = vld [vmem:[%s3412_s17 + $0x78] sm:$0xff] }
 0x1ac   : > { %v1520_v7 = vadd.f32 %v1512_v61, %v1505_v16  ;;  %v2216_v22 = vpack.c.bf16 %v2072_v13, %v2068_v33  ;;  %v1710_v61 = vunpack.c.0.s8 %v3972_v44  ;;  %v1741_v44 = vunpack.c.0.s8 %v1569_v49 }
 0x1ad   : > { %v1323_v31 = vpop.f32.mrf.mxu2  ;;  %v2212_v33 = vpack.c.bf16 %v2064_v34, %v2060_v54  ;;  %v2001_v49 = vcvt.s32.f32 %v1745_v2  ;;  %v4035_v13 = vcvt.s32.f32 %v1606_v32  ;;  %v4039_v41 = vcvt.s32.f32 %v1702_v37 }
 0x1ae   : > { %v1524_v35 = vmax.f32 %v1520_v7, 0.0  ;;  %v1336_v4 = vpop.f32.mrf.mxu3  ;;  %2279 = vmatpush.bf16.msrb.mxu3 %v2216_v22  ;;  %v4014_v17 = vcvt.s32.f32 %v1710_v61  ;;  %v1997_v16 = vcvt.s32.f32 %v1741_v44  ;;  %v4033_v7 = vld [vmem:[%s3412_s17 + $0x108] sm:$0xff]  ;;  %v2052_v61 = vcvt.s32.f32 %v1796_v46 }
 0x1af   : > { %v1349_v20 = vpop.f32.mrf.mxu0  ;;  %v4044_v4 = vcvt.s32.f32 %v1706_v51  ;;  %v1733_v22 = vunpack.c.2.s8 %v4033_v7  ;;  %v2114_v5 = vpack.c.bf16 %v4037_v58, %v4035_v13  ;;  %v1737_v28 = vunpack.c.3.s8 %v4033_v7 }
 0x1b0   : > { %v4012_v8 = vpack.c.bf16 %v1524_v35, %v1524_v35  ;;  %v1362_v18 = vpop.f32.mrf.mxu1  ;;  %v2166_v6 = vpack.c.bf16 %v4019_v47, %v4014_v17  ;;  %v2181_v35 = vpack.c.bf16 %v2001_v49, %v1997_v16  ;;  %v1602_v44 = vunpack.c.1.s8 %v4010_v24 }
 0x1b1   : > { %v2162_v18 = vpack.c.bf16 %v4044_v4, %v4039_v41  ;;  %v1989_v9 = vcvt.s32.f32 %v1733_v22  ;;  %v1694_v54 = vunpack.c.0.s8 %v1558_v30  ;;  %v4064_v32 = vcvt.s32.f32 %v1598_v29 }
 0x1b2   : > { %2244 = vmatmul.bf16.vlgmr.msrb.gmra.mxu0 %v4012_v8  ;;  %2280 = vmatpush.bf16.msrb.mxu3 %v2212_v33  ;;  %v1698_v16 = vunpack.c.1.s8 %v1558_v30  ;;  %v4069_v37 = vcvt.s32.f32 %v1602_v44  ;;  %v1655_v33 = vunpack.c.2.s8 %v4057_v45  ;;  %v1659_v30 = vunpack.c.3.s8 %v4057_v45 }
 0x1b3   : > { %2340 = vmatpush.bf16.msrb.mxu0 %v2138_v26  ;;  %v1800_v26 = vunpack.c.3.s8 %v4024_v38  ;;  %2319 = vmatpush.bf16.msra.mxu2 %v2181_v35  ;;  %v4071_v24 = vcvt.s32.f32 %v1694_v54  ;;  %v1788_v51 = vunpack.c.0.s8 %v4024_v38  ;;  %v1792_v46 = vunpack.c.1.s8 %v4024_v38 }
 0x1b4   : > { %v4076_v49 = vcvt.s32.f32 %v1698_v16  ;;  %v4092_v22 = vcvt.s32.f32 %v1659_v30  ;;  %v1647_v30 = vunpack.c.0.s8 %v4057_v45  ;;  %v1674_v41 = vunpack.c.3.s8 %v4149_v11 }
 0x1b5   : > { %v1373_v31 = vpop.f32.mrf.mxu2  ;;  %v2056_v20 = vcvt.s32.f32 %v1800_v26  ;;  %v1725_v26 = vunpack.c.0.s8 %v4033_v7 }
 0x1b6   : > { %v1374_v57 = vadd.f32 %v1373_v31, %v3981_v52  ;;  %v1386_v39 = vpop.f32.mrf.mxu3  ;;  %v4083_v31 = vcvt.s32.f32 %v1655_v33  ;;  %v2158_v35 = vpack.c.bf16 %v4076_v49, %v4071_v24  ;;  %v1539_v49 = vld [vmem:[%s3412_s17 + $0x38] sm:$0xff] }
 0x1b7   : > { %2341 = vmatpush.bf16.msrb.mxu0 %v2134_v3  ;;  %v2208_v15 = vpack.c.bf16 %v2056_v20, %v2052_v61  ;;  %v1993_v3 = vcvt.s32.f32 %v1737_v28  ;;  %v2044_v61 = vcvt.s32.f32 %v1788_v51  ;;  %v2048_v20 = vcvt.s32.f32 %v1792_v46 }
 0x1b8   : > { %v1387_v52 = vadd.f32 %v1386_v39, %v1374_v57  ;;  %v1729_v28 = vunpack.c.1.s8 %v4033_v7  ;;  %v1981_v38 = vcvt.s32.f32 %v1725_v26  ;;  %v1651_v51 = vunpack.c.1.s8 %v4057_v45 }
 0x1b9   : > { %v1399_v12 = vpop.f32.mrf.mxu0  ;;  %2281 = vmatpush.bf16.msrb.mxu3 %v2208_v15  ;;  %v2177_v63 = vpack.c.bf16 %v1993_v3, %v1989_v9  ;;  %v1849_v15 = vunpack.c.3.s8 %v1593_v53  ;;  %v2204_v54 = vpack.c.bf16 %v2048_v20, %v2044_v61  ;;  %v2093_v20 = vcvt.s32.f32 %v1837_v10 }
 0x1ba   : > { %v1506_v34 = vmul.f32 %v1498_v43, %v1387_v52  ;;  %v1845_v52 = vunpack.c.2.s8 %v1593_v53  ;;  %v4127_v42 = vcvt.s32.f32 %v1651_v51  ;;  %v4184_v10 = vcvt.s32.f32 %v1674_v41 }
 0x1bb   : > { %2342 = vmatpush.bf16.msrb.mxu0 %v2130_v0  ;;  %2320 = vmatpush.bf16.msra.mxu2 %v2177_v63  ;;  %v2110_v0 = vpack.c.bf16 %v4069_v37, %v4064_v32  ;;  %v1515_v41 = vperm.slane %v3928_v23, 3 }
 0x1bc   : > { %v1412_v40 = vpop.f32.mrf.mxu1  ;;  %v1521_v43 = vadd.f32 %v1513_v62, %v1506_v34  ;;  %v4088_v62 = vld [vmem:[%s3412_s17 + $0xb0] sm:$0xff]  ;;  %v1985_v34 = vcvt.s32.f32 %v1729_v28  ;;  %v2101_v48 = vcvt.s32.f32 %v1845_v52 }
 0x1bd   : > { %v4062_v2 = vadd.f32 %v1412_v40, %v1399_v12  ;;  %v1375_v50 = vpop.f32.mrf.mxu2  ;;  %v1578_v12 = vld [vmem:[%s3412_s17 + $0x170] sm:$0xff]  ;;  %v2139_v40 = vpack.c.bf16 %v4092_v22, %v4083_v31  ;;  %v1686_v3 = vunpack.c.2.s8 %v4088_v62  ;;  %v1690_v27 = vunpack.c.3.s8 %v4088_v62  ;;  %2282 = vmatpush.bf16.msrb.mxu3 %v2204_v54 }
 0x1be   : > { %v1525_v57 = vmax.f32 %v1521_v43, 0.0  ;;  %v1388_v39 = vpop.f32.mrf.mxu3  ;;  %v1782_v16 = vunpack.c.2.s8 %v1578_v12  ;;  %v1786_v63 = vunpack.c.3.s8 %v1578_v12  ;;  %v2173_v33 = vpack.c.bf16 %v1985_v34, %v1981_v38 }
 0x1bf   : > { %2343 = vmatpush.bf16.msrb.mxu0 %v2126_v1  ;;  %v2105_v1 = vcvt.s32.f32 %v1849_v15  ;;  %v4107_v7 = vcvt.s32.f32 %v1686_v3  ;;  %v4115_v43 = vcvt.s32.f32 %v1690_v27  ;;  %v1678_v28 = vunpack.c.0.s8 %v4088_v62  ;;  %v1574_v27 = vld [vmem:[%s3412_s17 + $0x150] sm:$0xff] }
 0x1c0   : > { %v4099_v9 = vpack.c.bf16 %v1525_v57, %v1525_v57  ;;  %v4119_v46 = vcvt.s32.f32 %v1782_v16  ;;  %v4121_v26 = vcvt.s32.f32 %v1786_v63  ;;  %2321 = vmatpush.bf16.msra.mxu2 %v2173_v33  ;;  %v1543_v57 = vld [vmem:[%s3412_s17 + $0x58] sm:$0xff]  ;;  %v1682_v38 = vunpack.c.1.s8 %v4088_v62 }
 0x1c1   : > { %v1401_v29 = vpop.f32.mrf.mxu0  ;;  %v2233_v50 = vpack.c.bf16 %v2105_v1, %v2101_v48  ;;  %v2154_v36 = vpack.c.bf16 %v4115_v43, %v4107_v7  ;;  %v1774_v52 = vunpack.c.0.s8 %v1578_v12  ;;  %v4146_v3 = vcvt.s32.f32 %v1678_v28 }
 0x1c2   : > { %2257 = vmatmul.bf16.vlgmr.msrb.gmra.mxu1 %v4099_v9  ;;  %2296 = vmatmul.bf16.vlgmr.msra.gmra.mxu0 %v4012_v8  ;;  %v2202_v61 = vpack.c.bf16 %v4121_v26, %v4119_v46  ;;  %v4144_v29 = vld [vmem:[%s3412_s17 + $0x1c8] sm:$0xff]  ;;  %v1639_v21 = vunpack.c.2.s8 %v1543_v57  ;;  %v4151_v17 = vcvt.s32.f32 %v1682_v38  ;;  %v1670_v16 = vunpack.c.2.s8 %v4149_v11 }
 0x1c3   : > { %2344 = vmatpush.bf16.msrb.mxu0 %v2122_v59  ;;  %2353 = vmatpush.bf16.msrb.mxu1 %v2170_v25  ;;  %v4125_v59 = vcvt.s32.f32 %v1647_v30  ;;  %v1841_v25 = vunpack.c.1.s8 %v1593_v53  ;;  %v4153_v47 = vcvt.s32.f32 %v1774_v52  ;;  %v1829_v48 = vunpack.c.2.s8 %v4144_v29  ;;  %v1563_v52 = vld [vmem:[%s3412_s17 + $0xf8] sm:$0xff] }
 0x1c4   : > { %v1414_v44 = vpop.f32.mrf.mxu1  ;;  %2327 = vmatpush.bf16.msra.mxu3 %v2233_v50  ;;  %v4159_v34 = vcvt.s32.f32 %v1639_v21  ;;  %v4182_v33 = vcvt.s32.f32 %v1670_v16  ;;  %v1766_v30 = vunpack.c.2.s8 %v1574_v27  ;;  %v1666_v22 = vunpack.c.1.s8 %v4149_v11  ;;  %v1570_v16 = vld [vmem:[%s3412_s17 + $0x130] sm:$0xff] }
 0x1c5   : > { %v2097_v53 = vcvt.s32.f32 %v1841_v25  ;;  %v1778_v44 = vunpack.c.1.s8 %v1578_v12  ;;  %v2150_v12 = vpack.c.bf16 %v4151_v17, %v4146_v3  ;;  %v2085_v58 = vcvt.s32.f32 %v1829_v48 }
 0x1c6   : > { %v1425_v19 = vpop.f32.mrf.mxu2  ;;  %v2146_v32 = vpack.c.bf16 %v4184_v10, %v4182_v33  ;;  %v1762_v38 = vunpack.c.1.s8 %v1574_v27  ;;  %v1623_v21 = vunpack.c.2.s8 %v1539_v49  ;;  %v1627_v43 = vunpack.c.3.s8 %v1539_v49 }
 0x1c7   : > { %v1426_v45 = vadd.f32 %v1425_v19, %v4062_v2  ;;  %v1438_v39 = vpop.f32.mrf.mxu3  ;;  %2345 = vmatpush.bf16.msrb.mxu0 %v2118_v56  ;;  %2354 = vmatpush.bf16.msrb.mxu1 %v2166_v6  ;;  %v2135_v2 = vpack.c.bf16 %v4127_v42, %v4125_v59  ;;  %v2229_v56 = vpack.c.bf16 %v2097_v53, %v2093_v20  ;;  %v1643_v6 = vunpack.c.3.s8 %v1543_v57 }
 0x1c8   : > { %v4157_v54 = vcvt.s32.f32 %v1778_v44  ;;  %v1631_v19 = vunpack.c.0.s8 %v1543_v57  ;;  %v1821_v20 = vunpack.c.0.s8 %v4144_v29  ;;  %v1662_v53 = vunpack.c.0.s8 %v4149_v11 }
 0x1c9   : > { %v1439_v15 = vadd.f32 %v1438_v39, %v1426_v45  ;;  %v4171_v1 = vcvt.s32.f32 %v1643_v6  ;;  %2328 = vmatpush.bf16.msra.mxu3 %v2229_v56  ;;  %v4192_v45 = vcvt.s32.f32 %v1766_v30  ;;  %v1635_v39 = vunpack.c.1.s8 %v1543_v57 }
 0x1ca   : > { %v2198_v13 = vpack.c.bf16 %v4157_v54, %v4153_v47  ;;  %v4204_v24 = vcvt.s32.f32 %v1631_v19  ;;  %v2077_v57 = vcvt.s32.f32 %v1821_v20  ;;  %v4220_v44 = vcvt.s32.f32 %v1662_v53  ;;  %v4254_v20 = vld [vmem:[%s3412_s17 + $0xd8] sm:$0xff] }
 0x1cb   : > { %v1507_v62 = vmul.f32 %v1499_v55, %v1439_v15  ;;  %2346 = vmatpush.bf16.msrb.mxu0 %v2114_v5  ;;  %2355 = vmatpush.bf16.msrb.mxu1 %v2162_v18  ;;  %v1833_v55 = vunpack.c.3.s8 %v4144_v29  ;;  %v2131_v5 = vpack.c.bf16 %v4171_v1, %v4159_v34  ;;  %v1922_v11 = vcvt.s32.f32 %v1666_v22  ;;  %v4251_v1 = vld [vmem:[%s3412_s17 + $0x18] sm:$0xff] }
 0x1cc   : > { %v4230_v7 = vcvt.s32.f32 %v1762_v38  ;;  %v1719_v48 = vunpack.c.2.s8 %v1563_v52  ;;  %v1883_v59 = vcvt.s32.f32 %v1627_v43  ;;  %v1500_v42 = vperm.slane %v3922_v60, 3 }
 0x1cd   : > { %v1522_v63 = vadd.f32 %v1514_v14, %v1507_v62  ;;  %v2089_v18 = vcvt.s32.f32 %v1833_v55  ;;  %v1770_v14 = vunpack.c.3.s8 %v1574_v27  ;;  %v1879_v62 = vcvt.s32.f32 %v1623_v21  ;;  %v1585_v55 = vld [vmem:[%s3412_s17 + $0x1a8] sm:$0xff] }
 0x1ce   : > { %v1427_v4 = vpop.f32.mrf.mxu2  ;;  %v2142_v46 = vpack.c.bf16 %v1922_v11, %v4220_v44  ;;  %v1817_v33 = vunpack.c.3.s8 %v1585_v55  ;;  %v1750_v30 = vunpack.c.2.s8 %v1570_v16  ;;  %v1754_v17 = vunpack.c.3.s8 %v1570_v16  ;;  %v1566_v44 = vld [vmem:[%s3412_s17 + $0x110] sm:$0xff] }
 0x1cf   : > { %v1526_v51 = vmax.f32 %v1522_v63, 0.0  ;;  %v1440_v50 = vpop.f32.mrf.mxu3  ;;  %2347 = vmatpush.bf16.msrb.mxu0 %v2110_v0  ;;  %2356 = vmatpush.bf16.msrb.mxu1 %v2158_v35  ;;  %v2225_v25 = vpack.c.bf16 %v2089_v18, %v2085_v58  ;;  %v4202_v37 = vcvt.s32.f32 %v1770_v14  ;;  %v1891_v0 = vcvt.s32.f32 %v1635_v39 }
 0x1d0   : > { %v1825_v35 = vunpack.c.1.s8 %v4144_v29  ;;  %v2123_v4 = vpack.c.bf16 %v1883_v59, %v1879_v62  ;;  %v1813_v18 = vunpack.c.2.s8 %v1585_v55  ;;  %v2073_v10 = vcvt.s32.f32 %v1817_v33 }
 0x1d1   : > { %v4195_v28 = vpack.c.bf16 %v1526_v51, %v1526_v51  ;;  %2329 = vmatpush.bf16.msra.mxu3 %v2225_v25  ;;  %v2194_v31 = vpack.c.bf16 %v4202_v37, %v4192_v45  ;;  %v2127_v29 = vpack.c.bf16 %v1891_v0, %v4204_v24  ;;  %v1619_v51 = vunpack.c.1.s8 %v1539_v49 }
 0x1d2   : > { %2309 = vmatmul.bf16.vlgmr.msra.gmra.mxu1 %v4099_v9  ;;  %2348 = vmatmul.bf16.vlgmr.msrb.gmra.mxu0 %v4012_v8  ;;  %v2081_v15 = vcvt.s32.f32 %v1825_v35  ;;  %v2069_v50 = vcvt.s32.f32 %v1813_v18  ;;  %v2006_v14 = vcvt.s32.f32 %v1750_v30  ;;  %v1711_v19 = vunpack.c.0.s8 %v1563_v52 }
 0x1d3   : > { %2392 = vmatpush.bf16.msra.mxu0 %v2139_v40  ;;  %2270 = vmatmul.bf16.vlgmr.msrb.gmra.mxu2 %v4195_v28  ;;  %v1758_v40 = vunpack.c.0.s8 %v1574_v27  ;;  %v1723_v27 = vunpack.c.3.s8 %v1563_v52  ;;  %v2010_v47 = vcvt.s32.f32 %v1754_v17  ;;  %v1715_v34 = vunpack.c.1.s8 %v1563_v52 }
 0x1d4   : > { %2357 = vmatpush.bf16.msrb.mxu1 %v2154_v36  ;;  %2366 = vmatpush.bf16.msrb.mxu2 %v2202_v61  ;;  %v2221_v6 = vpack.c.bf16 %v2081_v15, %v2077_v57  ;;  %v1967_v25 = vcvt.s32.f32 %v1711_v19  ;;  %v1805_v45 = vunpack.c.0.s8 %v1585_v55  ;;  %v1809_v39 = vunpack.c.1.s8 %v1585_v55  ;;  %v1594_v19 = vld [vmem:[%s3412_s17 + $0x1f0] sm:$0xff] }
 0x1d5   : > { %v4228_v56 = vcvt.s32.f32 %v1758_v40  ;;  %v1979_v58 = vcvt.s32.f32 %v1723_v27  ;;  %v2186_v24 = vpack.c.bf16 %v2010_v47, %v2006_v14  ;;  %v1742_v0 = vunpack.c.0.s8 %v1570_v16  ;;  %v1581_v40 = vld [vmem:[%s3412_s17 + $0x188] sm:$0xff] }
 0x1d6   : > { %2330 = vmatpush.bf16.msra.mxu3 %v2221_v6  ;;  %v2061_v57 = vcvt.s32.f32 %v1805_v45  ;;  %v2065_v53 = vcvt.s32.f32 %v1809_v39  ;;  %v1746_v22 = vunpack.c.1.s8 %v1570_v16  ;;  %v1703_v15 = vunpack.c.2.s8 %v4254_v20  ;;  %v1555_v39 = vld [vmem:[%s3412_s17 + $0xb8] sm:$0xff] }
 0x1d7   : > { %2393 = vmatpush.bf16.msra.mxu0 %v2135_v2  ;;  %v2190_v26 = vpack.c.bf16 %v4230_v7, %v4228_v56  ;;  %v1975_v2 = vcvt.s32.f32 %v1719_v48  ;;  %v1998_v52 = vcvt.s32.f32 %v1742_v0  ;;  %v1707_v7 = vunpack.c.3.s8 %v4254_v20 }
 0x1d8   : > { %2358 = vmatpush.bf16.msrb.mxu1 %v2150_v12  ;;  %2367 = vmatpush.bf16.msrb.mxu2 %v2198_v13  ;;  %v1615_v12 = vunpack.c.0.s8 %v1539_v49  ;;  %v1875_v13 = vcvt.s32.f32 %v1619_v51  ;;  %v2213_v21 = vpack.c.bf16 %v2065_v53, %v2061_v57  ;;  %v2002_v11 = vcvt.s32.f32 %v1746_v22 }
 0x1d9   : > { %v1451_v36 = vpop.f32.mrf.mxu0  ;;  %v2171_v3 = vpack.c.bf16 %v1979_v58, %v1975_v2  ;;  %v1797_v6 = vunpack.c.2.s8 %v1581_v40  ;;  %v1801_v62 = vunpack.c.3.s8 %v1581_v40  ;;  %v1963_v55 = vcvt.s32.f32 %v1707_v7 }
 0x1da   : > { %v1464_v63 = vpop.f32.mrf.mxu1  ;;  %v1871_v54 = vcvt.s32.f32 %v1615_v12  ;;  %v2182_v27 = vpack.c.bf16 %v2002_v11, %v1998_v52  ;;  %v1734_v16 = vunpack.c.2.s8 %v1566_v44  ;;  %v1599_v30 = vunpack.c.0.s8 %v4251_v1 }
 0x1db   : > { %v4238_v61 = vadd.f32 %v1464_v63, %v1451_v36  ;;  %2394 = vmatpush.bf16.msra.mxu0 %v2131_v5  ;;  %v2217_v5 = vpack.c.bf16 %v2073_v10, %v2069_v50  ;;  %v1959_v36 = vcvt.s32.f32 %v1703_v15  ;;  %v1738_v63 = vunpack.c.3.s8 %v1566_v44 }
 0x1dc   : > { %2359 = vmatpush.bf16.msrb.mxu1 %v2146_v32  ;;  %2368 = vmatpush.bf16.msrb.mxu2 %v2194_v31  ;;  %v2119_v49 = vpack.c.bf16 %v1875_v13, %v1871_v54  ;;  %v1971_v32 = vcvt.s32.f32 %v1715_v34  ;;  %v1607_v31 = vunpack.c.2.s8 %v4251_v1  ;;  %v2053_v2 = vcvt.s32.f32 %v1797_v6  ;;  %v1590_v6 = vld [vmem:[%s3412_s17 + $0x1d0] sm:$0xff] }
 0x1dd   : > { %2331 = vmatpush.bf16.msra.mxu3 %v2217_v5  ;;  %v2057_v58 = vcvt.s32.f32 %v1801_v62  ;;  %v1990_v18 = vcvt.s32.f32 %v1734_v16  ;;  %v1994_v33 = vcvt.s32.f32 %v1738_v63  ;;  %v1603_v12 = vunpack.c.1.s8 %v4251_v1 }
 0x1de   : > { %v2167_v38 = vpack.c.bf16 %v1971_v32, %v1967_v25  ;;  %v1863_v56 = vcvt.s32.f32 %v1607_v31  ;;  %v1855_v50 = vcvt.s32.f32 %v1599_v30  ;;  %v1699_v10 = vunpack.c.1.s8 %v4254_v20 }
 0x1df   : > { %2395 = vmatpush.bf16.msra.mxu0 %v2127_v29  ;;  %v1611_v29 = vunpack.c.3.s8 %v4251_v1  ;;  %v2209_v17 = vpack.c.bf16 %v2057_v58, %v2053_v2  ;;  %v2178_v51 = vpack.c.bf16 %v1994_v33, %v1990_v18  ;;  %v1789_v14 = vunpack.c.0.s8 %v1581_v40  ;;  %v1575_v33 = vld [vmem:[%s3412_s17 + $0x158] sm:$0xff] }
 0x1e0   : > { %2360 = vmatpush.bf16.msrb.mxu1 %v2142_v46  ;;  %2369 = vmatpush.bf16.msrb.mxu2 %v2190_v26  ;;  %v1859_v54 = vcvt.s32.f32 %v1603_v12  ;;  %v1793_v34 = vunpack.c.1.s8 %v1581_v40  ;;  %v1955_v1 = vcvt.s32.f32 %v1699_v10  ;;  %v1726_v25 = vunpack.c.0.s8 %v1566_v44 }
 0x1e1   : > { %v1453_v37 = vpop.f32.mrf.mxu0  ;;  %v1867_v43 = vcvt.s32.f32 %v1611_v29  ;;  %2332 = vmatpush.bf16.msra.mxu3 %v2213_v21  ;;  %v2045_v5 = vcvt.s32.f32 %v1789_v14  ;;  %v1730_v45 = vunpack.c.1.s8 %v1566_v44  ;;  %v1846_v60 = vunpack.c.2.s8 %v1594_v19 }
 0x1e2   : > { %v1466_v35 = vpop.f32.mrf.mxu1  ;;  %v2111_v37 = vpack.c.bf16 %v1859_v54, %v1855_v50  ;;  %v1982_v0 = vcvt.s32.f32 %v1726_v25  ;;  %v1850_v57 = vunpack.c.3.s8 %v1594_v19  ;;  %v1691_v52 = vunpack.c.3.s8 %v1555_v39 }
 0x1e3   : > { %2396 = vmatpush.bf16.msra.mxu0 %v2123_v4  ;;  %2322 = vmatmul.bf16.vlgmr.msra.gmra.mxu2 %v4195_v28  ;;  %v2115_v59 = vpack.c.bf16 %v1867_v43, %v1863_v56  ;;  %v2163_v4 = vpack.c.bf16 %v1963_v55, %v1959_v36  ;;  %v1986_v35 = vcvt.s32.f32 %v1730_v45  ;;  %v2102_v40 = vcvt.s32.f32 %v1846_v60 }
 0x1e4   : > { %2405 = vmatpush.bf16.msra.mxu1 %v2171_v3  ;;  %2370 = vmatpush.bf16.msrb.mxu2 %v2186_v24  ;;  %v2049_v24 = vcvt.s32.f32 %v1793_v34  ;;  %v1838_v11 = vunpack.c.0.s8 %v1594_v19  ;;  %v1947_v7 = vcvt.s32.f32 %v1691_v52  ;;  %v1842_v36 = vunpack.c.1.s8 %v1594_v19 }
 0x1e5   : > { %2361 = vmatmul.bf16.vlgmr.msrb.gmra.mxu1 %v4099_v9  ;;  %2333 = vmatpush.bf16.msra.mxu3 %v2209_v17  ;;  %v2174_v23 = vpack.c.bf16 %v1986_v35, %v1982_v0  ;;  %v1683_v55 = vunpack.c.1.s8 %v1555_v39  ;;  %v1830_v18 = vunpack.c.2.s8 %v1590_v6  ;;  %v1834_v17 = vunpack.c.3.s8 %v1590_v6 }
 0x1e6   : > { %v1477_v48 = vpop.f32.mrf.mxu2  ;;  %v2205_v31 = vpack.c.bf16 %v2049_v24, %v2045_v5  ;;  %v2098_v63 = vcvt.s32.f32 %v1842_v36  ;;  %v1767_v19 = vunpack.c.2.s8 %v1575_v33  ;;  %v1822_v34 = vunpack.c.0.s8 %v1590_v6 }
 0x1e7   : > { %v1478_v46 = vadd.f32 %v1477_v48, %v4238_v61  ;;  %v1490_v26 = vpop.f32.mrf.mxu3  ;;  %2397 = vmatpush.bf16.msra.mxu0 %v2119_v49  ;;  %v1695_v61 = vunpack.c.0.s8 %v4254_v20  ;;  %v2094_v48 = vcvt.s32.f32 %v1838_v11  ;;  %v2090_v14 = vcvt.s32.f32 %v1834_v17  ;;  %v1595_v17 = vld [vmem:[%s3412_s17 + $0x1f8] sm:$0xff] }
 0x1e8   : > { %2406 = vmatpush.bf16.msra.mxu1 %v2167_v38  ;;  %2371 = vmatpush.bf16.msrb.mxu2 %v2182_v27  ;;  %v1687_v38 = vunpack.c.2.s8 %v1555_v39  ;;  %v1679_v27 = vunpack.c.0.s8 %v1555_v39  ;;  %v2023_v25 = vcvt.s32.f32 %v1767_v19  ;;  %v2078_v24 = vcvt.s32.f32 %v1822_v34 }
 0x1e9   : > { %v1491_v3 = vadd.f32 %v1490_v26, %v1478_v46  ;;  %v1951_v13 = vcvt.s32.f32 %v1695_v61  ;;  %2334 = vmatpush.bf16.msra.mxu3 %v2205_v31  ;;  %v2230_v30 = vpack.c.bf16 %v2098_v63, %v2094_v48  ;;  %v2086_v61 = vcvt.s32.f32 %v1830_v18 }
 0x1ea   : > { %v1943_v44 = vcvt.s32.f32 %v1687_v38  ;;  %v1935_v58 = vcvt.s32.f32 %v1679_v27  ;;  %v1759_v35 = vunpack.c.0.s8 %v1575_v33  ;;  %v1847_v19 = vunpack.c.2.s8 %v1595_v17 }
 0x1eb   : > { %v1508_v47 = vmul.f32 %v1500_v42, %v1491_v3  ;;  %2398 = vmatpush.bf16.msra.mxu0 %v2115_v59  ;;  %v1579_v42 = vld [vmem:[%s3412_s17 + $0x178] sm:$0xff]  ;;  %v2159_v32 = vpack.c.bf16 %v1955_v1, %v1951_v13  ;;  %v1826_v1 = vunpack.c.1.s8 %v1590_v6  ;;  %v2226_v5 = vpack.c.bf16 %v2090_v14, %v2086_v61 }
 0x1ec   : > { %2407 = vmatpush.bf16.msra.mxu1 %v2163_v4  ;;  %2372 = vmatpush.bf16.msrb.mxu2 %v2178_v51  ;;  %v1783_v29 = vunpack.c.2.s8 %v1579_v42  ;;  %v1787_v21 = vunpack.c.3.s8 %v1579_v42  ;;  %v2155_v16 = vpack.c.bf16 %v1947_v7, %v1943_v44  ;;  %v1775_v46 = vunpack.c.0.s8 %v1579_v42  ;;  %v1551_v59 = vld [vmem:[%s3412_s17 + $0x98] sm:$0xff] }
 0x1ed   : > { %v1523_v20 = vadd.f32 %v1515_v41, %v1508_v47  ;;  %v2106_v41 = vcvt.s32.f32 %v1850_v57  ;;  %v1779_v26 = vunpack.c.1.s8 %v1579_v42  ;;  %v1939_v4 = vcvt.s32.f32 %v1683_v55 }
 0x1ee   : > { %v1479_v49 = vpop.f32.mrf.mxu2  ;;  %v2039_v43 = vcvt.s32.f32 %v1783_v29  ;;  %v2043_v62 = vcvt.s32.f32 %v1787_v21  ;;  %v1671_v51 = vunpack.c.2.s8 %v1551_v59  ;;  %v1675_v50 = vunpack.c.3.s8 %v1551_v59 }
 0x1ef   : > { %v1527_v53 = vmax.f32 %v1523_v20, 0.0  ;;  %v1492_v22 = vpop.f32.mrf.mxu3  ;;  %2399 = vmatpush.bf16.msra.mxu0 %v2111_v37  ;;  %v2234_v56 = vpack.c.bf16 %v2106_v41, %v2102_v40  ;;  %v2035_v3 = vcvt.s32.f32 %v1779_v26  ;;  %v2151_v12 = vpack.c.bf16 %v1939_v4, %v1935_v58  ;;  %v1586_v20 = vld [vmem:[%s3412_s17 + $0x1b0] sm:$0xff]  ;;  %v1571_v49 = vld [vmem:[%s3412_s17 + $0x138] sm:$0xff] }
 0x1f0   : > { %2408 = vmatpush.bf16.msra.mxu1 %v2159_v32  ;;  %2373 = vmatpush.bf16.msrb.mxu2 %v2174_v23  ;;  %v2203_v2 = vpack.c.bf16 %v2043_v62, %v2039_v43  ;;  %v1771_v47 = vunpack.c.3.s8 %v1575_v33  ;;  %v1927_v54 = vcvt.s32.f32 %v1671_v51  ;;  %v1931_v13 = vcvt.s32.f32 %v1675_v50  ;;  %v1567_v62 = vld [vmem:[%s3412_s17 + $0x118] sm:$0xff] }
 0x1f1   : > { %v4276_v15 = vpack.c.bf16 %v1527_v53, %v1527_v53  ;;  %v1663_v39 = vunpack.c.0.s8 %v1551_v59  ;;  %v2082_v60 = vcvt.s32.f32 %v1826_v1  ;;  %v1667_v42 = vunpack.c.1.s8 %v1551_v59 }
 0x1f2   : > { %2400 = vmatmul.bf16.vlgmr.msra.gmra.mxu0 %v4012_v8  ;;  %v2031_v8 = vcvt.s32.f32 %v1775_v46  ;;  %v2027_v45 = vcvt.s32.f32 %v1771_v47  ;;  %v2147_v37 = vpack.c.bf16 %v1931_v13, %v1927_v54  ;;  %v1763_v57 = vunpack.c.1.s8 %v1575_v33 }
 0x1f3   : > { %2283 = vmatmul.bf16.vlgmr.msrb.gmra.mxu3 %v4276_v15  ;;  %2374 = vmatmul.bf16.vlgmr.msrb.gmra.mxu2 %v4195_v28  ;;  %v1919_v0 = vcvt.s32.f32 %v1663_v39  ;;  %v2222_v53 = vpack.c.bf16 %v2082_v60, %v2078_v24  ;;  %v1923_v22 = vcvt.s32.f32 %v1667_v42  ;;  %v1814_v31 = vunpack.c.2.s8 %v1586_v20  ;;  %v1591_v39 = vld [vmem:[%s3412_s17 + $0x1d8] sm:$0xff] }
 0x1f4   : > { %2379 = vmatpush.bf16.msrb.mxu3 %v2234_v56  ;;  %2409 = vmatpush.bf16.msra.mxu1 %v2155_v16  ;;  %v2199_v10 = vpack.c.bf16 %v2035_v3, %v2031_v8  ;;  %v2195_v32 = vpack.c.bf16 %v2027_v45, %v2023_v25  ;;  %v1818_v40 = vunpack.c.3.s8 %v1586_v20  ;;  %v2015_v38 = vcvt.s32.f32 %v1759_v35  ;;  %v1582_v56 = vld [vmem:[%s3412_s17 + $0x190] sm:$0xff] }
 0x1f5   : > { %2418 = vmatpush.bf16.msra.mxu2 %v2203_v2  ;;  %v2019_v23 = vcvt.s32.f32 %v1763_v57  ;;  %v1751_v41 = vunpack.c.2.s8 %v1571_v49  ;;  %v1755_v52 = vunpack.c.3.s8 %v1571_v49  ;;  %v2143_v29 = vpack.c.bf16 %v1923_v22, %v1919_v0 }
 0x1f6   : > { %v2070_v44 = vcvt.s32.f32 %v1814_v31  ;;  %v2074_v21 = vcvt.s32.f32 %v1818_v40  ;;  %v1806_v11 = vunpack.c.0.s8 %v1586_v20  ;;  %v1810_v6 = vunpack.c.1.s8 %v1586_v20 }
 0x1f7   : > { %v2191_v7 = vpack.c.bf16 %v2019_v23, %v2015_v38  ;;  %v2007_v43 = vcvt.s32.f32 %v1751_v41  ;;  %v2011_v36 = vcvt.s32.f32 %v1755_v52  ;;  %v1743_v55 = vunpack.c.0.s8 %v1571_v49  ;;  %v1587_v38 = vld [vmem:[%s3412_s17 + $0x1b8] sm:$0xff] }
 0x1f8   : > { %2380 = vmatpush.bf16.msrb.mxu3 %v2230_v30  ;;  %2410 = vmatpush.bf16.msra.mxu1 %v2151_v12  ;;  %v2218_v48 = vpack.c.bf16 %v2074_v21, %v2070_v44  ;;  %v2062_v27 = vcvt.s32.f32 %v1806_v11  ;;  %v1747_v16 = vunpack.c.1.s8 %v1571_v49  ;;  %v2066_v46 = vcvt.s32.f32 %v1810_v6 }
 0x1f9   : > { %2419 = vmatpush.bf16.msra.mxu2 %v2199_v10  ;;  %v2187_v63 = vpack.c.bf16 %v2011_v36, %v2007_v43  ;;  %v1798_v26 = vunpack.c.2.s8 %v1582_v56  ;;  %v1802_v59 = vunpack.c.3.s8 %v1582_v56  ;;  %v1999_v2 = vcvt.s32.f32 %v1743_v55  ;;  %v1583_v36 = vld [vmem:[%s3412_s17 + $0x198] sm:$0xff] }
 0x1fa   : > { %v2003_v58 = vcvt.s32.f32 %v1747_v16  ;;  %v1735_v4 = vunpack.c.2.s8 %v1567_v62  ;;  %v1739_v18 = vunpack.c.3.s8 %v1567_v62  ;;  %v2214_v33 = vpack.c.bf16 %v2066_v46, %v2062_v27 }
 0x1fb   : > { %v2054_v30 = vcvt.s32.f32 %v1798_v26  ;;  %v2058_v8 = vcvt.s32.f32 %v1802_v59  ;;  %v1790_v3 = vunpack.c.0.s8 %v1582_v56  ;;  %v1794_v12 = vunpack.c.1.s8 %v1582_v56 }
 0x1fc   : > { %2381 = vmatpush.bf16.msrb.mxu3 %v2226_v5  ;;  %2411 = vmatpush.bf16.msra.mxu1 %v2147_v37  ;;  %v2183_v61 = vpack.c.bf16 %v2003_v58, %v1999_v2  ;;  %v1991_v51 = vcvt.s32.f32 %v1735_v4  ;;  %v1995_v50 = vcvt.s32.f32 %v1739_v18  ;;  %v1727_v10 = vunpack.c.0.s8 %v1567_v62 }
 0x1fd   : > { %2420 = vmatpush.bf16.msra.mxu2 %v2195_v32  ;;  %v1731_v14 = vunpack.c.1.s8 %v1567_v62  ;;  %v1851_v47 = vunpack.c.3.s8 %v1595_v17  ;;  %v2210_v54 = vpack.c.bf16 %v2058_v8, %v2054_v30  ;;  %v2046_v13 = vcvt.s32.f32 %v1790_v3 }
 0x1fe   : > { %v2050_v34 = vcvt.s32.f32 %v1794_v12  ;;  %v2103_v1 = vcvt.s32.f32 %v1847_v19  ;;  %v1839_v25 = vunpack.c.0.s8 %v1595_v17  ;;  %v1843_v45 = vunpack.c.1.s8 %v1595_v17  ;;  %v2482_v12 = vld [vmem:[%s3418_s20] sm:$0xff] }
 0x1ff   : > { %v2107_v5 = vcvt.s32.f32 %v1851_v47  ;;  %v1983_v20 = vcvt.s32.f32 %v1727_v10  ;;  %v1987_v37 = vcvt.s32.f32 %v1731_v14  ;;  %v1831_v60 = vunpack.c.2.s8 %v1591_v39 }
 0x200   : > { %2382 = vmatpush.bf16.msrb.mxu3 %v2222_v53  ;;  %2412 = vmatpush.bf16.msra.mxu1 %v2143_v29  ;;  %v2206_v24 = vpack.c.bf16 %v2050_v34, %v2046_v13  ;;  %v2095_v49 = vcvt.s32.f32 %v1839_v25  ;;  %v2099_v32 = vcvt.s32.f32 %v1843_v45  ;;  %v1835_v0 = vunpack.c.3.s8 %v1591_v39 }
 0x201   : > { %2421 = vmatpush.bf16.msra.mxu2 %v2191_v7  ;;  %v2235_v42 = vpack.c.bf16 %v2107_v5, %v2103_v1  ;;  %v2175_v35 = vpack.c.bf16 %v1987_v37, %v1983_v20  ;;  %v2087_v57 = vcvt.s32.f32 %v1831_v60  ;;  %v1823_v31 = vunpack.c.0.s8 %v1591_v39 }
 0x202   : > { %v2231_v53 = vpack.c.bf16 %v2099_v32, %v2095_v49  ;;  %v2091_v22 = vcvt.s32.f32 %v1835_v0  ;;  %v1827_v40 = vunpack.c.1.s8 %v1591_v39  ;;  %v1815_v23 = vunpack.c.2.s8 %v1587_v38  ;;  %v2483_v39 = vld [vmem:[%s3418_s20 + $0x8] sm:$0xff] }
 0x203   : > { %2335 = vmatmul.bf16.vlgmr.msra.gmra.mxu3 %v4276_v15  ;;  %2413 = vmatmul.bf16.vlgmr.msra.gmra.mxu1 %v4099_v9  ;;  %v2179_v9 = vpack.c.bf16 %v1995_v50, %v1991_v51  ;;  %v2079_v52 = vcvt.s32.f32 %v1823_v31  ;;  %v1819_v44 = vunpack.c.3.s8 %v1587_v38  ;;  %v1807_v21 = vunpack.c.0.s8 %v1587_v38 }
 0x204   : > { %2383 = vmatpush.bf16.msrb.mxu3 %v2218_v48  ;;  %v2227_v41 = vpack.c.bf16 %v2091_v22, %v2087_v57  ;;  %v2083_v29 = vcvt.s32.f32 %v1827_v40  ;;  %v2071_v56 = vcvt.s32.f32 %v1815_v23  ;;  %v1811_v43 = vunpack.c.1.s8 %v1587_v38  ;;  %v2484_v40 = vld [vmem:[%s3418_s20 + $0x10] sm:$0xff] }
 0x205   : > { %2422 = vmatpush.bf16.msra.mxu2 %v2187_v63  ;;  %v2075_v7 = vcvt.s32.f32 %v1819_v44  ;;  %v1799_v6 = vunpack.c.2.s8 %v1583_v36  ;;  %v2063_v48 = vcvt.s32.f32 %v1807_v21  ;;  %v1803_v55 = vunpack.c.3.s8 %v1583_v36  ;;  %v4311_v21 = vld [vmem:[%s3421_s3 + $0x2] ss:$8 sm:$0xf] }
 0x206   : > { %v2223_v11 = vpack.c.bf16 %v2083_v29, %v2079_v52  ;;  %v2067_v27 = vcvt.s32.f32 %v1811_v43  ;;  %v1791_v26 = vunpack.c.0.s8 %v1583_v36  ;;  %v2498_v51 = vunpack.c.3.s8 %v2482_v12 }
 0x207   : > { %v2219_v62 = vpack.c.bf16 %v2075_v7, %v2071_v56  ;;  %v2055_v16 = vcvt.s32.f32 %v1799_v6  ;;  %v2059_v46 = vcvt.s32.f32 %v1803_v55  ;;  %v2499_v20 = vunpack.c.3.s8 %v2483_v39  ;;  %v4314_v7 = vld [vmem:[%s3421_s3 + $0x6] ss:$8 sm:$0xf] }
 0x208   : > { %2384 = vmatpush.bf16.msrb.mxu3 %v2214_v33  ;;  %v2215_v63 = vpack.c.bf16 %v2067_v27, %v2063_v48  ;;  %v2047_v2 = vcvt.s32.f32 %v1791_v26  ;;  %v2514_v10 = vcvt.s32.f32 %v2498_v51  ;;  %v2487_v32 = vunpack.c.0.s8 %v2483_v39 }
 0x209   : > { %2423 = vmatpush.bf16.msra.mxu2 %v2183_v61  ;;  %v2211_v59 = vpack.c.bf16 %v2059_v46, %v2055_v16  ;;  %v2494_v61 = vunpack.c.2.s8 %v2482_v12  ;;  %v2515_v60 = vcvt.s32.f32 %v2499_v20  ;;  %v2491_v0 = vunpack.c.1.s8 %v2483_v39 }
 0x20a   : > { %v2503_v57 = vcvt.s32.f32 %v2487_v32  ;;  %v2496_v38 = vunpack.c.2.s8 %v2484_v40  ;;  %v2500_v23 = vunpack.c.3.s8 %v2484_v40  ;;  %v2462_v48 = vperm.slane %v4314_v7, 0 }
 0x20b   : > { %v2510_v50 = vcvt.s32.f32 %v2494_v61  ;;  %v2488_v27 = vunpack.c.0.s8 %v2484_v40  ;;  %v2492_v55 = vunpack.c.1.s8 %v2484_v40 }
 0x20c   : > { %2385 = vmatpush.bf16.msrb.mxu3 %v2210_v54  ;;  %v2490_v54 = vunpack.c.1.s8 %v2482_v12  ;;  %v2512_v29 = vcvt.s32.f32 %v2496_v38  ;;  %v2516_v44 = vcvt.s32.f32 %v2500_v23 }
 0x20d   : > { %2424 = vmatpush.bf16.msra.mxu2 %v2179_v9  ;;  %v2522_v19 = vpack.c.bf16 %v2514_v10, %v2510_v50  ;;  %v2495_v9 = vunpack.c.2.s8 %v2483_v39  ;;  %v2504_v46 = vcvt.s32.f32 %v2488_v27  ;;  %v2508_v26 = vcvt.s32.f32 %v2492_v55 }
 0x20e   : > { %v2506_v1 = vcvt.s32.f32 %v2490_v54  ;;  %v2524_v56 = vpack.c.bf16 %v2516_v44, %v2512_v29  ;;  %v2450_v29 = vperm.slane %v4311_v21, 3 }
 0x20f   : > { %2532 = vmatpush.bf16.xpose.msrb.mxu0 %v2522_v19  ;;  %v2448_v19 = vperm.slane %v4311_v21, 1 }
 0x210   : > { %2386 = vmatpush.bf16.msrb.mxu3 %v2206_v24  ;;  %v2511_v24 = vcvt.s32.f32 %v2495_v9 }
 0x211   : > { %2425 = vmatpush.bf16.msra.mxu2 %v2175_v35 }
 0x212   : > { %v2523_v49 = vpack.c.bf16 %v2515_v60, %v2511_v24  ;;  %v2449_v24 = vperm.slane %v4311_v21, 2 }
 0x213   : > { %2387 = vmatmul.bf16.vlgmr.msrb.gmra.mxu3 %v4276_v15 }
 0x214   : > { %2431 = vmatpush.bf16.msra.mxu3 %v2235_v42  ;;  %2426 = vmatmul.bf16.vlgmr.msra.gmra.mxu2 %v4195_v28  ;;  %v1795_v28 = vunpack.c.1.s8 %v1583_v36  ;;  %v2447_v36 = vperm.slane %v4311_v21, 0 }
 0x215   : > { %2545 = vmatpush.bf16.xpose.msrb.mxu1 %v2523_v49  ;;  %2558 = vmatpush.bf16.xpose.msrb.mxu2 %v2524_v56  ;;  %v2465_v56 = vperm.slane %v4314_v7, 3 }
 0x216   : > { %v2051_v58 = vcvt.s32.f32 %v1795_v28 }
 0x218   : > { %2432 = vmatpush.bf16.msra.mxu3 %v2231_v53  ;;  %v2207_v4 = vpack.c.bf16 %v2051_v58, %v2047_v2  ;;  %v2507_v53 = vcvt.s32.f32 %v2491_v0  ;;  %v2520_v2 = vpack.c.bf16 %v2508_v26, %v2504_v46 }
 0x21a   : > { %v2519_v31 = vpack.c.bf16 %v2507_v53, %v2503_v57 }
 0x21c   : > { %2433 = vmatpush.bf16.msra.mxu3 %v2227_v41 }
 0x21d   : > { %2546 = vmatpush.bf16.xpose.msrb.mxu1 %v2519_v31  ;;  %2559 = vmatpush.bf16.xpose.msrb.mxu2 %v2520_v2  ;;  %v2580_v2 = vld [vmem:[%s3421_s3 + $0x7] ss:$0 sm:$0xff] }
 0x220   : > { %2434 = vmatpush.bf16.msra.mxu3 %v2223_v11 }
 0x224   : > { %2435 = vmatpush.bf16.msra.mxu3 %v2219_v62 }
 0x228   : > { %2436 = vmatpush.bf16.msra.mxu3 %v2215_v63 }
 0x22c   : > { %2437 = vmatpush.bf16.msra.mxu3 %v2211_v59 }
 0x22f   : > { %v2245_v18 = vpop.f32.mrf.mxu0 }
 0x230   : > { %2438 = vmatpush.bf16.msra.mxu3 %v2207_v4 }
 0x233   : > { %2439 = vmatmul.bf16.vlgmr.msra.gmra.mxu3 %v4276_v15  ;;  %v2486_v15 = vunpack.c.0.s8 %v2482_v12 }
 0x235   : > { %v2502_v34 = vcvt.s32.f32 %v2486_v15 }
 0x237   : > { %v2247_v33 = vpop.f32.mrf.mxu0  ;;  %v2518_v25 = vpack.c.bf16 %v2506_v1, %v2502_v34  ;;  %v2463_v34 = vperm.slane %v4314_v7, 1 }
 0x238   : > { %v2485_v33 = vld [vmem:[%s3418_s20 + $0x18] sm:$0xff] }
 0x239   : > { %2533 = vmatpush.bf16.xpose.msrb.mxu0 %v2518_v25  ;;  %v2493_v20 = vunpack.c.1.s8 %v2485_v33 }
 0x23b   : > { %v2509_v49 = vcvt.s32.f32 %v2493_v20 }
 0x23f   : > { %v2258_v30 = vpop.f32.mrf.mxu1  ;;  %v4297_v8 = vpop.f32.mrf.mxu0 }
 0x240   : > { %v2259_v11 = vadd.f32 %v2258_v30, %v2245_v18 }
 0x247   : > { %v2260_v3 = vpop.f32.mrf.mxu1  ;;  %v2299_v17 = vpop.f32.mrf.mxu0 }
 0x248   : > { %v2497_v3 = vunpack.c.2.s8 %v2485_v33  ;;  %v2501_v17 = vunpack.c.3.s8 %v2485_v33 }
 0x24a   : > { %v2513_v51 = vcvt.s32.f32 %v2497_v3  ;;  %v2517_v50 = vcvt.s32.f32 %v2501_v17 }
 0x24c   : > { %v2525_v54 = vpack.c.bf16 %v2517_v50, %v2513_v51 }
 0x24e   : > { %2571 = vmatpush.bf16.xpose.msrb.mxu3 %v2525_v54 }
 0x24f   : > { %v4300_v14 = vpop.f32.mrf.mxu1  ;;  %v4302_v47 = vpop.f32.mrf.mxu0 }
 0x250   : > { %v2311_v12 = vadd.f32 %v4300_v14, %v4297_v8  ;;  %v2489_v14 = vunpack.c.0.s8 %v2485_v33 }
 0x252   : > { %v2505_v60 = vcvt.s32.f32 %v2489_v14 }
 0x254   : > { %v2521_v57 = vpack.c.bf16 %v2509_v49, %v2505_v60 }
 0x256   : > { %v2271_v13 = vpop.f32.mrf.mxu2  ;;  %2572 = vmatpush.bf16.xpose.msrb.mxu3 %v2521_v57 }
 0x257   : > { %v2312_v5 = vpop.f32.mrf.mxu1  ;;  %v2351_v45 = vpop.f32.mrf.mxu0  ;;  %v2272_v43 = vadd.f32 %v2271_v13, %v2259_v11 }
 0x25e   : > { %v2273_v37 = vpop.f32.mrf.mxu2 }
 0x262   : > { %v4305_v42 = vpop.f32.mrf.mxu1 }
 0x263   : > { %v2363_v8 = vadd.f32 %v4305_v42, %v4302_v47 }
 0x266   : > { %v2323_v35 = vpop.f32.mrf.mxu2 }
 0x267   : > { %v2324_v10 = vadd.f32 %v2323_v35, %v2311_v12  ;;  %v2464_v35 = vperm.slane %v4314_v7, 2 }
 0x26a   : > { %v2364_v22 = vpop.f32.mrf.mxu1 }
 0x26e   : > { %v2325_v52 = vpop.f32.mrf.mxu2 }
 0x26f   : > { %v4308_v41 = vpop.f32.mrf.mxu0 }
 0x276   : > { %v2284_v6 = vpop.f32.mrf.mxu3  ;;  %v2375_v59 = vpop.f32.mrf.mxu2 }
 0x277   : > { %v2285_v62 = vadd.f32 %v2284_v6, %v2272_v43  ;;  %v2403_v16 = vpop.f32.mrf.mxu0  ;;  %v2376_v37 = vadd.f32 %v2375_v59, %v2363_v8 }
 0x279   : > { %v2455_v63 = vmul.f32 %v2447_v36, %v2285_v62 }
 0x27b   : > { %v2470_v28 = vadd.f32 %v2462_v48, %v2455_v63 }
 0x27d   : > { %v2474_v58 = vmax.f32 %v2470_v28, 0.0  ;;  %v2578_v28 = vld [vmem:[%s3421_s3 + $0x3] ss:$0 sm:$0xff] }
 0x27e   : > { %v2286_v4 = vpop.f32.mrf.mxu3  ;;  %v2377_v61 = vpop.f32.mrf.mxu2 }
 0x27f   : > { %v2478_v18 = vpack.c.bf16 %v2474_v58, %v2474_v58 }
 0x280   : > { %v2414_v30 = vpop.f32.mrf.mxu1 }
 0x281   : > { %2534 = vmatmul.bf16.vlgmr.msrb.gmra.mxu0 %v2478_v18  ;;  %v2415_v42 = vadd.f32 %v2414_v30, %v4308_v41 }
 0x286   : > { %v2336_v15 = vpop.f32.mrf.mxu3 }
 0x287   : > { %v2337_v13 = vadd.f32 %v2336_v15, %v2324_v10 }
 0x288   : > { %v2416_v5 = vpop.f32.mrf.mxu1 }
 0x289   : > { %v2456_v1 = vmul.f32 %v2448_v19, %v2337_v13 }
 0x28b   : > { %v2471_v25 = vadd.f32 %v2463_v34, %v2456_v1 }
 0x28d   : > { %v2475_v45 = vmax.f32 %v2471_v25, 0.0 }
 0x28e   : > { %v2338_v39 = vpop.f32.mrf.mxu3 }
 0x28f   : > { %v2479_v9 = vpack.c.bf16 %v2475_v45, %v2475_v45 }
 0x291   : > { %2547 = vmatmul.bf16.vlgmr.msrb.gmra.mxu1 %v2479_v9 }
 0x296   : > { %v2388_v32 = vpop.f32.mrf.mxu3 }
 0x297   : > { %v2389_v0 = vadd.f32 %v2388_v32, %v2376_v37  ;;  %v2427_v22 = vpop.f32.mrf.mxu2 }
 0x298   : > { %v2428_v52 = vadd.f32 %v2427_v22, %v2415_v42 }
 0x299   : > { %v2457_v53 = vmul.f32 %v2449_v24, %v2389_v0 }
 0x29b   : > { %v2472_v31 = vadd.f32 %v2464_v35, %v2457_v53 }
 0x29d   : > { %v2476_v40 = vmax.f32 %v2472_v31, 0.0 }
 0x29e   : > { %v2390_v38 = vpop.f32.mrf.mxu3 }
 0x29f   : > { %v2480_v23 = vpack.c.bf16 %v2476_v40, %v2476_v40  ;;  %v2429_v47 = vpop.f32.mrf.mxu2 }
 0x2a1   : > { %2560 = vmatmul.bf16.vlgmr.msrb.gmra.mxu2 %v2480_v23 }
 0x2b6   : > { %v2440_v44 = vpop.f32.mrf.mxu3 }
 0x2b7   : > { %v2441_v11 = vadd.f32 %v2440_v44, %v2428_v52 }
 0x2b9   : > { %v2458_v43 = vmul.f32 %v2450_v29, %v2441_v11 }
 0x2bb   : > { %v2473_v36 = vadd.f32 %v2465_v56, %v2458_v43 }
 0x2bd   : > { %v2477_v6 = vmax.f32 %v2473_v36, 0.0 }
 0x2be   : > { %v2442_v62 = vpop.f32.mrf.mxu3 }
 0x2bf   : > { %v2481_v48 = vpack.c.bf16 %v2477_v6, %v2477_v6 }
 0x2c1   : > { %2573 = vmatmul.bf16.vlgmr.msrb.gmra.mxu3 %v2481_v48 }
 0x2fe   : > { %v2535_v27 = vpop.f32.mrf.mxu0 }
 0x306   : > { %v2537_v55 = vpop.f32.mrf.mxu0 }
 0x30e   : > { %v2548_v41 = vpop.f32.mrf.mxu1 }
 0x30f   : > { %v2549_v46 = vadd.f32 %v2548_v41, %v2535_v27 }
 0x316   : > { %v2550_v16 = vpop.f32.mrf.mxu1 }
 0x324   : > { %v2561_v63 = vpop.f32.mrf.mxu2 }
 0x325   : > { %v2562_v26 = vadd.f32 %v2561_v63, %v2549_v46 }
 0x32c   : > { %v2563_v21 = vpop.f32.mrf.mxu2 }
 0x344   : > { %v2574_v7 = vpop.f32.mrf.mxu3 }
 0x345   : > { %v2575_v59 = vadd.f32 %v2574_v7, %v2562_v26 }
 0x347   : > { %v2579_v58 = vmul.f32 %v2578_v28, %v2575_v59 }
 0x349   : > { %v2581_v4 = vadd.f32 %v2580_v2, %v2579_v58 }
 0x34b   : > { %2583 = vst.msk [vmem:[%s442_s24] sm:$0x3] %vm2582_vm1, %v2581_v4 }
 0x34c   : > { %v2576_v18 = vpop.f32.mrf.mxu3 }
 0x34d   : > { %3099 = shalt.err (!%p3096_p12)
}
 0x34e   : > { %2827 = dma.vmem_to_hbm [thread:$0]  (%p3316_p3), %s2598_s14, 32, %s2600_s16, %s2585_s11  }
 0x34f PF: > { %s4420_s7 = sld [smem:[#allocation21_spill]] }
 0x350   : > { %s4421_s26 = sld [smem:[#allocation19_spill]] }
 0x355   : > { %p2856_p13 = scmp.ge.s32.totalorder %s4420_s7, 2 }
 0x356   : > { %s2611_s19 = sand.u32 1, %s4421_s26  }
 0x357   : > { %p2850_p1 = pnand %p2856_p13, %p3320_p4  ;;  %s2612_s13 = scalar_lea.sflag [#allocation4], %s2611_s19 }
 0x359   : > { %p2851_p9 = pneg %p2850_p1 }
 0x35b   : > { %3133 = dma.done.wait (%p2851_p9), %s2612_s13, 32  }
 0x35c   : > { %3135 = vsyncadd (%p2851_p9), %s2612_s13, 4294967264  ;;  %s4423_s24 = sld [smem:[#allocation22_spill]]  ;;  %s4426_s21 = smov %s3142_s22 }
 0x35d   : > { %s4424_s25 = sld [smem:[#allocation20_spill]] }
 0x35e   : > { %s4425_s23 = sld [smem:[#allocation23_spill]] }
 0x362   : > { %p26_p7 = scmp.ge.s32.totalorder %s4423_s24, 5  }
 0x363   : > { %s4427_s22 = smov %s4424_s25 }
 0x364   :  { %28 = sbr.rel (!%p26_p7) target bundleno = 16 (0x10), region = 147 }
 0x369   :  { %2618 = vsyncpa [#allocation3], 1 }
 0x36a   :  { %2620 = vsyncpa [#allocation3 + $0x1], 1 }
 0x36b   :  { %2621 = vsyncpa [#allocation6], 1 }
 0x36c   :  { %2623 = vsyncpa [#allocation6 + $0x1], 1 }
 0x36d   :  { %2624 = vsyncpa [#allocation9], 1 }
 0x36e   :  { %2626 = vsyncpa [#allocation9 + $0x1], 1 }
 0x36f   :  { %2627 = vsyncpa [#allocation12], 1 }
 0x370   :  { %2629 = vsyncpa [#allocation12 + $0x1], 1 }
 0x371   :  { %2630 = vsyncpa [#allocation4], 1 }
 0x372   :  { %2632 = vsyncpa [#allocation4 + $0x1], 1 }

</bundles_post_ra>
